<compile_context>
chip_gen: v7x
topology: tpu7x:2x2x1
jax: 0.10.0
libtpu: 0.0.40
codegen_flags: <defaults>
</compile_context>

<pallas_src>
import jax
import jax.numpy as jnp
from jax.experimental import pallas as pl
from jax.experimental.pallas import tpu as pltpu

BN_EPS = 1e-5
NORM_EPS = 1e-12


def _branch_kernel(x_ref, w1_ref, p1_ref, w2_ref, psh_ref, o_ref):
    k = pl.program_id(0)

    @pl.when(k == 0)
    def _():
        o_ref[...] = jnp.zeros_like(o_ref)

    # ---- Linear 1, column block (bf16 x bf16 -> f32 on the MXU) ----
    # The bias b1 is omitted: it is constant per column, so it cancels exactly
    # in the batch-mean subtraction of the training-mode BatchNorm below.
    h = jnp.dot(x_ref[...], w1_ref[...], preferred_element_type=jnp.float32)

    # ---- BatchNorm1d (training mode: batch mean, biased batch variance) ----
    # Stats are per feature column; columns in this block are independent of
    # other blocks, so per-block stats are exact.
    mu = jnp.mean(h, axis=0, keepdims=True)
    var = jnp.mean((h - mu) * (h - mu), axis=0, keepdims=True)
    h = (h - mu) * jax.lax.rsqrt(var + BN_EPS)
    h = h * p1_ref[0:1, :] + p1_ref[1:2, :]          # gamma, beta (packed)

    # ---- ReLU ----
    h = jnp.maximum(h, 0.0)

    # ---- Linear 2 partial product, accumulated into the resident output ----
    # b2 is omitted for the same reason as b1 (shared BN follows).
    o_ref[...] += jnp.dot(h.astype(jnp.bfloat16), w2_ref[...],
                          preferred_element_type=jnp.float32)

    # ---- epilogue on the last hidden block ----
    @pl.when(k == pl.num_programs(0) - 1)
    def _():
        z = o_ref[...]

        # shared BatchNorm1d (training mode, this branch's batch stats)
        mu2 = jnp.mean(z, axis=0, keepdims=True)
        var2 = jnp.mean((z - mu2) * (z - mu2), axis=0, keepdims=True)
        z = (z - mu2) * jax.lax.rsqrt(var2 + BN_EPS)
        z = z * psh_ref[0:1, :] + psh_ref[1:2, :]

        # F.normalize(dim=1): z / max(||z||, 1e-12) via a single rsqrt (EUP)
        sumsq = jnp.sum(z * z, axis=1, keepdims=True)
        inv = jax.lax.rsqrt(jnp.maximum(sumsq, NORM_EPS * NORM_EPS))
        o_ref[...] = z * inv


def branch_forward(x, w1, bn1_params, w2, bn_sh_params, *, tn):
    """One refine branch: Linear -> BN -> ReLU -> Linear -> shared BN -> l2norm."""
    B, d_in = x.shape
    d_hidden = w1.shape[1]
    d_out = w2.shape[1]
    assert d_hidden % tn == 0, (d_hidden, tn)
    n_steps = d_hidden // tn

    return pl.pallas_call(
        _branch_kernel,
        out_shape=jax.ShapeDtypeStruct((B, d_out), jnp.float32),
        grid=(n_steps,),
        in_specs=[
            pl.BlockSpec((B, d_in), lambda k: (0, 0)),     # x (resident, bf16)
            pl.BlockSpec((d_in, tn), lambda k: (0, k)),    # W1 column block (bf16)
            pl.BlockSpec((2, tn), lambda k: (0, k)),       # BN1 [gamma; beta] block
            pl.BlockSpec((tn, d_out), lambda k: (k, 0)),   # W2 row block (bf16)
            pl.BlockSpec((2, d_out), lambda k: (0, 0)),    # shared BN [gamma; beta]
        ],
        out_specs=pl.BlockSpec((B, d_out), lambda k: (0, 0)),
        compiler_params=pltpu.CompilerParams(
            dimension_semantics=("arbitrary",),  # reduction over hidden blocks
        ),
    )(x.astype(jnp.bfloat16), w1, bn1_params, w2, bn_sh_params)


def init_linear(key, d_in, d_out, weight_dtype=jnp.bfloat16):
    """PyTorch nn.Linear default init, stored as (in, out); weights in bf16."""
    kw, kb = jax.random.split(key)
    bound = 1.0 / jnp.sqrt(jnp.float32(d_in))
    w = jax.random.uniform(kw, (d_in, d_out), jnp.float32, -bound, bound)
    b = jax.random.uniform(kb, (1, d_out), jnp.float32, -bound, bound)
    return w.astype(weight_dtype), b


def init_bn(d):
    # Packed [gamma; beta] rows: gamma=1, beta=0 (PyTorch BatchNorm1d defaults).
    return jnp.concatenate(
        [jnp.ones((1, d), jnp.float32), jnp.zeros((1, d), jnp.float32)], axis=0)


@jax.jit
def contrastive_learning_layer(params, enzy_embed, smiles_embed):
    p = params
    enzy_out = branch_forward(
        enzy_embed, p["enzy_w1"], p["bn_enzy"], p["enzy_w2"], p["bn_sh"], tn=640)
    smiles_out = branch_forward(
        smiles_embed, p["smi_w1"], p["bn_smi"], p["smi_w2"], p["bn_sh"], tn=384)
    return enzy_out, smiles_out


def _reference_branch(x, w1, b1, bn1, w2, b2, bn_sh):
    # Pure-JAX f32 reference on the same (bf16-stored) parameters.  The biases
    # b1/b2 ARE added here; they cancel under training-mode BatchNorm, which is
    # exactly why the kernel omits them.
    w1 = w1.astype(jnp.float32)
    w2 = w2.astype(jnp.float32)
    g1, be1 = bn1[0:1], bn1[1:2]
    gs, bs = bn_sh[0:1], bn_sh[1:2]
    h = x @ w1 + b1
    mu = h.mean(0, keepdims=True)
    var = ((h - mu) ** 2).mean(0, keepdims=True)
    h = (h - mu) / jnp.sqrt(var + BN_EPS) * g1 + be1
    h = jnp.maximum(h, 0.0)
    z = h @ w2 + b2
    mu2 = z.mean(0, keepdims=True)
    var2 = ((z - mu2) ** 2).mean(0, keepdims=True)
    z = (z - mu2) / jnp.sqrt(var2 + BN_EPS) * gs + bs
    nrm = jnp.sqrt((z * z).sum(1, keepdims=True))
    return z / jnp.maximum(nrm, NORM_EPS)


if __name__ == "__main__":
    key = jax.random.PRNGKey(0)
    (k_e1, k_e2, k_s1, k_s2, k_xe, k_xs) = jax.random.split(key, 6)

    B = 8
    D_ENZY, D_SMI, D_SHARED = 1280, 768, 128

    params = {}
    params["enzy_w1"], b1_enzy = init_linear(k_e1, D_ENZY, D_ENZY)
    params["enzy_w2"], b2_enzy = init_linear(k_e2, D_ENZY, D_SHARED)
    params["smi_w1"], b1_smi = init_linear(k_s1, D_SMI, D_SMI)
    params["smi_w2"], b2_smi = init_linear(k_s2, D_SMI, D_SHARED)
    params["bn_enzy"] = init_bn(D_ENZY)
    params["bn_smi"] = init_bn(D_SMI)
    params["bn_sh"] = init_bn(D_SHARED)

    enzy_embed = jax.random.normal(k_xe, (B, D_ENZY), jnp.float32)
    smiles_embed = jax.random.normal(k_xs, (B, D_SMI), jnp.float32)

    enzy_out, smiles_out = contrastive_learning_layer(params, enzy_embed, smiles_embed)
    jax.block_until_ready((enzy_out, smiles_out))

    # Sanity check vs. pure-JAX f32 reference (same bf16-stored weights; the
    # kernel uses the bf16 MXU path for activations, hence the tolerance).
    ref_e = _reference_branch(enzy_embed, params["enzy_w1"], b1_enzy,
                              params["bn_enzy"], params["enzy_w2"], b2_enzy,
                              params["bn_sh"])
    ref_s = _reference_branch(smiles_embed, params["smi_w1"], b1_smi,
                              params["bn_smi"], params["smi_w2"], b2_smi,
                              params["bn_sh"])
    assert enzy_out.shape == (B, D_SHARED) and smiles_out.shape == (B, D_SHARED)
    assert jnp.allclose(enzy_out, ref_e, atol=2e-2, rtol=2e-2)
    assert jnp.allclose(smiles_out, ref_s, atol=2e-2, rtol=2e-2)

    print("KERNEL_OK")
</pallas_src>

<mosaic_0001>
module attributes {stable_mosaic.version = 11 : i64} {
  func.func @_branch_kernel(%arg0: i32, %arg1: memref<8x768xbf16, #tpu.memory_space<vmem>>, %arg2: memref<768x384xbf16, #tpu.memory_space<vmem>>, %arg3: memref<2x384xf32, #tpu.memory_space<vmem>>, %arg4: memref<384x128xbf16, #tpu.memory_space<vmem>>, %arg5: memref<2x128xf32, #tpu.memory_space<vmem>>, %arg6: memref<8x128xf32, #tpu.memory_space<vmem>>) attributes {dimension_semantics = [#tpu.dimension_semantics<arbitrary>], iteration_bounds = array<i64: 2>, scalar_prefetch = 0 : i64, scratch_operands = 0 : i64, tpu.core_type = #tpu.core_type<tc>, window_params = [{pipeline_mode = #tpu.pipeline_mode<synchronous>, transform_indices = @transform_0, window_bounds = array<i64: 8, 768>}, {transform_indices = @transform_1, window_bounds = array<i64: 768, 384>}, {transform_indices = @transform_2, window_bounds = array<i64: 2, 384>}, {transform_indices = @transform_3, window_bounds = array<i64: 384, 128>}, {pipeline_mode = #tpu.pipeline_mode<synchronous>, transform_indices = @transform_4, window_bounds = array<i64: 2, 128>}, {pipeline_mode = #tpu.pipeline_mode<synchronous>, transform_indices = @transform_5, window_bounds = array<i64: 8, 128>}]} {
    %c0_i32 = arith.constant 0 : i32
    %0 = arith.cmpi eq, %arg0, %c0_i32 : i32
    %1 = arith.extui %0 : i1 to i32
    %c0_i32_0 = arith.constant 0 : i32
    %2 = arith.cmpi ne, %1, %c0_i32_0 : i32
    scf.if %2 {
      %cst_21 = arith.constant 0.000000e+00 : f32
      %43 = vector.broadcast %cst_21 : f32 to vector<8x128xf32>
      %c0_22 = arith.constant 0 : index
      %c0_23 = arith.constant 0 : index
      %44 = vector.load %arg6[%c0_22, %c0_23] : memref<8x128xf32, #tpu.memory_space<vmem>>, vector<8x128xf32>
      tpu.vector_store %arg6[%c0_22, %c0_23], %43 {strides = array<i32>} : memref<8x128xf32, #tpu.memory_space<vmem>>, vector<8x128xf32>,
    } else {
    }
    %c0 = arith.constant 0 : index
    %c0_1 = arith.constant 0 : index
    %3 = vector.load %arg1[%c0, %c0_1] : memref<8x768xbf16, #tpu.memory_space<vmem>>, vector<8x768xbf16>
    %c0_2 = arith.constant 0 : index
    %c0_3 = arith.constant 0 : index
    %4 = vector.load %arg2[%c0_2, %c0_3] : memref<768x384xbf16, #tpu.memory_space<vmem>>, vector<768x384xbf16>
    %cst = arith.constant dense<0.000000e+00> : vector<8x384xf32>
    %5 = tpu.matmul %3, %4, %cst {dimension_numbers = #tpu.dot_dimension_numbers<[1], [0], [0], [1], [0, 0, 1, 1], [], []>} : vector<8x768xbf16>, vector<768x384xbf16>, vector<8x384xf32> -> vector<8x384xf32>
    %cst_4 = arith.constant dense<0.000000e+00> : vector<384xf32>
    %6 = vector.multi_reduction <add>, %5, %cst_4 [0] : vector<8x384xf32> to vector<384xf32>
    %7 = vector.shape_cast %6 : vector<384xf32> to vector<1x384xf32>
    %cst_5 = arith.constant 8.000000e+00 : f32
    %8 = vector.broadcast %cst_5 : f32 to vector<1x384xf32>
    %9 = arith.divf %7, %8 : vector<1x384xf32>
    %10 = vector.broadcast %9 : vector<1x384xf32> to vector<8x384xf32>
    %11 = arith.subf %5, %10 : vector<8x384xf32>
    %12 = vector.broadcast %9 : vector<1x384xf32> to vector<8x384xf32>
    %13 = arith.subf %5, %12 : vector<8x384xf32>
    %14 = arith.mulf %11, %13 : vector<8x384xf32>
    %cst_6 = arith.constant dense<0.000000e+00> : vector<384xf32>
    %15 = vector.multi_reduction <add>, %14, %cst_6 [0] : vector<8x384xf32> to vector<384xf32>
    %16 = vector.shape_cast %15 : vector<384xf32> to vector<1x384xf32>
    %cst_7 = arith.constant 8.000000e+00 : f32
    %17 = vector.broadcast %cst_7 : f32 to vector<1x384xf32>
    %18 = arith.divf %16, %17 : vector<1x384xf32>
    %19 = vector.broadcast %9 : vector<1x384xf32> to vector<8x384xf32>
    %20 = arith.subf %5, %19 : vector<8x384xf32>
    %cst_8 = arith.constant 9.99999974E-6 : f32
    %21 = vector.broadcast %cst_8 : f32 to vector<1x384xf32>
    %22 = arith.addf %18, %21 : vector<1x384xf32>
    %23 = math.rsqrt %22 : vector<1x384xf32>
    %24 = vector.broadcast %23 : vector<1x384xf32> to vector<8x384xf32>
    %25 = arith.mulf %20, %24 : vector<8x384xf32>
    %c0_9 = arith.constant 0 : index
    %c0_10 = arith.constant 0 : index
    %26 = vector.load %arg3[%c0_9, %c0_10] : memref<2x384xf32, #tpu.memory_space<vmem>>, vector<1x384xf32>
    %27 = vector.broadcast %26 : vector<1x384xf32> to vector<8x384xf32>
    %28 = arith.mulf %25, %27 : vector<8x384xf32>
    %c1 = arith.constant 1 : index
    %c0_11 = arith.constant 0 : index
    %29 = vector.load %arg3[%c1, %c0_11] : memref<2x384xf32, #tpu.memory_space<vmem>>, vector<1x384xf32>
    %30 = vector.broadcast %29 : vector<1x384xf32> to vector<8x384xf32>
    %31 = arith.addf %28, %30 : vector<8x384xf32>
    %cst_12 = arith.constant 0.000000e+00 : f32
    %32 = vector.broadcast %cst_12 : f32 to vector<8x384xf32>
    %33 = arith.maximumf %31, %32 : vector<8x384xf32>
    %c0_13 = arith.constant 0 : index
    %c0_14 = arith.constant 0 : index
    %34 = vector.load %arg6[%c0_13, %c0_14] : memref<8x128xf32, #tpu.memory_space<vmem>>, vector<8x128xf32>
    %35 = arith.truncf %33 : vector<8x384xf32> to vector<8x384xbf16>
    %c0_15 = arith.constant 0 : index
    %c0_16 = arith.constant 0 : index
    %36 = vector.load %arg4[%c0_15, %c0_16] : memref<384x128xbf16, #tpu.memory_space<vmem>>, vector<384x128xbf16>
    %cst_17 = arith.constant dense<0.000000e+00> : vector<8x128xf32>
    %37 = tpu.matmul %35, %36, %cst_17 {dimension_numbers = #tpu.dot_dimension_numbers<[1], [0], [0], [1], [0, 0, 1, 1], [], []>} : vector<8x384xbf16>, vector<384x128xbf16>, vector<8x128xf32> -> vector<8x128xf32>
    %38 = arith.addf %34, %37 : vector<8x128xf32>
    %c0_18 = arith.constant 0 : index
    %c0_19 = arith.constant 0 : index
    %39 = vector.load %arg6[%c0_18, %c0_19] : memref<8x128xf32, #tpu.memory_space<vmem>>, vector<8x128xf32>
    tpu.vector_store %arg6[%c0_18, %c0_19], %38 {strides = array<i32>} : memref<8x128xf32, #tpu.memory_space<vmem>>, vector<8x128xf32>,
    %c1_i32 = arith.constant 1 : i32
    %40 = arith.cmpi eq, %arg0, %c1_i32 : i32
    %41 = arith.extui %40 : i1 to i32
    %c0_i32_20 = arith.constant 0 : i32
    %42 = arith.cmpi ne, %41, %c0_i32_20 : i32
    scf.if %42 {
      %c0_21 = arith.constant 0 : index
      %c0_22 = arith.constant 0 : index
      %43 = vector.load %arg6[%c0_21, %c0_22] : memref<8x128xf32, #tpu.memory_space<vmem>>, vector<8x128xf32>
      %cst_23 = arith.constant dense<0.000000e+00> : vector<128xf32>
      %44 = vector.multi_reduction <add>, %43, %cst_23 [0] : vector<8x128xf32> to vector<128xf32>
      %45 = vector.shape_cast %44 : vector<128xf32> to vector<1x128xf32>
      %cst_24 = arith.constant 8.000000e+00 : f32
      %46 = vector.broadcast %cst_24 : f32 to vector<1x128xf32>
      %47 = arith.divf %45, %46 : vector<1x128xf32>
      %48 = vector.broadcast %47 : vector<1x128xf32> to vector<8x128xf32>
      %49 = arith.subf %43, %48 : vector<8x128xf32>
      %50 = vector.broadcast %47 : vector<1x128xf32> to vector<8x128xf32>
      %51 = arith.subf %43, %50 : vector<8x128xf32>
      %52 = arith.mulf %49, %51 : vector<8x128xf32>
      %cst_25 = arith.constant dense<0.000000e+00> : vector<128xf32>
      %53 = vector.multi_reduction <add>, %52, %cst_25 [0] : vector<8x128xf32> to vector<128xf32>
      %54 = vector.shape_cast %53 : vector<128xf32> to vector<1x128xf32>
      %cst_26 = arith.constant 8.000000e+00 : f32
      %55 = vector.broadcast %cst_26 : f32 to vector<1x128xf32>
      %56 = arith.divf %54, %55 : vector<1x128xf32>
      %57 = vector.broadcast %47 : vector<1x128xf32> to vector<8x128xf32>
      %58 = arith.subf %43, %57 : vector<8x128xf32>
      %cst_27 = arith.constant 9.99999974E-6 : f32
      %59 = vector.broadcast %cst_27 : f32 to vector<1x128xf32>
      %60 = arith.addf %56, %59 : vector<1x128xf32>
      %61 = math.rsqrt %60 : vector<1x128xf32>
      %62 = vector.broadcast %61 : vector<1x128xf32> to vector<8x128xf32>
      %63 = arith.mulf %58, %62 : vector<8x128xf32>
      %c0_28 = arith.constant 0 : index
      %c0_29 = arith.constant 0 : index
      %64 = vector.load %arg5[%c0_28, %c0_29] : memref<2x128xf32, #tpu.memory_space<vmem>>, vector<1x128xf32>
      %65 = vector.broadcast %64 : vector<1x128xf32> to vector<8x128xf32>
      %66 = arith.mulf %63, %65 : vector<8x128xf32>
      %c1_30 = arith.constant 1 : index
      %c0_31 = arith.constant 0 : index
      %67 = vector.load %arg5[%c1_30, %c0_31] : memref<2x128xf32, #tpu.memory_space<vmem>>, vector<1x128xf32>
      %68 = vector.broadcast %67 : vector<1x128xf32> to vector<8x128xf32>
      %69 = arith.addf %66, %68 : vector<8x128xf32>
      %70 = arith.mulf %69, %69 : vector<8x128xf32>
      %cst_32 = arith.constant dense<0.000000e+00> : vector<8xf32>
      %71 = vector.multi_reduction <add>, %70, %cst_32 [1] : vector<8x128xf32> to vector<8xf32>
      %72 = vector.shape_cast %71 : vector<8xf32> to vector<8x1xf32>
      %cst_33 = arith.constant 1.000000e-24 : f32
      %73 = vector.broadcast %cst_33 : f32 to vector<8x1xf32>
      %74 = arith.maximumf %72, %73 : vector<8x1xf32>
      %75 = math.rsqrt %74 : vector<8x1xf32>
      %76 = vector.broadcast %75 : vector<8x1xf32> to vector<8x128xf32>
      %77 = arith.mulf %69, %76 : vector<8x128xf32>
      %c0_34 = arith.constant 0 : index
      %c0_35 = arith.constant 0 : index
      %78 = vector.load %arg6[%c0_34, %c0_35] : memref<8x128xf32, #tpu.memory_space<vmem>>, vector<8x128xf32>
      tpu.vector_store %arg6[%c0_34, %c0_35], %77 {strides = array<i32>} : memref<8x128xf32, #tpu.memory_space<vmem>>, vector<8x128xf32>,
    } else {
    }
    return
  }
  func.func @transform_0(%arg0: i32) -> (i32, i32) {
    %c0_i32 = arith.constant 0 : i32
    %c0_i32_0 = arith.constant 0 : i32
    %c0_i32_1 = arith.constant 0 : i32
    return %c0_i32, %c0_i32_0 : i32, i32
  }
  func.func @transform_1(%arg0: i32) -> (i32, i32) {
    %c0_i32 = arith.constant 0 : i32
    %c0_i32_0 = arith.constant 0 : i32
    return %c0_i32, %arg0 : i32, i32
  }
  func.func @transform_2(%arg0: i32) -> (i32, i32) {
    %c0_i32 = arith.constant 0 : i32
    %c0_i32_0 = arith.constant 0 : i32
    return %c0_i32, %arg0 : i32, i32
  }
  func.func @transform_3(%arg0: i32) -> (i32, i32) {
    %c0_i32 = arith.constant 0 : i32
    %c0_i32_0 = arith.constant 0 : i32
    return %arg0, %c0_i32 : i32, i32
  }
  func.func @transform_4(%arg0: i32) -> (i32, i32) {
    %c0_i32 = arith.constant 0 : i32
    %c0_i32_0 = arith.constant 0 : i32
    %c0_i32_1 = arith.constant 0 : i32
    return %c0_i32, %c0_i32_0 : i32, i32
  }
  func.func @transform_5(%arg0: i32) -> (i32, i32) {
    %c0_i32 = arith.constant 0 : i32
    %c0_i32_0 = arith.constant 0 : i32
    %c0_i32_1 = arith.constant 0 : i32
    return %c0_i32, %c0_i32_0 : i32, i32
  }
}

module attributes {stable_mosaic.version = 11 : i64} {
  func.func @_branch_kernel(%arg0: i32, %arg1: memref<8x1280xbf16, #tpu.memory_space<vmem>>, %arg2: memref<1280x640xbf16, #tpu.memory_space<vmem>>, %arg3: memref<2x640xf32, #tpu.memory_space<vmem>>, %arg4: memref<640x128xbf16, #tpu.memory_space<vmem>>, %arg5: memref<2x128xf32, #tpu.memory_space<vmem>>, %arg6: memref<8x128xf32, #tpu.memory_space<vmem>>) attributes {dimension_semantics = [#tpu.dimension_semantics<arbitrary>], iteration_bounds = array<i64: 2>, scalar_prefetch = 0 : i64, scratch_operands = 0 : i64, tpu.core_type = #tpu.core_type<tc>, window_params = [{pipeline_mode = #tpu.pipeline_mode<synchronous>, transform_indices = @transform_0, window_bounds = array<i64: 8, 1280>}, {transform_indices = @transform_1, window_bounds = array<i64: 1280, 640>}, {transform_indices = @transform_2, window_bounds = array<i64: 2, 640>}, {transform_indices = @transform_3, window_bounds = array<i64: 640, 128>}, {pipeline_mode = #tpu.pipeline_mode<synchronous>, transform_indices = @transform_4, window_bounds = array<i64: 2, 128>}, {pipeline_mode = #tpu.pipeline_mode<synchronous>, transform_indices = @transform_5, window_bounds = array<i64: 8, 128>}]} {
    %c0_i32 = arith.constant 0 : i32
    %0 = arith.cmpi eq, %arg0, %c0_i32 : i32
    %1 = arith.extui %0 : i1 to i32
    %c0_i32_0 = arith.constant 0 : i32
    %2 = arith.cmpi ne, %1, %c0_i32_0 : i32
    scf.if %2 {
      %cst_21 = arith.constant 0.000000e+00 : f32
      %43 = vector.broadcast %cst_21 : f32 to vector<8x128xf32>
      %c0_22 = arith.constant 0 : index
      %c0_23 = arith.constant 0 : index
      %44 = vector.load %arg6[%c0_22, %c0_23] : memref<8x128xf32, #tpu.memory_space<vmem>>, vector<8x128xf32>
      tpu.vector_store %arg6[%c0_22, %c0_23], %43 {strides = array<i32>} : memref<8x128xf32, #tpu.memory_space<vmem>>, vector<8x128xf32>,
    } else {
    }
    %c0 = arith.constant 0 : index
    %c0_1 = arith.constant 0 : index
    %3 = vector.load %arg1[%c0, %c0_1] : memref<8x1280xbf16, #tpu.memory_space<vmem>>, vector<8x1280xbf16>
    %c0_2 = arith.constant 0 : index
    %c0_3 = arith.constant 0 : index
    %4 = vector.load %arg2[%c0_2, %c0_3] : memref<1280x640xbf16, #tpu.memory_space<vmem>>, vector<1280x640xbf16>
    %cst = arith.constant dense<0.000000e+00> : vector<8x640xf32>
    %5 = tpu.matmul %3, %4, %cst {dimension_numbers = #tpu.dot_dimension_numbers<[1], [0], [0], [1], [0, 0, 1, 1], [], []>} : vector<8x1280xbf16>, vector<1280x640xbf16>, vector<8x640xf32> -> vector<8x640xf32>
    %cst_4 = arith.constant dense<0.000000e+00> : vector<640xf32>
    %6 = vector.multi_reduction <add>, %5, %cst_4 [0] : vector<8x640xf32> to vector<640xf32>
    %7 = vector.shape_cast %6 : vector<640xf32> to vector<1x640xf32>
    %cst_5 = arith.constant 8.000000e+00 : f32
    %8 = vector.broadcast %cst_5 : f32 to vector<1x640xf32>
    %9 = arith.divf %7, %8 : vector<1x640xf32>
    %10 = vector.broadcast %9 : vector<1x640xf32> to vector<8x640xf32>
    %11 = arith.subf %5, %10 : vector<8x640xf32>
    %12 = vector.broadcast %9 : vector<1x640xf32> to vector<8x640xf32>
    %13 = arith.subf %5, %12 : vector<8x640xf32>
    %14 = arith.mulf %11, %13 : vector<8x640xf32>
    %cst_6 = arith.constant dense<0.000000e+00> : vector<640xf32>
    %15 = vector.multi_reduction <add>, %14, %cst_6 [0] : vector<8x640xf32> to vector<640xf32>
    %16 = vector.shape_cast %15 : vector<640xf32> to vector<1x640xf32>
    %cst_7 = arith.constant 8.000000e+00 : f32
    %17 = vector.broadcast %cst_7 : f32 to vector<1x640xf32>
    %18 = arith.divf %16, %17 : vector<1x640xf32>
    %19 = vector.broadcast %9 : vector<1x640xf32> to vector<8x640xf32>
    %20 = arith.subf %5, %19 : vector<8x640xf32>
    %cst_8 = arith.constant 9.99999974E-6 : f32
    %21 = vector.broadcast %cst_8 : f32 to vector<1x640xf32>
    %22 = arith.addf %18, %21 : vector<1x640xf32>
    %23 = math.rsqrt %22 : vector<1x640xf32>
    %24 = vector.broadcast %23 : vector<1x640xf32> to vector<8x640xf32>
    %25 = arith.mulf %20, %24 : vector<8x640xf32>
    %c0_9 = arith.constant 0 : index
    %c0_10 = arith.constant 0 : index
    %26 = vector.load %arg3[%c0_9, %c0_10] : memref<2x640xf32, #tpu.memory_space<vmem>>, vector<1x640xf32>
    %27 = vector.broadcast %26 : vector<1x640xf32> to vector<8x640xf32>
    %28 = arith.mulf %25, %27 : vector<8x640xf32>
    %c1 = arith.constant 1 : index
    %c0_11 = arith.constant 0 : index
    %29 = vector.load %arg3[%c1, %c0_11] : memref<2x640xf32, #tpu.memory_space<vmem>>, vector<1x640xf32>
    %30 = vector.broadcast %29 : vector<1x640xf32> to vector<8x640xf32>
    %31 = arith.addf %28, %30 : vector<8x640xf32>
    %cst_12 = arith.constant 0.000000e+00 : f32
    %32 = vector.broadcast %cst_12 : f32 to vector<8x640xf32>
    %33 = arith.maximumf %31, %32 : vector<8x640xf32>
    %c0_13 = arith.constant 0 : index
    %c0_14 = arith.constant 0 : index
    %34 = vector.load %arg6[%c0_13, %c0_14] : memref<8x128xf32, #tpu.memory_space<vmem>>, vector<8x128xf32>
    %35 = arith.truncf %33 : vector<8x640xf32> to vector<8x640xbf16>
    %c0_15 = arith.constant 0 : index
    %c0_16 = arith.constant 0 : index
    %36 = vector.load %arg4[%c0_15, %c0_16] : memref<640x128xbf16, #tpu.memory_space<vmem>>, vector<640x128xbf16>
    %cst_17 = arith.constant dense<0.000000e+00> : vector<8x128xf32>
    %37 = tpu.matmul %35, %36, %cst_17 {dimension_numbers = #tpu.dot_dimension_numbers<[1], [0], [0], [1], [0, 0, 1, 1], [], []>} : vector<8x640xbf16>, vector<640x128xbf16>, vector<8x128xf32> -> vector<8x128xf32>
    %38 = arith.addf %34, %37 : vector<8x128xf32>
    %c0_18 = arith.constant 0 : index
    %c0_19 = arith.constant 0 : index
    %39 = vector.load %arg6[%c0_18, %c0_19] : memref<8x128xf32, #tpu.memory_space<vmem>>, vector<8x128xf32>
    tpu.vector_store %arg6[%c0_18, %c0_19], %38 {strides = array<i32>} : memref<8x128xf32, #tpu.memory_space<vmem>>, vector<8x128xf32>,
    %c1_i32 = arith.constant 1 : i32
    %40 = arith.cmpi eq, %arg0, %c1_i32 : i32
    %41 = arith.extui %40 : i1 to i32
    %c0_i32_20 = arith.constant 0 : i32
    %42 = arith.cmpi ne, %41, %c0_i32_20 : i32
    scf.if %42 {
      %c0_21 = arith.constant 0 : index
      %c0_22 = arith.constant 0 : index
      %43 = vector.load %arg6[%c0_21, %c0_22] : memref<8x128xf32, #tpu.memory_space<vmem>>, vector<8x128xf32>
      %cst_23 = arith.constant dense<0.000000e+00> : vector<128xf32>
      %44 = vector.multi_reduction <add>, %43, %cst_23 [0] : vector<8x128xf32> to vector<128xf32>
      %45 = vector.shape_cast %44 : vector<128xf32> to vector<1x128xf32>
      %cst_24 = arith.constant 8.000000e+00 : f32
      %46 = vector.broadcast %cst_24 : f32 to vector<1x128xf32>
      %47 = arith.divf %45, %46 : vector<1x128xf32>
      %48 = vector.broadcast %47 : vector<1x128xf32> to vector<8x128xf32>
      %49 = arith.subf %43, %48 : vector<8x128xf32>
      %50 = vector.broadcast %47 : vector<1x128xf32> to vector<8x128xf32>
      %51 = arith.subf %43, %50 : vector<8x128xf32>
      %52 = arith.mulf %49, %51 : vector<8x128xf32>
      %cst_25 = arith.constant dense<0.000000e+00> : vector<128xf32>
      %53 = vector.multi_reduction <add>, %52, %cst_25 [0] : vector<8x128xf32> to vector<128xf32>
      %54 = vector.shape_cast %53 : vector<128xf32> to vector<1x128xf32>
      %cst_26 = arith.constant 8.000000e+00 : f32
      %55 = vector.broadcast %cst_26 : f32 to vector<1x128xf32>
      %56 = arith.divf %54, %55 : vector<1x128xf32>
      %57 = vector.broadcast %47 : vector<1x128xf32> to vector<8x128xf32>
      %58 = arith.subf %43, %57 : vector<8x128xf32>
      %cst_27 = arith.constant 9.99999974E-6 : f32
      %59 = vector.broadcast %cst_27 : f32 to vector<1x128xf32>
      %60 = arith.addf %56, %59 : vector<1x128xf32>
      %61 = math.rsqrt %60 : vector<1x128xf32>
      %62 = vector.broadcast %61 : vector<1x128xf32> to vector<8x128xf32>
      %63 = arith.mulf %58, %62 : vector<8x128xf32>
      %c0_28 = arith.constant 0 : index
      %c0_29 = arith.constant 0 : index
      %64 = vector.load %arg5[%c0_28, %c0_29] : memref<2x128xf32, #tpu.memory_space<vmem>>, vector<1x128xf32>
      %65 = vector.broadcast %64 : vector<1x128xf32> to vector<8x128xf32>
      %66 = arith.mulf %63, %65 : vector<8x128xf32>
      %c1_30 = arith.constant 1 : index
      %c0_31 = arith.constant 0 : index
      %67 = vector.load %arg5[%c1_30, %c0_31] : memref<2x128xf32, #tpu.memory_space<vmem>>, vector<1x128xf32>
      %68 = vector.broadcast %67 : vector<1x128xf32> to vector<8x128xf32>
      %69 = arith.addf %66, %68 : vector<8x128xf32>
      %70 = arith.mulf %69, %69 : vector<8x128xf32>
      %cst_32 = arith.constant dense<0.000000e+00> : vector<8xf32>
      %71 = vector.multi_reduction <add>, %70, %cst_32 [1] : vector<8x128xf32> to vector<8xf32>
      %72 = vector.shape_cast %71 : vector<8xf32> to vector<8x1xf32>
      %cst_33 = arith.constant 1.000000e-24 : f32
      %73 = vector.broadcast %cst_33 : f32 to vector<8x1xf32>
      %74 = arith.maximumf %72, %73 : vector<8x1xf32>
      %75 = math.rsqrt %74 : vector<8x1xf32>
      %76 = vector.broadcast %75 : vector<8x1xf32> to vector<8x128xf32>
      %77 = arith.mulf %69, %76 : vector<8x128xf32>
      %c0_34 = arith.constant 0 : index
      %c0_35 = arith.constant 0 : index
      %78 = vector.load %arg6[%c0_34, %c0_35] : memref<8x128xf32, #tpu.memory_space<vmem>>, vector<8x128xf32>
      tpu.vector_store %arg6[%c0_34, %c0_35], %77 {strides = array<i32>} : memref<8x128xf32, #tpu.memory_space<vmem>>, vector<8x128xf32>,
    } else {
    }
    return
  }
  func.func @transform_0(%arg0: i32) -> (i32, i32) {
    %c0_i32 = arith.constant 0 : i32
    %c0_i32_0 = arith.constant 0 : i32
    %c0_i32_1 = arith.constant 0 : i32
    return %c0_i32, %c0_i32_0 : i32, i32
  }
  func.func @transform_1(%arg0: i32) -> (i32, i32) {
    %c0_i32 = arith.constant 0 : i32
    %c0_i32_0 = arith.constant 0 : i32
    return %c0_i32, %arg0 : i32, i32
  }
  func.func @transform_2(%arg0: i32) -> (i32, i32) {
    %c0_i32 = arith.constant 0 : i32
    %c0_i32_0 = arith.constant 0 : i32
    return %c0_i32, %arg0 : i32, i32
  }
  func.func @transform_3(%arg0: i32) -> (i32, i32) {
    %c0_i32 = arith.constant 0 : i32
    %c0_i32_0 = arith.constant 0 : i32
    return %arg0, %c0_i32 : i32, i32
  }
  func.func @transform_4(%arg0: i32) -> (i32, i32) {
    %c0_i32 = arith.constant 0 : i32
    %c0_i32_0 = arith.constant 0 : i32
    %c0_i32_1 = arith.constant 0 : i32
    return %c0_i32, %c0_i32_0 : i32, i32
  }
  func.func @transform_5(%arg0: i32) -> (i32, i32) {
    %c0_i32 = arith.constant 0 : i32
    %c0_i32_0 = arith.constant 0 : i32
    %c0_i32_1 = arith.constant 0 : i32
    return %c0_i32, %c0_i32_0 : i32, i32
  }
}

</mosaic_0001>

<bundles_post_ra>
// kernel: contrastive_learning_layer.3
= control target key start
LH: loop header
LB: loop body
LE: loop exit
PB: predicated region body
PF: predicated region fallthrough
CT: control target
= control target key end

     0   :  { %10 = vsyncpa [#allocation4], 0  ;;  %s3267_s18 = smov 0   ;;  %s3269_s19 = smov 0   ;;  %s3950_s0 = inlined_call_operand.vmem [shape: bf16[8,768], index: 0, kind: input, shape index: {}]   ;;  %s3951_s1 = inlined_call_operand.vmem [shape: bf16[768,768], index: 1, kind: input, shape index: {}]   ;;  %s3952_s2 = inlined_call_operand.vmem [shape: f32[2,768], index: 2, kind: input, shape index: {}]   ;;  %s3953_s3 = inlined_call_operand.vmem [shape: bf16[768,128], index: 3, kind: input, shape index: {}]   ;;  %s3954_s4 = inlined_call_operand.vmem [shape: f32[2,128], index: 4, kind: input, shape index: {}]   ;;  %s3955_s5 = inlined_call_operand.hbm [shape: f32[8,128], index: 5, kind: output, shape index: {}]  }
   0x1   :  { %s3271_s20 = smov 0  }
   0x2 LB: > { %s3283_s21 = sadd.s32 4294967295, %s3231_s20   ;;  %s3286_s22 = sadd.s32 1, %s3231_s20   ;;  %s3231_s20 = sphi %s3271_s20, %s3958_s20   ;;  %s3227_s19 = sphi %s3269_s19, %s3957_s19   ;;  %s3223_s18 = sphi %s3267_s18, %s3956_s18  }
   0x3   : > { %s41_s23 = ssub.s32 %s3231_s20, %s3286_s22  ;;  %s44_s24 = sadd.s32 1, %s3227_s19 }
   0x4   : > { %p42_p0 = scmp.eq.s32.totalorder %s41_s23, 0  ;;  %p51_p1 = scmp.ne.s32.totalorder %s3227_s19, %s3223_s18 }
   0x5   : > { %p52_p2 = scmp.eq.s32.totalorder %s3231_s20, 0  ;;  %p2405_p4 = scmp.ge.s32.totalorder %s3231_s20, 2 }
   0x6   : > { %s3295_s25 = scalar_select %p42_p0, %s3227_s19, %s44_s24  }
   0x7   : > { %p53_p3 = por %p52_p2, %p51_p1  ;;  %177 = sbr.rel (%p2405_p4) target bundleno = 131 (0x83), region = 24 }
   0xe   : > { %180 = sbr.rel (!%p53_p3) target bundleno = 131 (0x83), region = 28  ;;  %s182_s26 = sand.u32 (%p53_p3), 1, %s3227_s19  }
   0xf   : > { %s2785_s27 = smul.u32 (%p53_p3), 12, %s3231_s20 }
  0x10   : > { %s2911_s28 = smul.u32 (%p53_p3), 1152, %s182_s26 }
  0x11   : > { %s3303_s6 = scalar_lea.vmem (%p53_p3), %s3951_s1, %s2785_s27 }
  0x12   : > { %v202_v0 = vld [vmem:[%s3303_s6] sm:$0xff] (%p53_p3)  ;;  %v204_v1 = vld [vmem:[%s3303_s6 + $0x18] sm:$0xff] (%p53_p3)  ;;  %v206_v2 = vld [vmem:[%s3303_s6 + $0x30] sm:$0xff] (%p53_p3)  ;;  %s3308_s7 = scalar_lea.vmem (%p53_p3), [#allocation2], %s2911_s28 }
  0x13   : > { %203 = vst [vmem:[%s3308_s7] sm:$0xff] (%p53_p3), %v202_v0  ;;  %205 = vst [vmem:[%s3308_s7 + $0xc] sm:$0xff] (%p53_p3), %v204_v1  ;;  %v208_v3 = vld [vmem:[%s3303_s6 + $0x48] sm:$0xff] (%p53_p3)  ;;  %v210_v4 = vld [vmem:[%s3303_s6 + $0x60] sm:$0xff] (%p53_p3) }
  0x14   : > { %207 = vst [vmem:[%s3308_s7 + $0x18] sm:$0xff] (%p53_p3), %v206_v2  ;;  %v212_v5 = vld [vmem:[%s3303_s6 + $0x78] sm:$0xff] (%p53_p3)  ;;  %209 = vst [vmem:[%s3308_s7 + $0x24] sm:$0xff] (%p53_p3), %v208_v3  ;;  %v214_v6 = vld [vmem:[%s3303_s6 + $0x90] sm:$0xff] (%p53_p3) }
  0x15   : > { %211 = vst [vmem:[%s3308_s7 + $0x30] sm:$0xff] %v210_v4  ;;  %213 = vst [vmem:[%s3308_s7 + $0x3c] sm:$0xff] %v212_v5  ;;  %v216_v7 = vld [vmem:[%s3303_s6 + $0xa8] sm:$0xff]  ;;  %v218_v8 = vld [vmem:[%s3303_s6 + $0xc0] sm:$0xff] }
  0x16   : > { %215 = vst [vmem:[%s3308_s7 + $0x48] sm:$0xff] %v214_v6  ;;  %217 = vst [vmem:[%s3308_s7 + $0x54] sm:$0xff] %v216_v7  ;;  %v220_v9 = vld [vmem:[%s3303_s6 + $0xd8] sm:$0xff]  ;;  %v222_v10 = vld [vmem:[%s3303_s6 + $0xf0] sm:$0xff] }
  0x17   : > { %219 = vst [vmem:[%s3308_s7 + $0x60] sm:$0xff] %v218_v8  ;;  %v224_v11 = vld [vmem:[%s3303_s6 + $0x108] sm:$0xff]  ;;  %221 = vst [vmem:[%s3308_s7 + $0x6c] sm:$0xff] %v220_v9  ;;  %v226_v12 = vld [vmem:[%s3303_s6 + $0x120] sm:$0xff] }
  0x18   : > { %223 = vst [vmem:[%s3308_s7 + $0x78] sm:$0xff] %v222_v10  ;;  %225 = vst [vmem:[%s3308_s7 + $0x84] sm:$0xff] %v224_v11  ;;  %v228_v13 = vld [vmem:[%s3303_s6 + $0x138] sm:$0xff]  ;;  %v230_v14 = vld [vmem:[%s3303_s6 + $0x150] sm:$0xff] }
  0x19   : > { %227 = vst [vmem:[%s3308_s7 + $0x90] sm:$0xff] %v226_v12  ;;  %229 = vst [vmem:[%s3308_s7 + $0x9c] sm:$0xff] %v228_v13  ;;  %v232_v15 = vld [vmem:[%s3303_s6 + $0x168] sm:$0xff]  ;;  %v234_v16 = vld [vmem:[%s3303_s6 + $0x180] sm:$0xff] }
  0x1a   : > { %231 = vst [vmem:[%s3308_s7 + $0xa8] sm:$0xff] %v230_v14  ;;  %v236_v17 = vld [vmem:[%s3303_s6 + $0x198] sm:$0xff]  ;;  %233 = vst [vmem:[%s3308_s7 + $0xb4] sm:$0xff] %v232_v15  ;;  %v238_v18 = vld [vmem:[%s3303_s6 + $0x1b0] sm:$0xff] }
  0x1b   : > { %235 = vst [vmem:[%s3308_s7 + $0xc0] sm:$0xff] %v234_v16  ;;  %237 = vst [vmem:[%s3308_s7 + $0xcc] sm:$0xff] %v236_v17  ;;  %v240_v19 = vld [vmem:[%s3303_s6 + $0x1c8] sm:$0xff]  ;;  %v242_v20 = vld [vmem:[%s3303_s6 + $0x1e0] sm:$0xff] }
  0x1c   : > { %239 = vst [vmem:[%s3308_s7 + $0xd8] sm:$0xff] %v238_v18  ;;  %241 = vst [vmem:[%s3308_s7 + $0xe4] sm:$0xff] %v240_v19  ;;  %v244_v21 = vld [vmem:[%s3303_s6 + $0x1f8] sm:$0xff]  ;;  %v246_v22 = vld [vmem:[%s3303_s6 + $0x210] sm:$0xff] }
  0x1d   : > { %243 = vst [vmem:[%s3308_s7 + $0xf0] sm:$0xff] %v242_v20  ;;  %v248_v23 = vld [vmem:[%s3303_s6 + $0x228] sm:$0xff]  ;;  %245 = vst [vmem:[%s3308_s7 + $0xfc] sm:$0xff] %v244_v21  ;;  %v250_v24 = vld [vmem:[%s3303_s6 + $0x240] sm:$0xff] }
  0x1e   : > { %247 = vst [vmem:[%s3308_s7 + $0x108] sm:$0xff] %v246_v22  ;;  %249 = vst [vmem:[%s3308_s7 + $0x114] sm:$0xff] %v248_v23  ;;  %v252_v25 = vld [vmem:[%s3303_s6 + $0x258] sm:$0xff]  ;;  %v254_v26 = vld [vmem:[%s3303_s6 + $0x270] sm:$0xff] }
  0x1f   : > { %251 = vst [vmem:[%s3308_s7 + $0x120] sm:$0xff] %v250_v24  ;;  %253 = vst [vmem:[%s3308_s7 + $0x12c] sm:$0xff] %v252_v25  ;;  %v256_v27 = vld [vmem:[%s3303_s6 + $0x288] sm:$0xff]  ;;  %v258_v28 = vld [vmem:[%s3303_s6 + $0x2a0] sm:$0xff] }
  0x20   : > { %255 = vst [vmem:[%s3308_s7 + $0x138] sm:$0xff] %v254_v26  ;;  %v260_v29 = vld [vmem:[%s3303_s6 + $0x2b8] sm:$0xff]  ;;  %257 = vst [vmem:[%s3308_s7 + $0x144] sm:$0xff] %v256_v27  ;;  %v262_v30 = vld [vmem:[%s3303_s6 + $0x2d0] sm:$0xff] }
  0x21   : > { %259 = vst [vmem:[%s3308_s7 + $0x150] sm:$0xff] %v258_v28  ;;  %261 = vst [vmem:[%s3308_s7 + $0x15c] sm:$0xff] %v260_v29  ;;  %v264_v31 = vld [vmem:[%s3303_s6 + $0x2e8] sm:$0xff]  ;;  %v266_v32 = vld [vmem:[%s3303_s6 + $0x300] sm:$0xff] }
  0x22   : > { %263 = vst [vmem:[%s3308_s7 + $0x168] sm:$0xff] %v262_v30  ;;  %265 = vst [vmem:[%s3308_s7 + $0x174] sm:$0xff] %v264_v31  ;;  %v268_v33 = vld [vmem:[%s3303_s6 + $0x318] sm:$0xff]  ;;  %v270_v34 = vld [vmem:[%s3303_s6 + $0x330] sm:$0xff] }
  0x23   : > { %267 = vst [vmem:[%s3308_s7 + $0x180] sm:$0xff] %v266_v32  ;;  %v272_v35 = vld [vmem:[%s3303_s6 + $0x348] sm:$0xff]  ;;  %269 = vst [vmem:[%s3308_s7 + $0x18c] sm:$0xff] %v268_v33  ;;  %v274_v36 = vld [vmem:[%s3303_s6 + $0x360] sm:$0xff] }
  0x24   : > { %271 = vst [vmem:[%s3308_s7 + $0x198] sm:$0xff] %v270_v34  ;;  %273 = vst [vmem:[%s3308_s7 + $0x1a4] sm:$0xff] %v272_v35  ;;  %v276_v37 = vld [vmem:[%s3303_s6 + $0x378] sm:$0xff]  ;;  %v278_v38 = vld [vmem:[%s3303_s6 + $0x390] sm:$0xff] }
  0x25   : > { %275 = vst [vmem:[%s3308_s7 + $0x1b0] sm:$0xff] %v274_v36  ;;  %277 = vst [vmem:[%s3308_s7 + $0x1bc] sm:$0xff] %v276_v37  ;;  %v280_v39 = vld [vmem:[%s3303_s6 + $0x3a8] sm:$0xff]  ;;  %v282_v40 = vld [vmem:[%s3303_s6 + $0x3c0] sm:$0xff] }
  0x26   : > { %279 = vst [vmem:[%s3308_s7 + $0x1c8] sm:$0xff] %v278_v38  ;;  %v284_v41 = vld [vmem:[%s3303_s6 + $0x3d8] sm:$0xff]  ;;  %281 = vst [vmem:[%s3308_s7 + $0x1d4] sm:$0xff] %v280_v39  ;;  %v286_v42 = vld [vmem:[%s3303_s6 + $0x3f0] sm:$0xff] }
  0x27   : > { %283 = vst [vmem:[%s3308_s7 + $0x1e0] sm:$0xff] %v282_v40  ;;  %285 = vst [vmem:[%s3308_s7 + $0x1ec] sm:$0xff] %v284_v41  ;;  %v288_v43 = vld [vmem:[%s3303_s6 + $0x408] sm:$0xff]  ;;  %v290_v44 = vld [vmem:[%s3303_s6 + $0x420] sm:$0xff] }
  0x28   : > { %287 = vst [vmem:[%s3308_s7 + $0x1f8] sm:$0xff] %v286_v42  ;;  %289 = vst [vmem:[%s3308_s7 + $0x204] sm:$0xff] %v288_v43  ;;  %v292_v45 = vld [vmem:[%s3303_s6 + $0x438] sm:$0xff]  ;;  %v294_v46 = vld [vmem:[%s3303_s6 + $0x450] sm:$0xff] }
  0x29   : > { %291 = vst [vmem:[%s3308_s7 + $0x210] sm:$0xff] %v290_v44  ;;  %v296_v47 = vld [vmem:[%s3303_s6 + $0x468] sm:$0xff]  ;;  %293 = vst [vmem:[%s3308_s7 + $0x21c] sm:$0xff] %v292_v45  ;;  %v298_v48 = vld [vmem:[%s3303_s6 + $0x480] sm:$0xff] }
  0x2a   : > { %295 = vst [vmem:[%s3308_s7 + $0x228] sm:$0xff] %v294_v46  ;;  %297 = vst [vmem:[%s3308_s7 + $0x234] sm:$0xff] %v296_v47  ;;  %v300_v49 = vld [vmem:[%s3303_s6 + $0x498] sm:$0xff]  ;;  %v302_v50 = vld [vmem:[%s3303_s6 + $0x4b0] sm:$0xff] }
  0x2b   : > { %299 = vst [vmem:[%s3308_s7 + $0x240] sm:$0xff] %v298_v48  ;;  %301 = vst [vmem:[%s3308_s7 + $0x24c] sm:$0xff] %v300_v49  ;;  %v304_v51 = vld [vmem:[%s3303_s6 + $0x4c8] sm:$0xff]  ;;  %v306_v52 = vld [vmem:[%s3303_s6 + $0x4e0] sm:$0xff] }
  0x2c   : > { %303 = vst [vmem:[%s3308_s7 + $0x258] sm:$0xff] %v302_v50  ;;  %v308_v53 = vld [vmem:[%s3303_s6 + $0x4f8] sm:$0xff]  ;;  %305 = vst [vmem:[%s3308_s7 + $0x264] sm:$0xff] %v304_v51  ;;  %v310_v54 = vld [vmem:[%s3303_s6 + $0x510] sm:$0xff] }
  0x2d   : > { %307 = vst [vmem:[%s3308_s7 + $0x270] sm:$0xff] %v306_v52  ;;  %309 = vst [vmem:[%s3308_s7 + $0x27c] sm:$0xff] %v308_v53  ;;  %v312_v55 = vld [vmem:[%s3303_s6 + $0x528] sm:$0xff]  ;;  %v314_v56 = vld [vmem:[%s3303_s6 + $0x540] sm:$0xff] }
  0x2e   : > { %311 = vst [vmem:[%s3308_s7 + $0x288] sm:$0xff] %v310_v54  ;;  %313 = vst [vmem:[%s3308_s7 + $0x294] sm:$0xff] %v312_v55  ;;  %v316_v57 = vld [vmem:[%s3303_s6 + $0x558] sm:$0xff]  ;;  %v318_v58 = vld [vmem:[%s3303_s6 + $0x570] sm:$0xff] }
  0x2f   : > { %315 = vst [vmem:[%s3308_s7 + $0x2a0] sm:$0xff] %v314_v56  ;;  %v320_v59 = vld [vmem:[%s3303_s6 + $0x588] sm:$0xff]  ;;  %317 = vst [vmem:[%s3308_s7 + $0x2ac] sm:$0xff] %v316_v57  ;;  %v322_v60 = vld [vmem:[%s3303_s6 + $0x5a0] sm:$0xff] }
  0x30   : > { %319 = vst [vmem:[%s3308_s7 + $0x2b8] sm:$0xff] %v318_v58  ;;  %321 = vst [vmem:[%s3308_s7 + $0x2c4] sm:$0xff] %v320_v59  ;;  %v324_v61 = vld [vmem:[%s3303_s6 + $0x5b8] sm:$0xff]  ;;  %v326_v62 = vld [vmem:[%s3303_s6 + $0x5d0] sm:$0xff] }
  0x31   : > { %323 = vst [vmem:[%s3308_s7 + $0x2d0] sm:$0xff] %v322_v60  ;;  %325 = vst [vmem:[%s3308_s7 + $0x2dc] sm:$0xff] %v324_v61  ;;  %v328_v63 = vld [vmem:[%s3303_s6 + $0x5e8] sm:$0xff]  ;;  %v330_v0 = vld [vmem:[%s3303_s6 + $0x600] sm:$0xff] }
  0x32   : > { %327 = vst [vmem:[%s3308_s7 + $0x2e8] sm:$0xff] %v326_v62  ;;  %v332_v1 = vld [vmem:[%s3303_s6 + $0x618] sm:$0xff]  ;;  %329 = vst [vmem:[%s3308_s7 + $0x2f4] sm:$0xff] %v328_v63  ;;  %v334_v2 = vld [vmem:[%s3303_s6 + $0x630] sm:$0xff] }
  0x33   : > { %331 = vst [vmem:[%s3308_s7 + $0x300] sm:$0xff] %v330_v0  ;;  %333 = vst [vmem:[%s3308_s7 + $0x30c] sm:$0xff] %v332_v1  ;;  %v336_v3 = vld [vmem:[%s3303_s6 + $0x648] sm:$0xff]  ;;  %v338_v4 = vld [vmem:[%s3303_s6 + $0x660] sm:$0xff] }
  0x34   : > { %335 = vst [vmem:[%s3308_s7 + $0x318] sm:$0xff] %v334_v2  ;;  %337 = vst [vmem:[%s3308_s7 + $0x324] sm:$0xff] %v336_v3  ;;  %v340_v5 = vld [vmem:[%s3303_s6 + $0x678] sm:$0xff]  ;;  %v342_v6 = vld [vmem:[%s3303_s6 + $0x690] sm:$0xff] }
  0x35   : > { %339 = vst [vmem:[%s3308_s7 + $0x330] sm:$0xff] %v338_v4  ;;  %v344_v7 = vld [vmem:[%s3303_s6 + $0x6a8] sm:$0xff]  ;;  %341 = vst [vmem:[%s3308_s7 + $0x33c] sm:$0xff] %v340_v5  ;;  %v346_v8 = vld [vmem:[%s3303_s6 + $0x6c0] sm:$0xff] }
  0x36   : > { %343 = vst [vmem:[%s3308_s7 + $0x348] sm:$0xff] %v342_v6  ;;  %345 = vst [vmem:[%s3308_s7 + $0x354] sm:$0xff] %v344_v7  ;;  %v348_v9 = vld [vmem:[%s3303_s6 + $0x6d8] sm:$0xff]  ;;  %v350_v10 = vld [vmem:[%s3303_s6 + $0x6f0] sm:$0xff] }
  0x37   : > { %347 = vst [vmem:[%s3308_s7 + $0x360] sm:$0xff] %v346_v8  ;;  %349 = vst [vmem:[%s3308_s7 + $0x36c] sm:$0xff] %v348_v9  ;;  %v352_v11 = vld [vmem:[%s3303_s6 + $0x708] sm:$0xff]  ;;  %v354_v12 = vld [vmem:[%s3303_s6 + $0x720] sm:$0xff] }
  0x38   : > { %351 = vst [vmem:[%s3308_s7 + $0x378] sm:$0xff] %v350_v10  ;;  %v356_v13 = vld [vmem:[%s3303_s6 + $0x738] sm:$0xff]  ;;  %353 = vst [vmem:[%s3308_s7 + $0x384] sm:$0xff] %v352_v11  ;;  %v358_v14 = vld [vmem:[%s3303_s6 + $0x750] sm:$0xff] }
  0x39   : > { %355 = vst [vmem:[%s3308_s7 + $0x390] sm:$0xff] %v354_v12  ;;  %357 = vst [vmem:[%s3308_s7 + $0x39c] sm:$0xff] %v356_v13  ;;  %v360_v15 = vld [vmem:[%s3303_s6 + $0x768] sm:$0xff]  ;;  %v362_v16 = vld [vmem:[%s3303_s6 + $0x780] sm:$0xff] }
  0x3a   : > { %359 = vst [vmem:[%s3308_s7 + $0x3a8] sm:$0xff] %v358_v14  ;;  %361 = vst [vmem:[%s3308_s7 + $0x3b4] sm:$0xff] %v360_v15  ;;  %v364_v17 = vld [vmem:[%s3303_s6 + $0x798] sm:$0xff]  ;;  %v366_v18 = vld [vmem:[%s3303_s6 + $0x7b0] sm:$0xff] }
  0x3b   : > { %363 = vst [vmem:[%s3308_s7 + $0x3c0] sm:$0xff] %v362_v16  ;;  %v368_v19 = vld [vmem:[%s3303_s6 + $0x7c8] sm:$0xff]  ;;  %365 = vst [vmem:[%s3308_s7 + $0x3cc] sm:$0xff] %v364_v17  ;;  %v370_v20 = vld [vmem:[%s3303_s6 + $0x7e0] sm:$0xff] }
  0x3c   : > { %367 = vst [vmem:[%s3308_s7 + $0x3d8] sm:$0xff] %v366_v18  ;;  %369 = vst [vmem:[%s3308_s7 + $0x3e4] sm:$0xff] %v368_v19  ;;  %v372_v21 = vld [vmem:[%s3303_s6 + $0x7f8] sm:$0xff]  ;;  %v374_v22 = vld [vmem:[%s3303_s6 + $0x810] sm:$0xff] }
  0x3d   : > { %371 = vst [vmem:[%s3308_s7 + $0x3f0] sm:$0xff] %v370_v20  ;;  %373 = vst [vmem:[%s3308_s7 + $0x3fc] sm:$0xff] %v372_v21  ;;  %v376_v23 = vld [vmem:[%s3303_s6 + $0x828] sm:$0xff]  ;;  %v378_v24 = vld [vmem:[%s3303_s6 + $0x840] sm:$0xff] }
  0x3e   : > { %375 = vst [vmem:[%s3308_s7 + $0x408] sm:$0xff] %v374_v22  ;;  %v380_v25 = vld [vmem:[%s3303_s6 + $0x858] sm:$0xff]  ;;  %377 = vst [vmem:[%s3308_s7 + $0x414] sm:$0xff] %v376_v23  ;;  %v382_v26 = vld [vmem:[%s3303_s6 + $0x870] sm:$0xff] }
  0x3f   : > { %379 = vst [vmem:[%s3308_s7 + $0x420] sm:$0xff] %v378_v24  ;;  %381 = vst [vmem:[%s3308_s7 + $0x42c] sm:$0xff] %v380_v25  ;;  %v384_v27 = vld [vmem:[%s3303_s6 + $0x888] sm:$0xff]  ;;  %v386_v28 = vld [vmem:[%s3303_s6 + $0x8a0] sm:$0xff] }
  0x40   : > { %383 = vst [vmem:[%s3308_s7 + $0x438] sm:$0xff] %v382_v26  ;;  %385 = vst [vmem:[%s3308_s7 + $0x444] sm:$0xff] %v384_v27  ;;  %v388_v29 = vld [vmem:[%s3303_s6 + $0x8b8] sm:$0xff]  ;;  %v390_v30 = vld [vmem:[%s3303_s6 + $0x8d0] sm:$0xff] }
  0x41   : > { %387 = vst [vmem:[%s3308_s7 + $0x450] sm:$0xff] %v386_v28  ;;  %v392_v31 = vld [vmem:[%s3303_s6 + $0x8e8] sm:$0xff]  ;;  %389 = vst [vmem:[%s3308_s7 + $0x45c] sm:$0xff] %v388_v29  ;;  %v2409_v33 = vld [vmem:[%s3303_s6 + $0x20] sm:$0xf] }
  0x42   : > { %391 = vst [vmem:[%s3308_s7 + $0x468] sm:$0xff] %v390_v30  ;;  %393 = vst [vmem:[%s3308_s7 + $0x474] sm:$0xff] %v392_v31  ;;  %v2407_v32 = vld [vmem:[%s3303_s6 + $0x8] sm:$0xf]  ;;  %v2411_v34 = vld [vmem:[%s3303_s6 + $0x38] sm:$0xf] }
  0x43   : > { %2408 = vst [vmem:[%s3308_s7 + $0x8] sm:$0xf] %v2407_v32  ;;  %2410 = vst [vmem:[%s3308_s7 + $0x14] sm:$0xf] %v2409_v33  ;;  %v2413_v35 = vld [vmem:[%s3303_s6 + $0x50] sm:$0xf] }
  0x44   : > { %2412 = vst [vmem:[%s3308_s7 + $0x20] sm:$0xf] %v2411_v34  ;;  %v2415_v36 = vld [vmem:[%s3303_s6 + $0x68] sm:$0xf]  ;;  %v2417_v37 = vld [vmem:[%s3303_s6 + $0x80] sm:$0xf] }
  0x45   : > { %2414 = vst [vmem:[%s3308_s7 + $0x2c] sm:$0xf] %v2413_v35  ;;  %2416 = vst [vmem:[%s3308_s7 + $0x38] sm:$0xf] %v2415_v36  ;;  %v2419_v38 = vld [vmem:[%s3303_s6 + $0x98] sm:$0xf] }
  0x46   : > { %2418 = vst [vmem:[%s3308_s7 + $0x44] sm:$0xf] %v2417_v37  ;;  %v2421_v39 = vld [vmem:[%s3303_s6 + $0xb0] sm:$0xf]  ;;  %v2423_v40 = vld [vmem:[%s3303_s6 + $0xc8] sm:$0xf] }
  0x47   : > { %2420 = vst [vmem:[%s3308_s7 + $0x50] sm:$0xf] %v2419_v38  ;;  %2422 = vst [vmem:[%s3308_s7 + $0x5c] sm:$0xf] %v2421_v39  ;;  %v2425_v41 = vld [vmem:[%s3303_s6 + $0xe0] sm:$0xf] }
  0x48   : > { %2424 = vst [vmem:[%s3308_s7 + $0x68] sm:$0xf] %v2423_v40  ;;  %v2427_v42 = vld [vmem:[%s3303_s6 + $0xf8] sm:$0xf]  ;;  %v2429_v43 = vld [vmem:[%s3303_s6 + $0x110] sm:$0xf] }
  0x49   : > { %2426 = vst [vmem:[%s3308_s7 + $0x74] sm:$0xf] %v2425_v41  ;;  %2428 = vst [vmem:[%s3308_s7 + $0x80] sm:$0xf] %v2427_v42  ;;  %v2431_v44 = vld [vmem:[%s3303_s6 + $0x128] sm:$0xf] }
  0x4a   : > { %2430 = vst [vmem:[%s3308_s7 + $0x8c] sm:$0xf] %v2429_v43  ;;  %v2433_v45 = vld [vmem:[%s3303_s6 + $0x140] sm:$0xf]  ;;  %v2435_v46 = vld [vmem:[%s3303_s6 + $0x158] sm:$0xf] }
  0x4b   : > { %2432 = vst [vmem:[%s3308_s7 + $0x98] sm:$0xf] %v2431_v44  ;;  %2434 = vst [vmem:[%s3308_s7 + $0xa4] sm:$0xf] %v2433_v45  ;;  %v2437_v47 = vld [vmem:[%s3303_s6 + $0x170] sm:$0xf] }
  0x4c   : > { %2436 = vst [vmem:[%s3308_s7 + $0xb0] sm:$0xf] %v2435_v46  ;;  %v2439_v48 = vld [vmem:[%s3303_s6 + $0x188] sm:$0xf]  ;;  %v2441_v49 = vld [vmem:[%s3303_s6 + $0x1a0] sm:$0xf] }
  0x4d   : > { %2438 = vst [vmem:[%s3308_s7 + $0xbc] sm:$0xf] %v2437_v47  ;;  %2440 = vst [vmem:[%s3308_s7 + $0xc8] sm:$0xf] %v2439_v48  ;;  %v2443_v50 = vld [vmem:[%s3303_s6 + $0x1b8] sm:$0xf] }
  0x4e   : > { %2442 = vst [vmem:[%s3308_s7 + $0xd4] sm:$0xf] %v2441_v49  ;;  %v2445_v51 = vld [vmem:[%s3303_s6 + $0x1d0] sm:$0xf]  ;;  %v2447_v52 = vld [vmem:[%s3303_s6 + $0x1e8] sm:$0xf] }
  0x4f   : > { %2444 = vst [vmem:[%s3308_s7 + $0xe0] sm:$0xf] %v2443_v50  ;;  %2446 = vst [vmem:[%s3308_s7 + $0xec] sm:$0xf] %v2445_v51  ;;  %v2449_v53 = vld [vmem:[%s3303_s6 + $0x200] sm:$0xf] }
  0x50   : > { %2448 = vst [vmem:[%s3308_s7 + $0xf8] sm:$0xf] %v2447_v52  ;;  %v2451_v54 = vld [vmem:[%s3303_s6 + $0x218] sm:$0xf]  ;;  %v2453_v55 = vld [vmem:[%s3303_s6 + $0x230] sm:$0xf] }
  0x51   : > { %2450 = vst [vmem:[%s3308_s7 + $0x104] sm:$0xf] %v2449_v53  ;;  %2452 = vst [vmem:[%s3308_s7 + $0x110] sm:$0xf] %v2451_v54  ;;  %v2455_v56 = vld [vmem:[%s3303_s6 + $0x248] sm:$0xf] }
  0x52   : > { %2454 = vst [vmem:[%s3308_s7 + $0x11c] sm:$0xf] %v2453_v55  ;;  %v2457_v57 = vld [vmem:[%s3303_s6 + $0x260] sm:$0xf]  ;;  %v2459_v58 = vld [vmem:[%s3303_s6 + $0x278] sm:$0xf] }
  0x53   : > { %2456 = vst [vmem:[%s3308_s7 + $0x128] sm:$0xf] %v2455_v56  ;;  %2458 = vst [vmem:[%s3308_s7 + $0x134] sm:$0xf] %v2457_v57  ;;  %v2461_v59 = vld [vmem:[%s3303_s6 + $0x290] sm:$0xf] }
  0x54   : > { %2460 = vst [vmem:[%s3308_s7 + $0x140] sm:$0xf] %v2459_v58  ;;  %v2463_v60 = vld [vmem:[%s3303_s6 + $0x2a8] sm:$0xf]  ;;  %v2465_v61 = vld [vmem:[%s3303_s6 + $0x2c0] sm:$0xf] }
  0x55   : > { %2462 = vst [vmem:[%s3308_s7 + $0x14c] sm:$0xf] %v2461_v59  ;;  %2464 = vst [vmem:[%s3308_s7 + $0x158] sm:$0xf] %v2463_v60  ;;  %v2467_v62 = vld [vmem:[%s3303_s6 + $0x2d8] sm:$0xf] }
  0x56   : > { %2466 = vst [vmem:[%s3308_s7 + $0x164] sm:$0xf] %v2465_v61  ;;  %v2469_v63 = vld [vmem:[%s3303_s6 + $0x2f0] sm:$0xf]  ;;  %v2471_v0 = vld [vmem:[%s3303_s6 + $0x308] sm:$0xf] }
  0x57   : > { %2468 = vst [vmem:[%s3308_s7 + $0x170] sm:$0xf] %v2467_v62  ;;  %2470 = vst [vmem:[%s3308_s7 + $0x17c] sm:$0xf] %v2469_v63  ;;  %v2473_v1 = vld [vmem:[%s3303_s6 + $0x320] sm:$0xf] }
  0x58   : > { %2472 = vst [vmem:[%s3308_s7 + $0x188] sm:$0xf] %v2471_v0  ;;  %v2475_v2 = vld [vmem:[%s3303_s6 + $0x338] sm:$0xf]  ;;  %v2477_v3 = vld [vmem:[%s3303_s6 + $0x350] sm:$0xf] }
  0x59   : > { %2474 = vst [vmem:[%s3308_s7 + $0x194] sm:$0xf] %v2473_v1  ;;  %2476 = vst [vmem:[%s3308_s7 + $0x1a0] sm:$0xf] %v2475_v2  ;;  %v2479_v4 = vld [vmem:[%s3303_s6 + $0x368] sm:$0xf] }
  0x5a   : > { %2478 = vst [vmem:[%s3308_s7 + $0x1ac] sm:$0xf] %v2477_v3  ;;  %v2481_v5 = vld [vmem:[%s3303_s6 + $0x380] sm:$0xf]  ;;  %v2483_v6 = vld [vmem:[%s3303_s6 + $0x398] sm:$0xf] }
  0x5b   : > { %2480 = vst [vmem:[%s3308_s7 + $0x1b8] sm:$0xf] %v2479_v4  ;;  %2482 = vst [vmem:[%s3308_s7 + $0x1c4] sm:$0xf] %v2481_v5  ;;  %v2485_v7 = vld [vmem:[%s3303_s6 + $0x3b0] sm:$0xf] }
  0x5c   : > { %2484 = vst [vmem:[%s3308_s7 + $0x1d0] sm:$0xf] %v2483_v6  ;;  %v2487_v8 = vld [vmem:[%s3303_s6 + $0x3c8] sm:$0xf]  ;;  %v2489_v9 = vld [vmem:[%s3303_s6 + $0x3e0] sm:$0xf] }
  0x5d   : > { %2486 = vst [vmem:[%s3308_s7 + $0x1dc] sm:$0xf] %v2485_v7  ;;  %2488 = vst [vmem:[%s3308_s7 + $0x1e8] sm:$0xf] %v2487_v8  ;;  %v2491_v10 = vld [vmem:[%s3303_s6 + $0x3f8] sm:$0xf] }
  0x5e   : > { %2490 = vst [vmem:[%s3308_s7 + $0x1f4] sm:$0xf] %v2489_v9  ;;  %v2493_v11 = vld [vmem:[%s3303_s6 + $0x410] sm:$0xf]  ;;  %v2495_v12 = vld [vmem:[%s3303_s6 + $0x428] sm:$0xf] }
  0x5f   : > { %2492 = vst [vmem:[%s3308_s7 + $0x200] sm:$0xf] %v2491_v10  ;;  %2494 = vst [vmem:[%s3308_s7 + $0x20c] sm:$0xf] %v2493_v11  ;;  %v2497_v13 = vld [vmem:[%s3303_s6 + $0x440] sm:$0xf] }
  0x60   : > { %2496 = vst [vmem:[%s3308_s7 + $0x218] sm:$0xf] %v2495_v12  ;;  %v2499_v14 = vld [vmem:[%s3303_s6 + $0x458] sm:$0xf]  ;;  %v2501_v15 = vld [vmem:[%s3303_s6 + $0x470] sm:$0xf] }
  0x61   : > { %2498 = vst [vmem:[%s3308_s7 + $0x224] sm:$0xf] %v2497_v13  ;;  %2500 = vst [vmem:[%s3308_s7 + $0x230] sm:$0xf] %v2499_v14  ;;  %v2503_v16 = vld [vmem:[%s3303_s6 + $0x488] sm:$0xf] }
  0x62   : > { %2502 = vst [vmem:[%s3308_s7 + $0x23c] sm:$0xf] %v2501_v15  ;;  %v2505_v17 = vld [vmem:[%s3303_s6 + $0x4a0] sm:$0xf]  ;;  %v2507_v18 = vld [vmem:[%s3303_s6 + $0x4b8] sm:$0xf] }
  0x63   : > { %2504 = vst [vmem:[%s3308_s7 + $0x248] sm:$0xf] %v2503_v16  ;;  %2506 = vst [vmem:[%s3308_s7 + $0x254] sm:$0xf] %v2505_v17  ;;  %v2509_v19 = vld [vmem:[%s3303_s6 + $0x4d0] sm:$0xf] }
  0x64   : > { %2508 = vst [vmem:[%s3308_s7 + $0x260] sm:$0xf] %v2507_v18  ;;  %v2511_v20 = vld [vmem:[%s3303_s6 + $0x4e8] sm:$0xf]  ;;  %v2513_v21 = vld [vmem:[%s3303_s6 + $0x500] sm:$0xf] }
  0x65   : > { %2510 = vst [vmem:[%s3308_s7 + $0x26c] sm:$0xf] %v2509_v19  ;;  %2512 = vst [vmem:[%s3308_s7 + $0x278] sm:$0xf] %v2511_v20  ;;  %v2515_v22 = vld [vmem:[%s3303_s6 + $0x518] sm:$0xf] }
  0x66   : > { %2514 = vst [vmem:[%s3308_s7 + $0x284] sm:$0xf] %v2513_v21  ;;  %v2517_v23 = vld [vmem:[%s3303_s6 + $0x530] sm:$0xf]  ;;  %v2519_v24 = vld [vmem:[%s3303_s6 + $0x548] sm:$0xf] }
  0x67   : > { %2516 = vst [vmem:[%s3308_s7 + $0x290] sm:$0xf] %v2515_v22  ;;  %2518 = vst [vmem:[%s3308_s7 + $0x29c] sm:$0xf] %v2517_v23  ;;  %v2521_v25 = vld [vmem:[%s3303_s6 + $0x560] sm:$0xf] }
  0x68   : > { %2520 = vst [vmem:[%s3308_s7 + $0x2a8] sm:$0xf] %v2519_v24  ;;  %v2523_v26 = vld [vmem:[%s3303_s6 + $0x578] sm:$0xf]  ;;  %v2525_v27 = vld [vmem:[%s3303_s6 + $0x590] sm:$0xf] }
  0x69   : > { %2522 = vst [vmem:[%s3308_s7 + $0x2b4] sm:$0xf] %v2521_v25  ;;  %2524 = vst [vmem:[%s3308_s7 + $0x2c0] sm:$0xf] %v2523_v26  ;;  %v2527_v28 = vld [vmem:[%s3303_s6 + $0x5a8] sm:$0xf] }
  0x6a   : > { %2526 = vst [vmem:[%s3308_s7 + $0x2cc] sm:$0xf] %v2525_v27  ;;  %v2529_v29 = vld [vmem:[%s3303_s6 + $0x5c0] sm:$0xf]  ;;  %v2531_v30 = vld [vmem:[%s3303_s6 + $0x5d8] sm:$0xf] }
  0x6b   : > { %2528 = vst [vmem:[%s3308_s7 + $0x2d8] sm:$0xf] %v2527_v28  ;;  %2530 = vst [vmem:[%s3308_s7 + $0x2e4] sm:$0xf] %v2529_v29  ;;  %v2533_v31 = vld [vmem:[%s3303_s6 + $0x5f0] sm:$0xf] }
  0x6c   : > { %2532 = vst [vmem:[%s3308_s7 + $0x2f0] sm:$0xf] %v2531_v30  ;;  %v2535_v32 = vld [vmem:[%s3303_s6 + $0x608] sm:$0xf]  ;;  %v2537_v33 = vld [vmem:[%s3303_s6 + $0x620] sm:$0xf] }
  0x6d   : > { %2534 = vst [vmem:[%s3308_s7 + $0x2fc] sm:$0xf] %v2533_v31  ;;  %2536 = vst [vmem:[%s3308_s7 + $0x308] sm:$0xf] %v2535_v32  ;;  %v2539_v34 = vld [vmem:[%s3303_s6 + $0x638] sm:$0xf] }
  0x6e   : > { %2538 = vst [vmem:[%s3308_s7 + $0x314] sm:$0xf] %v2537_v33  ;;  %v2541_v35 = vld [vmem:[%s3303_s6 + $0x650] sm:$0xf]  ;;  %v2543_v36 = vld [vmem:[%s3303_s6 + $0x668] sm:$0xf] }
  0x6f   : > { %2540 = vst [vmem:[%s3308_s7 + $0x320] sm:$0xf] %v2539_v34  ;;  %2542 = vst [vmem:[%s3308_s7 + $0x32c] sm:$0xf] %v2541_v35  ;;  %v2545_v37 = vld [vmem:[%s3303_s6 + $0x680] sm:$0xf] }
  0x70   : > { %2544 = vst [vmem:[%s3308_s7 + $0x338] sm:$0xf] %v2543_v36  ;;  %v2547_v38 = vld [vmem:[%s3303_s6 + $0x698] sm:$0xf]  ;;  %v2549_v39 = vld [vmem:[%s3303_s6 + $0x6b0] sm:$0xf] }
  0x71   : > { %2546 = vst [vmem:[%s3308_s7 + $0x344] sm:$0xf] %v2545_v37  ;;  %2548 = vst [vmem:[%s3308_s7 + $0x350] sm:$0xf] %v2547_v38  ;;  %v2551_v40 = vld [vmem:[%s3303_s6 + $0x6c8] sm:$0xf] }
  0x72   : > { %2550 = vst [vmem:[%s3308_s7 + $0x35c] sm:$0xf] %v2549_v39  ;;  %v2553_v41 = vld [vmem:[%s3303_s6 + $0x6e0] sm:$0xf]  ;;  %v2555_v42 = vld [vmem:[%s3303_s6 + $0x6f8] sm:$0xf] }
  0x73   : > { %2552 = vst [vmem:[%s3308_s7 + $0x368] sm:$0xf] %v2551_v40  ;;  %2554 = vst [vmem:[%s3308_s7 + $0x374] sm:$0xf] %v2553_v41  ;;  %v2557_v43 = vld [vmem:[%s3303_s6 + $0x710] sm:$0xf] }
  0x74   : > { %2556 = vst [vmem:[%s3308_s7 + $0x380] sm:$0xf] %v2555_v42  ;;  %v2559_v44 = vld [vmem:[%s3303_s6 + $0x728] sm:$0xf]  ;;  %v2561_v45 = vld [vmem:[%s3303_s6 + $0x740] sm:$0xf] }
  0x75   : > { %2558 = vst [vmem:[%s3308_s7 + $0x38c] sm:$0xf] %v2557_v43  ;;  %2560 = vst [vmem:[%s3308_s7 + $0x398] sm:$0xf] %v2559_v44  ;;  %v2563_v46 = vld [vmem:[%s3303_s6 + $0x758] sm:$0xf] }
  0x76   : > { %2562 = vst [vmem:[%s3308_s7 + $0x3a4] sm:$0xf] %v2561_v45  ;;  %v2565_v47 = vld [vmem:[%s3303_s6 + $0x770] sm:$0xf]  ;;  %v2567_v48 = vld [vmem:[%s3303_s6 + $0x788] sm:$0xf] }
  0x77   : > { %2564 = vst [vmem:[%s3308_s7 + $0x3b0] sm:$0xf] %v2563_v46  ;;  %2566 = vst [vmem:[%s3308_s7 + $0x3bc] sm:$0xf] %v2565_v47  ;;  %v2569_v49 = vld [vmem:[%s3303_s6 + $0x7a0] sm:$0xf] }
  0x78   : > { %2568 = vst [vmem:[%s3308_s7 + $0x3c8] sm:$0xf] %v2567_v48  ;;  %v2571_v50 = vld [vmem:[%s3303_s6 + $0x7b8] sm:$0xf]  ;;  %v2573_v51 = vld [vmem:[%s3303_s6 + $0x7d0] sm:$0xf] }
  0x79   : > { %2570 = vst [vmem:[%s3308_s7 + $0x3d4] sm:$0xf] %v2569_v49  ;;  %2572 = vst [vmem:[%s3308_s7 + $0x3e0] sm:$0xf] %v2571_v50  ;;  %v2575_v52 = vld [vmem:[%s3303_s6 + $0x7e8] sm:$0xf] }
  0x7a   : > { %2574 = vst [vmem:[%s3308_s7 + $0x3ec] sm:$0xf] %v2573_v51  ;;  %v2577_v53 = vld [vmem:[%s3303_s6 + $0x800] sm:$0xf]  ;;  %v2579_v54 = vld [vmem:[%s3303_s6 + $0x818] sm:$0xf] }
  0x7b   : > { %2576 = vst [vmem:[%s3308_s7 + $0x3f8] sm:$0xf] %v2575_v52  ;;  %2578 = vst [vmem:[%s3308_s7 + $0x404] sm:$0xf] %v2577_v53  ;;  %v2581_v55 = vld [vmem:[%s3303_s6 + $0x830] sm:$0xf] }
  0x7c   : > { %2580 = vst [vmem:[%s3308_s7 + $0x410] sm:$0xf] %v2579_v54  ;;  %v2583_v56 = vld [vmem:[%s3303_s6 + $0x848] sm:$0xf]  ;;  %v2585_v57 = vld [vmem:[%s3303_s6 + $0x860] sm:$0xf] }
  0x7d   : > { %2582 = vst [vmem:[%s3308_s7 + $0x41c] sm:$0xf] %v2581_v55  ;;  %2584 = vst [vmem:[%s3308_s7 + $0x428] sm:$0xf] %v2583_v56  ;;  %v2587_v58 = vld [vmem:[%s3303_s6 + $0x878] sm:$0xf] }
  0x7e   : > { %2586 = vst [vmem:[%s3308_s7 + $0x434] sm:$0xf] %v2585_v57  ;;  %v2589_v59 = vld [vmem:[%s3303_s6 + $0x890] sm:$0xf]  ;;  %v2591_v60 = vld [vmem:[%s3303_s6 + $0x8a8] sm:$0xf] }
  0x7f   : > { %2588 = vst [vmem:[%s3308_s7 + $0x440] sm:$0xf] %v2587_v58  ;;  %2590 = vst [vmem:[%s3308_s7 + $0x44c] sm:$0xf] %v2589_v59  ;;  %v2593_v61 = vld [vmem:[%s3303_s6 + $0x8c0] sm:$0xf] }
  0x80   : > { %2592 = vst [vmem:[%s3308_s7 + $0x458] sm:$0xf] %v2591_v60  ;;  %v2595_v62 = vld [vmem:[%s3303_s6 + $0x8d8] sm:$0xf]  ;;  %v2597_v63 = vld [vmem:[%s3303_s6 + $0x8f0] sm:$0xf] }
  0x81   : > { %2594 = vst [vmem:[%s3308_s7 + $0x464] sm:$0xf] %v2593_v61  ;;  %2596 = vst [vmem:[%s3308_s7 + $0x470] sm:$0xf] %v2595_v62 }
  0x82   : > { %2598 = vst [vmem:[%s3308_s7 + $0x47c] sm:$0xf] %v2597_v63 }
  0x83 PF: > { %p2599_p5 = scmp.ge.s32.totalorder %s3231_s20, 1  ;;  %p615_p6 = scmp.lt.s32.totalorder %s3231_s20, 3 }
  0x85   : > { %p616_p7 = pnand %p2599_p5, %p615_p6 }
  0x86   : > { %s622_s8 = sand.u32 (!%p616_p7), 1, %s3223_s18   ;;  %s655_s9 = smul.u32 (!%p616_p7), 3, %s3283_s21 }
  0x87   : > { %619 = sbr.rel (%p616_p7) target bundleno = 1106 (0x452), region = 62  ;;  %p2602_p10 = scmp.ne.s32.totalorder (!%p616_p7), %s3283_s21, 0 }
  0x88   : > { %s2912_s10 = smul.u32 (!%p616_p7), 1152, %s622_s8  ;;  %p656_p8 = scmp.lt.s32.totalorder (!%p616_p7), %s655_s9, 5 }
  0x89   : > { %s661_s11 = smul.u32 (!%p616_p7), 48, %s3283_s21 }
  0x8a   : > { %s3706_s18 = scalar_lea.vmem (!%p616_p7), [#allocation2], %s2912_s10 }
  0x8b   : > { %p662_p9 = scmp.lt.s32.totalorder (!%p616_p7), %s661_s11, 95 }
  0x8e   : > { %s3960_s9 = smov (!%p656_p8, %s655_s9), 5  ;;  %s3962_s11 = smov (!%p662_p9, %s661_s11), 95 }
  0x8f   : > { %s2600_s12 = sshll.u32 %s3960_s9, 1  ;;  %s2601_s16 = sshll.u32 %s3962_s11, 2  ;;  %v3233_v0 = vmov (!%p2602_p10), 0.0  }
  0x90   : > { %s3699_s15 = scalar_lea.vmem %s3952_s2, %s2600_s12  ;;  %s3704_s23 = scalar_lea.vmem %s3953_s3, %s2601_s16  ;;  %672 = vst [vmem:[#allocation3] sm:$0xff] (!%p2602_p10), %v3233_v0 }
  0x91   : > { %671 = sbr.rel (%p2602_p10) target bundleno = 152 (0x98), region = 70 }
  0x98 PF: > { %v2947_v1 = vld [vmem:[%s3706_s18 + $0x4] ss:$12 sps:$4 sm:$0xff]   ;;  %v2949_v2 = vld [vmem:[%s3706_s18] ss:$12 sps:$4 sm:$0xff]   ;;  %v2950_v3 = vld [vmem:[%s3706_s18 + $0x1c] ss:$12 sps:$4 sm:$0xff]  }
  0x99   : > { %1657 = vmatprep.subr.bf16.mxu0 %v2947_v1  ;;  %v2952_v4 = vld [vmem:[%s3706_s18 + $0x18] ss:$12 sps:$4 sm:$0xff]   ;;  %v2953_v5 = vld [vmem:[%s3706_s18 + $0x34] ss:$12 sps:$4 sm:$0xff]   ;;  %v2955_v6 = vld [vmem:[%s3706_s18 + $0x30] ss:$12 sps:$4 sm:$0xff]  }
  0x9a   : > { %1658 = vmatpush1.bf16.msra.mxu0 %v2949_v2  ;;  %v2962_v7 = vld [vmem:[%s3706_s18 + $0xc8] ss:$12 sps:$4 sm:$0xff]   ;;  %v2956_v8 = vld [vmem:[%s3706_s18 + $0x4c] ss:$12 sps:$4 sm:$0xff]   ;;  %v2959_v12 = vld [vmem:[%s3706_s18 + $0x64] ss:$12 sps:$4 sm:$0xff]  }
  0x9b   : > { %1659 = vmatprep.subr.bf16.mxu0 %v2950_v3  ;;  %v2958_v9 = vld [vmem:[%s3706_s18 + $0x48] ss:$12 sps:$4 sm:$0xff]   ;;  %2786 = vmatprep.subr.bf16.mxu1 %v2962_v7  ;;  %v2967_v11 = vld [vmem:[%s3706_s18 + $0xe0] ss:$12 sps:$4 sm:$0xff]   ;;  %v2972_v14 = vld [vmem:[%s3706_s18 + $0xf8] ss:$12 sps:$4 sm:$0xff]  }
  0x9c   : > { %v2965_v10 = vld [vmem:[%s3706_s18 + $0x8] ss:$12 sps:$4 sm:$0xff]   ;;  %v2970_v13 = vld [vmem:[%s3706_s18 + $0x20] ss:$12 sps:$4 sm:$0xff]   ;;  %v2975_v17 = vld [vmem:[%s3706_s18 + $0x38] ss:$12 sps:$4 sm:$0xff]  }
  0x9d   : > { %2787 = vmatpush3.bf16.msra.mxu1 %v2965_v10  ;;  %v2961_v15 = vld [vmem:[%s3706_s18 + $0x60] ss:$12 sps:$4 sm:$0xff]   ;;  %v2963_v16 = vld [vmem:[%s3706_s18 + $0x7c] ss:$12 sps:$4 sm:$0xff]   ;;  %v2966_v19 = vld [vmem:[%s3706_s18 + $0x78] ss:$12 sps:$4 sm:$0xff]  }
  0x9e   : > { %1660 = vmatpush1.bf16.msra.mxu0 %v2952_v4  ;;  %2788 = vmatprep.subr.bf16.mxu1 %v2967_v11  ;;  %v2977_v18 = vld [vmem:[%s3706_s18 + $0x110] ss:$12 sps:$4 sm:$0xff]   ;;  %v2968_v20 = vld [vmem:[%s3706_s18 + $0x94] ss:$12 sps:$4 sm:$0xff]   ;;  %v2973_v24 = vld [vmem:[%s3706_s18 + $0xac] ss:$12 sps:$4 sm:$0xff]  }
  0x9f   : > { %1661 = vmatprep.subr.bf16.mxu0 %v2953_v5  ;;  %v2980_v21 = vld [vmem:[%s3706_s18 + $0x50] ss:$12 sps:$4 sm:$0xff]   ;;  %v2982_v22 = vld [vmem:[%s3706_s18 + $0x128] ss:$12 sps:$4 sm:$0xff]   ;;  %v2987_v26 = vld [vmem:[%s3706_s18 + $0x140] ss:$12 sps:$4 sm:$0xff]  }
  0xa0   : > { %v2971_v23 = vld [vmem:[%s3706_s18 + $0x90] ss:$12 sps:$4 sm:$0xff]   ;;  %v2985_v25 = vld [vmem:[%s3706_s18 + $0x68] ss:$12 sps:$4 sm:$0xff]   ;;  %v2990_v29 = vld [vmem:[%s3706_s18 + $0x80] ss:$12 sps:$4 sm:$0xff]  }
  0xa1   : > { %2789 = vmatpush3.bf16.msra.mxu1 %v2970_v13  ;;  %v2976_v27 = vld [vmem:[%s3706_s18 + $0xa8] ss:$12 sps:$4 sm:$0xff]   ;;  %v2978_v28 = vld [vmem:[%s3706_s18 + $0xc4] ss:$12 sps:$4 sm:$0xff]   ;;  %v2981_v31 = vld [vmem:[%s3706_s18 + $0xc0] ss:$12 sps:$4 sm:$0xff]  }
  0xa2   : > { %1662 = vmatpush1.bf16.msra.mxu0 %v2955_v6  ;;  %2790 = vmatprep.subr.bf16.mxu1 %v2972_v14  ;;  %v2992_v30 = vld [vmem:[%s3706_s18 + $0x158] ss:$12 sps:$4 sm:$0xff]   ;;  %v2983_v32 = vld [vmem:[%s3706_s18 + $0xdc] ss:$12 sps:$4 sm:$0xff]   ;;  %v2988_v39 = vld [vmem:[%s3706_s18 + $0xf4] ss:$12 sps:$4 sm:$0xff]  }
  0xa3   : > { %1663 = vmatprep.subr.bf16.mxu0 %v2956_v8  ;;  %v2995_v33 = vld [vmem:[%s3706_s18 + $0x98] ss:$12 sps:$4 sm:$0xff]   ;;  %v2997_v34 = vld [vmem:[%s3706_s18 + $0x170] ss:$12 sps:$4 sm:$0xff]   ;;  %v3004_v40 = vld [vmem:[%s3706_s18 + $0x248] ss:$12 sps:$4 sm:$0xff]  }
  0xa4   : > { %v673_v35 = vld [vmem:[%s3950_s0] sm:$0xff]  ;;  %v3000_v38 = vld [vmem:[%s3706_s18 + $0xb0] ss:$12 sps:$4 sm:$0xff]   ;;  %v2993_v42 = vld [vmem:[%s3706_s18 + $0x10c] ss:$12 sps:$4 sm:$0xff]   ;;  %vm3235_vm0 = vmmov 0  }
  0xa5   : > { %2791 = vmatpush3.bf16.msra.mxu1 %v2975_v17  ;;  %v2986_v36 = vld [vmem:[%s3706_s18 + $0xd8] ss:$12 sps:$4 sm:$0xff]   ;;  %v2604_v37 = vcombine.high %v673_v35, %v673_v35  ;;  %v2991_v41 = vld [vmem:[%s3706_s18 + $0xf0] ss:$12 sps:$4 sm:$0xff]   ;;  %v2603_v43 = vcombine.low %v673_v35, %v673_v35  ;;  %v3007_v44 = vld [vmem:[%s3706_s18 + $0x188] ss:$12 sps:$4 sm:$0xff]  }
  0xa6   : > { %1664 = vmatpush1.bf16.msra.mxu0 %v2958_v9  ;;  %2792 = vmatprep.subr.bf16.mxu1 %v2977_v18  ;;  %v3009_v45 = vld [vmem:[%s3706_s18 + $0x260] ss:$12 sps:$4 sm:$0xff]   ;;  %v2996_v46 = vld [vmem:[%s3706_s18 + $0x108] ss:$12 sps:$4 sm:$0xff]   ;;  %v2998_v47 = vld [vmem:[%s3706_s18 + $0x124] ss:$12 sps:$4 sm:$0xff]  }
  0xa7   : > { %1665 = vmatprep.subr.bf16.mxu0 %v2959_v12  ;;  %1812 = vmatprep.mubr.bf16.mxu1 %v2604_v37  ;;  %v3012_v48 = vld [vmem:[%s3706_s18 + $0x1a0] ss:$12 sps:$4 sm:$0xff]   ;;  %v3014_v49 = vld [vmem:[%s3706_s18 + $0x278] ss:$12 sps:$4 sm:$0xff]   ;;  %v3005_v51 = vld [vmem:[%s3706_s18 + $0x13c] ss:$12 sps:$4 sm:$0xff]  }
  0xa8   : > { %1689 = vmatprep.mubr.bf16.mxu0 %v2604_v37  ;;  %v3001_v50 = vld [vmem:[%s3706_s18 + $0x120] ss:$12 sps:$4 sm:$0xff]   ;;  %v3017_v52 = vld [vmem:[%s3706_s18 + $0x1b8] ss:$12 sps:$4 sm:$0xff]   ;;  %v3019_v53 = vld [vmem:[%s3706_s18 + $0x290] ss:$12 sps:$4 sm:$0xff]  }
  0xa9   : > { %2793 = vmatpush3.bf16.msra.mxu1 %v2980_v21  ;;  %v3008_v54 = vld [vmem:[%s3706_s18 + $0x138] ss:$12 sps:$4 sm:$0xff]   ;;  %v3023_v55 = vld [vmem:[%s3706_s18 + $0x1d0] ss:$12 sps:$4 sm:$0xff]   ;;  %v3010_v56 = vld [vmem:[%s3706_s18 + $0x154] ss:$12 sps:$4 sm:$0xff]  }
  0xaa   : > { %1666 = vmatpush1.bf16.msra.mxu0 %v2961_v15  ;;  %2794 = vmatprep.subr.bf16.mxu1 %v2982_v22  ;;  %v3024_v57 = vld [vmem:[%s3706_s18 + $0x2a8] ss:$12 sps:$4 sm:$0xff]   ;;  %v3013_v58 = vld [vmem:[%s3706_s18 + $0x150] ss:$12 sps:$4 sm:$0xff]   ;;  %v3015_v59 = vld [vmem:[%s3706_s18 + $0x16c] ss:$12 sps:$4 sm:$0xff]  }
  0xab   : > { %1667 = vmatprep.subr.bf16.mxu0 %v2963_v16  ;;  %v3028_v60 = vld [vmem:[%s3706_s18 + $0x1e8] ss:$12 sps:$4 sm:$0xff]   ;;  %v3029_v61 = vld [vmem:[%s3706_s18 + $0x2c0] ss:$12 sps:$4 sm:$0xff]   ;;  %v3022_v63 = vld [vmem:[%s3706_s18 + $0x184] ss:$12 sps:$4 sm:$0xff]  }
  0xac   : > { %v3018_v62 = vld [vmem:[%s3706_s18 + $0x168] ss:$12 sps:$4 sm:$0xff]   ;;  %v3033_v0 = vld [vmem:[%s3706_s18 + $0x200] ss:$12 sps:$4 sm:$0xff]   ;;  %v3034_v1 = vld [vmem:[%s3706_s18 + $0x2d8] ss:$12 sps:$4 sm:$0xff]  }
  0xad   : > { %2795 = vmatpush3.bf16.msra.mxu1 %v2985_v25  ;;  %v674_v2 = vld [vmem:[%s3950_s0 + $0x8] sm:$0xff]  ;;  %v3038_v6 = vld [vmem:[%s3706_s18 + $0x218] ss:$12 sps:$4 sm:$0xff]   ;;  %v3039_v7 = vld [vmem:[%s3706_s18 + $0x2f0] ss:$12 sps:$4 sm:$0xff]   ;;  %p2778_p11 = scmp.ne.s32.totalorder %s3283_s21, 1 }
  0xae   : > { %1668 = vmatpush1.bf16.msra.mxu0 %v2966_v19  ;;  %2796 = vmatprep.subr.bf16.mxu1 %v2987_v26  ;;  %v2606_v3 = vcombine.high %v674_v2, %v674_v2  ;;  %v3020_v4 = vld [vmem:[%s3706_s18 + $0x180] ss:$12 sps:$4 sm:$0xff]   ;;  %v3027_v5 = vld [vmem:[%s3706_s18 + $0x19c] ss:$12 sps:$4 sm:$0xff]   ;;  %v3025_v8 = vld [vmem:[%s3706_s18 + $0x198] ss:$12 sps:$4 sm:$0xff]   ;;  %v3786_v13 = vcombine.low %v674_v2, %v674_v2 }
  0xaf   : > { %1669 = vmatprep.subr.bf16.mxu0 %v2968_v20  ;;  %v3032_v9 = vld [vmem:[%s3706_s18 + $0x1b4] ss:$12 sps:$4 sm:$0xff]   ;;  %v3043_v10 = vld [vmem:[%s3706_s18 + $0x230] ss:$12 sps:$4 sm:$0xff]   ;;  %v3037_v15 = vld [vmem:[%s3706_s18 + $0x1cc] ss:$12 sps:$4 sm:$0xff]  }
  0xb0   : > { %v3046_v11 = vld [vmem:[%s3706_s18 + $0x3c8] ss:$12 sps:$4 sm:$0xff]   ;;  %v3030_v12 = vld [vmem:[%s3706_s18 + $0x1b0] ss:$12 sps:$4 sm:$0xff]   ;;  %v3051_v16 = vld [vmem:[%s3706_s18 + $0x3e0] ss:$12 sps:$4 sm:$0xff]  }
  0xb1   : > { %2797 = vmatpush3.bf16.msra.mxu1 %v2990_v29  ;;  %v3050_v14 = vld [vmem:[%s3706_s18 + $0x308] ss:$12 sps:$4 sm:$0xff]   ;;  %v3042_v18 = vld [vmem:[%s3706_s18 + $0x1e4] ss:$12 sps:$4 sm:$0xff]   ;;  %v3055_v19 = vld [vmem:[%s3706_s18 + $0x320] ss:$12 sps:$4 sm:$0xff]  }
  0xb2   : > { %1670 = vmatpush1.bf16.msra.mxu0 %v2971_v23  ;;  %2798 = vmatprep.subr.bf16.mxu1 %v2992_v30  ;;  %v3035_v17 = vld [vmem:[%s3706_s18 + $0x1c8] ss:$12 sps:$4 sm:$0xff]   ;;  %v3056_v20 = vld [vmem:[%s3706_s18 + $0x3f8] ss:$12 sps:$4 sm:$0xff]   ;;  %v3040_v21 = vld [vmem:[%s3706_s18 + $0x1e0] ss:$12 sps:$4 sm:$0xff]  }
  0xb3   : > { %1671 = vmatprep.subr.bf16.mxu0 %v2973_v24  ;;  %v3049_v22 = vld [vmem:[%s3706_s18 + $0x1fc] ss:$12 sps:$4 sm:$0xff]   ;;  %v3060_v23 = vld [vmem:[%s3706_s18 + $0x338] ss:$12 sps:$4 sm:$0xff]   ;;  %v3054_v26 = vld [vmem:[%s3706_s18 + $0x214] ss:$12 sps:$4 sm:$0xff]  }
  0xb4   : > { %v3061_v24 = vld [vmem:[%s3706_s18 + $0x410] ss:$12 sps:$4 sm:$0xff]   ;;  %v3047_v25 = vld [vmem:[%s3706_s18 + $0x1f8] ss:$12 sps:$4 sm:$0xff]   ;;  %v3070_v30 = vld [vmem:[%s3706_s18 + $0x368] ss:$12 sps:$4 sm:$0xff]  }
  0xb5   : > { %2799 = vmatpush3.bf16.msra.mxu1 %v2995_v33  ;;  %v3052_v29 = vld [vmem:[%s3706_s18 + $0x210] ss:$12 sps:$4 sm:$0xff]   ;;  %v3071_v33 = vld [vmem:[%s3706_s18 + $0x440] ss:$12 sps:$4 sm:$0xff]   ;;  %v3057_v35 = vld [vmem:[%s3706_s18 + $0x228] ss:$12 sps:$4 sm:$0xff]  }
  0xb6   : > { %1672 = vmatpush1.bf16.msra.mxu0 %v2976_v27  ;;  %2800 = vmatprep.subr.bf16.mxu1 %v2997_v34  ;;  %v3065_v27 = vld [vmem:[%s3706_s18 + $0x350] ss:$12 sps:$4 sm:$0xff]  }
  0xb7   : > { %1673 = vmatprep.subr.bf16.mxu0 %v2978_v28  ;;  %v3066_v28 = vld [vmem:[%s3706_s18 + $0x428] ss:$12 sps:$4 sm:$0xff]   ;;  %v3064_v37 = vld [vmem:[%s3706_s18 + $0x244] ss:$12 sps:$4 sm:$0xff]  }
  0xb8   : > { %v3111_v2 = vld [vmem:[%s3706_s18 + $0x364] ss:$12 sps:$4 sm:$0xff]  }
  0xb9   : > { %2801 = vmatpush3.bf16.msra.mxu1 %v3000_v38  ;;  %v3076_v38 = vld [vmem:[%s3706_s18 + $0x458] ss:$12 sps:$4 sm:$0xff]  }
  0xba   : > { %1674 = vmatpush1.bf16.msra.mxu0 %v2981_v31  ;;  %2808 = vmatprep.subr.bf16.mxu1 %v3004_v40  ;;  %v675_v31 = vld [vmem:[%s3950_s0 + $0x10] sm:$0xff]  ;;  %v3080_v40 = vld [vmem:[%s3706_s18 + $0x398] ss:$12 sps:$4 sm:$0xff]  }
  0xbb   : > { %1675 = vmatprep.subr.bf16.mxu0 %v2983_v32  ;;  %v3059_v32 = vld [vmem:[%s3706_s18 + $0x22c] ss:$12 sps:$4 sm:$0xff]   ;;  %v2608_v34 = vcombine.high %v675_v31, %v675_v31 }
  0xbc   : > { %1813 = vmatmul.mubr.bf16.vlgmr.msra.gmra.mrb[0].mxu1 %v2603_v43 }
  0xbd   : > { %2809 = vmatpush3.bf16.msra.mxu1 %v3007_v44  ;;  %1852 = vmatprep.mubr.bf16.mxu1 %v2606_v3  ;;  %v3085_v44 = vld [vmem:[%s3706_s18 + $0x3b0] ss:$12 sps:$4 sm:$0xff]  }
  0xbe   : > { %1676 = vmatpush1.bf16.msra.mxu0 %v2986_v36  ;;  %2810 = vmatprep.subr.bf16.mxu1 %v3009_v45  ;;  %v3075_v36 = vld [vmem:[%s3706_s18 + $0x380] ss:$12 sps:$4 sm:$0xff]  }
  0xbf   : > { %1677 = vmatprep.subr.bf16.mxu0 %v2988_v39  ;;  %v3062_v39 = vld [vmem:[%s3706_s18 + $0x240] ss:$12 sps:$4 sm:$0xff]  }
  0xc0   : > { %v3074_v45 = vld [vmem:[%s3706_s18 + $0x274] ss:$12 sps:$4 sm:$0xff]  }
  0xc1   : > { %2811 = vmatpush3.bf16.msra.mxu1 %v3012_v48  ;;  %v3079_v48 = vld [vmem:[%s3706_s18 + $0x28c] ss:$12 sps:$4 sm:$0xff]  }
  0xc2   : > { %1678 = vmatpush1.bf16.msra.mxu0 %v2991_v41  ;;  %2812 = vmatprep.subr.bf16.mxu1 %v3014_v49  ;;  %v3069_v41 = vld [vmem:[%s3706_s18 + $0x25c] ss:$12 sps:$4 sm:$0xff]  }
  0xc3   : > { %1679 = vmatprep.subr.bf16.mxu0 %v2993_v42  ;;  %v3081_v42 = vld [vmem:[%s3706_s18 + $0x470] ss:$12 sps:$4 sm:$0xff]   ;;  %v3077_v49 = vld [vmem:[%s3706_s18 + $0x288] ss:$12 sps:$4 sm:$0xff]  }
  0xc5   : > { %2813 = vmatpush3.bf16.msra.mxu1 %v3017_v52  ;;  %v3090_v52 = vld [vmem:[%s3706_s18 + $0x2bc] ss:$12 sps:$4 sm:$0xff]  }
  0xc6   : > { %1680 = vmatpush1.bf16.msra.mxu0 %v2996_v46  ;;  %2814 = vmatprep.subr.bf16.mxu1 %v3019_v53  ;;  %v3822_v46 = vcombine.low %v675_v31, %v675_v31  ;;  %v3088_v53 = vld [vmem:[%s3706_s18 + $0x2b8] ss:$12 sps:$4 sm:$0xff]  }
  0xc7   : > { %1681 = vmatprep.subr.bf16.mxu0 %v2998_v47  ;;  %v3072_v47 = vld [vmem:[%s3706_s18 + $0x270] ss:$12 sps:$4 sm:$0xff]  }
  0xc9   : > { %2815 = vmatpush3.bf16.msra.mxu1 %v3023_v55  ;;  %v3091_v55 = vld [vmem:[%s3706_s18 + $0x2d0] ss:$12 sps:$4 sm:$0xff]  }
  0xca   : > { %1682 = vmatpush1.bf16.msra.mxu0 %v3001_v50  ;;  %2816 = vmatprep.subr.bf16.mxu1 %v3024_v57  ;;  %v3084_v50 = vld [vmem:[%s3706_s18 + $0x2a4] ss:$12 sps:$4 sm:$0xff]   ;;  %v3094_v57 = vld [vmem:[%s3706_s18 + $0x2e8] ss:$12 sps:$4 sm:$0xff]  }
  0xcb   : > { %1683 = vmatprep.subr.bf16.mxu0 %v3005_v51  ;;  %v3082_v51 = vld [vmem:[%s3706_s18 + $0x2a0] ss:$12 sps:$4 sm:$0xff]  }
  0xcd   : > { %2817 = vmatpush3.bf16.msra.mxu1 %v3028_v60  ;;  %v3102_v60 = vld [vmem:[%s3706_s18 + $0x31c] ss:$12 sps:$4 sm:$0xff]  }
  0xce   : > { %1684 = vmatpush1.bf16.msra.mxu0 %v3008_v54  ;;  %2818 = vmatprep.subr.bf16.mxu1 %v3029_v61  ;;  %v3093_v54 = vld [vmem:[%s3706_s18 + $0x2d4] ss:$12 sps:$4 sm:$0xff]   ;;  %v3100_v61 = vld [vmem:[%s3706_s18 + $0x318] ss:$12 sps:$4 sm:$0xff]  }
  0xcf   : > { %1685 = vmatprep.subr.bf16.mxu0 %v3010_v56  ;;  %v3096_v56 = vld [vmem:[%s3706_s18 + $0x2ec] ss:$12 sps:$4 sm:$0xff]  }
  0xd1   : > { %2819 = vmatpush3.bf16.msra.mxu1 %v3033_v0  ;;  %v3108_v0 = vld [vmem:[%s3706_s18 + $0x34c] ss:$12 sps:$4 sm:$0xff]  }
  0xd2   : > { %1686 = vmatpush1.bf16.msra.mxu0 %v3013_v58  ;;  %2820 = vmatprep.subr.bf16.mxu1 %v3034_v1  ;;  %v3099_v58 = vld [vmem:[%s3706_s18 + $0x304] ss:$12 sps:$4 sm:$0xff]   ;;  %v3106_v1 = vld [vmem:[%s3706_s18 + $0x348] ss:$12 sps:$4 sm:$0xff]  }
  0xd3   : > { %1687 = vmatprep.subr.bf16.mxu0 %v3015_v59  ;;  %v3097_v59 = vld [vmem:[%s3706_s18 + $0x300] ss:$12 sps:$4 sm:$0xff]  }
  0xd5   : > { %2821 = vmatpush3.bf16.msra.mxu1 %v3038_v6  ;;  %v3117_v6 = vld [vmem:[%s3706_s18 + $0x394] ss:$12 sps:$4 sm:$0xff]  }
  0xd6   : > { %1688 = vmatpush1.bf16.msra.mxu0 %v3018_v62  ;;  %2822 = vmatprep.subr.bf16.mxu1 %v3039_v7  ;;  %v3105_v62 = vld [vmem:[%s3706_s18 + $0x334] ss:$12 sps:$4 sm:$0xff]   ;;  %v3115_v7 = vld [vmem:[%s3706_s18 + $0x390] ss:$12 sps:$4 sm:$0xff]  }
  0xd7   : > { %1698 = vmatprep.subr.bf16.mxu0 %v3022_v63  ;;  %v3103_v63 = vld [vmem:[%s3706_s18 + $0x330] ss:$12 sps:$4 sm:$0xff]  }
  0xd9   : > { %1690 = vmatmul.mubr.bf16.vlgmr.msra.gmra.mrb[0].mxu0 %v2603_v43  ;;  %2823 = vmatpush3.bf16.msra.mxu1 %v3043_v10  ;;  %v3067_v43 = vld [vmem:[%s3706_s18 + $0x258] ss:$12 sps:$4 sm:$0xff]  }
  0xda   : > { %1699 = vmatpush1.bf16.msra.mxu0 %v3020_v4  ;;  %1730 = vmatprep.mubr.bf16.mxu0 %v2606_v3  ;;  %v3109_v3 = vld [vmem:[%s3706_s18 + $0x360] ss:$12 sps:$4 sm:$0xff]   ;;  %v3114_v4 = vld [vmem:[%s3706_s18 + $0x37c] ss:$12 sps:$4 sm:$0xff]   ;;  %v3123_v10 = vld [vmem:[%s3706_s18 + $0x3c4] ss:$12 sps:$4 sm:$0xff]  }
  0xdb   : > { %1700 = vmatprep.subr.bf16.mxu0 %v3027_v5  ;;  %2830 = vmatprep.subr.bf16.mxu1 %v3046_v11  ;;  %v3112_v5 = vld [vmem:[%s3706_s18 + $0x378] ss:$12 sps:$4 sm:$0xff]   ;;  %v3121_v11 = vld [vmem:[%s3706_s18 + $0x3c0] ss:$12 sps:$4 sm:$0xff]  }
  0xdc   : > { %1853 = vmatmul.mubr.bf16.vlgmr.msra.gmra.mrb[4].mxu1 %v3786_v13 }
  0xdd   : > { %2831 = vmatpush3.bf16.msra.mxu1 %v3050_v14  ;;  %1892 = vmatprep.mubr.bf16.mxu1 %v2608_v34  ;;  %v3129_v14 = vld [vmem:[%s3706_s18 + $0x3f4] ss:$12 sps:$4 sm:$0xff]  }
  0xde   : > { %1701 = vmatpush1.bf16.msra.mxu0 %v3025_v8  ;;  %2832 = vmatprep.subr.bf16.mxu1 %v3051_v16  ;;  %v3120_v8 = vld [vmem:[%s3706_s18 + $0x3ac] ss:$12 sps:$4 sm:$0xff]  }
  0xdf   : > { %1702 = vmatprep.subr.bf16.mxu0 %v3032_v9  ;;  %v3118_v9 = vld [vmem:[%s3706_s18 + $0x3a8] ss:$12 sps:$4 sm:$0xff]   ;;  %v3132_v16 = vld [vmem:[%s3706_s18 + $0x40c] ss:$12 sps:$4 sm:$0xff]  }
  0xe1   : > { %2833 = vmatpush3.bf16.msra.mxu1 %v3055_v19  ;;  %v3133_v19 = vld [vmem:[%s3706_s18 + $0x420] ss:$12 sps:$4 sm:$0xff]  }
  0xe2   : > { %1703 = vmatpush1.bf16.msra.mxu0 %v3030_v12  ;;  %2834 = vmatprep.subr.bf16.mxu1 %v3056_v20  ;;  %v3126_v12 = vld [vmem:[%s3706_s18 + $0x3dc] ss:$12 sps:$4 sm:$0xff]  }
  0xe3   : > { %1704 = vmatprep.subr.bf16.mxu0 %v3037_v15  ;;  %v3127_v15 = vld [vmem:[%s3706_s18 + $0x3f0] ss:$12 sps:$4 sm:$0xff]  }
  0xe4   : > { %v3138_v20 = vld [vmem:[%s3706_s18 + $0x43c] ss:$12 sps:$4 sm:$0xff]  }
  0xe5   : > { %2835 = vmatpush3.bf16.msra.mxu1 %v3060_v23  ;;  %v3139_v23 = vld [vmem:[%s3706_s18 + $0x450] ss:$12 sps:$4 sm:$0xff]  }
  0xe6   : > { %1705 = vmatpush1.bf16.msra.mxu0 %v3035_v17  ;;  %2836 = vmatprep.subr.bf16.mxu1 %v3061_v24  ;;  %v3130_v17 = vld [vmem:[%s3706_s18 + $0x408] ss:$12 sps:$4 sm:$0xff]   ;;  %v3144_v24 = vld [vmem:[%s3706_s18 + $0x46c] ss:$12 sps:$4 sm:$0xff]  }
  0xe7   : > { %1706 = vmatprep.subr.bf16.mxu0 %v3042_v18  ;;  %v3135_v18 = vld [vmem:[%s3706_s18 + $0x424] ss:$12 sps:$4 sm:$0xff]  }
  0xe9   : > { %2837 = vmatpush3.bf16.msra.mxu1 %v3065_v27 }
  0xea   : > { %1707 = vmatpush1.bf16.msra.mxu0 %v3040_v21  ;;  %2838 = vmatprep.subr.bf16.mxu1 %v3066_v28  ;;  %v3136_v21 = vld [vmem:[%s3706_s18 + $0x438] ss:$12 sps:$4 sm:$0xff]  }
  0xeb   : > { %1708 = vmatprep.subr.bf16.mxu0 %v3049_v22  ;;  %v3141_v22 = vld [vmem:[%s3706_s18 + $0x454] ss:$12 sps:$4 sm:$0xff]  }
  0xed   : > { %2839 = vmatpush3.bf16.msra.mxu1 %v3070_v30 }
  0xee   : > { %1709 = vmatpush1.bf16.msra.mxu0 %v3047_v25  ;;  %2840 = vmatprep.subr.bf16.mxu1 %v3071_v33  ;;  %v3142_v25 = vld [vmem:[%s3706_s18 + $0x468] ss:$12 sps:$4 sm:$0xff]  }
  0xef   : > { %1710 = vmatprep.subr.bf16.mxu0 %v3054_v26 }
  0xf1   : > { %2841 = vmatpush3.bf16.msra.mxu1 %v3075_v36 }
  0xf2   : > { %1711 = vmatpush1.bf16.msra.mxu0 %v3052_v29  ;;  %2842 = vmatprep.subr.bf16.mxu1 %v3076_v38  ;;  %v3146_v38 = vld [vmem:[%s3704_s23] sm:$0xff]  }
  0xf3   : > { %1712 = vmatprep.subr.bf16.mxu0 %v3059_v32 }
  0xf5   : > { %2843 = vmatpush3.bf16.msra.mxu1 %v3080_v40  ;;  %v3148_v40 = vld [vmem:[%s3704_s23 + $0x8] sm:$0xff]  }
  0xf6   : > { %1713 = vmatpush1.bf16.msra.mxu0 %v3057_v35  ;;  %2844 = vmatprep.subr.bf16.mxu1 %v3081_v42  ;;  %v3150_v42 = vld [vmem:[%s3704_s23 + $0x10] sm:$0xff]  }
  0xf7   : > { %1714 = vmatprep.subr.bf16.mxu0 %v3064_v37  ;;  %v3145_v37 = vld [vmem:[%s3704_s23 + $0x40] sm:$0xff]  }
  0xf9   : > { %2845 = vmatpush3.bf16.msra.mxu1 %v3085_v44  ;;  %v3152_v44 = vld [vmem:[%s3704_s23 + $0x18] sm:$0xff]  }
  0xfa   : > { %1715 = vmatpush1.bf16.msra.mxu0 %v3062_v39  ;;  %2852 = vmatprep.subr.bf16.mxu1 %v3145_v37  ;;  %v3147_v39 = vld [vmem:[%s3704_s23 + $0x48] sm:$0xff]  }
  0xfb   : > { %1716 = vmatprep.subr.bf16.mxu0 %v3069_v41  ;;  %v3149_v41 = vld [vmem:[%s3704_s23 + $0x50] sm:$0xff]  }
  0xfc   : > { %1893 = vmatmul.mubr.bf16.vlgmr.msra.gmra.mrb[8].mxu1 %v3822_v46 }
  0xfd   : > { %2853 = vmatpush3.bf16.msra.mxu1 %v3146_v38 }
  0xfe   : > { %1717 = vmatpush1.bf16.msra.mxu0 %v3067_v43  ;;  %2854 = vmatprep.subr.bf16.mxu1 %v3147_v39  ;;  %v3151_v43 = vld [vmem:[%s3704_s23 + $0x58] sm:$0xff]  }
  0xff   : > { %1718 = vmatprep.subr.bf16.mxu0 %v3074_v45  ;;  %v3153_v45 = vld [vmem:[%s3704_s23 + $0x60] sm:$0xff]  }
 0x101   : > { %2855 = vmatpush3.bf16.msra.mxu1 %v3148_v40 }
 0x102   : > { %1719 = vmatpush1.bf16.msra.mxu0 %v3072_v47  ;;  %2856 = vmatprep.subr.bf16.mxu1 %v3149_v41  ;;  %v3154_v47 = vld [vmem:[%s3704_s23 + $0x20] sm:$0xff]  }
 0x103   : > { %1720 = vmatprep.subr.bf16.mxu0 %v3079_v48 }
 0x105   : > { %2857 = vmatpush3.bf16.msra.mxu1 %v3150_v42 }
 0x106   : > { %1721 = vmatpush1.bf16.msra.mxu0 %v3077_v49  ;;  %2858 = vmatprep.subr.bf16.mxu1 %v3151_v43 }
 0x107   : > { %1722 = vmatprep.subr.bf16.mxu0 %v3084_v50 }
 0x109   : > { %2859 = vmatpush3.bf16.msra.mxu1 %v3152_v44  ;;  %v1960_v44 = vlaneseq }
 0x10a   : > { %1723 = vmatpush1.bf16.msra.mxu0 %v3082_v51  ;;  %2860 = vmatprep.subr.bf16.mxu1 %v3153_v45 }
 0x10b   : > { %1724 = vmatprep.subr.bf16.mxu0 %v3090_v52  ;;  %v3155_v52 = vld [vmem:[%s3704_s23 + $0x68] sm:$0xff]  }
 0x10d   : > { %2861 = vmatpush3.bf16.msra.mxu1 %v3154_v47  ;;  %v1961_v47 = vshrl.u32 %v1960_v44, 7 }
 0x10e   : > { %1725 = vmatpush1.bf16.msra.mxu0 %v3088_v53  ;;  %2862 = vmatprep.subr.bf16.mxu1 %v3155_v52  ;;  %v1958_v52 = vld [vmem:[%s3699_s15] ss:$2 sm:$0x7] }
 0x10f   : > { %1726 = vmatprep.subr.bf16.mxu0 %v3093_v54  ;;  %v3156_v54 = vld [vmem:[%s3704_s23 + $0x28] sm:$0xff]  }
 0x111   : > { %2863 = vmatpush3.bf16.msra.mxu1 %v3156_v54 }
 0x112   : > { %1727 = vmatpush1.bf16.msra.mxu0 %v3091_v55  ;;  %v3157_v55 = vld [vmem:[%s3704_s23 + $0x70] sm:$0xff]  }
 0x113   : > { %1728 = vmatprep.subr.bf16.mxu0 %v3096_v56  ;;  %v3158_v56 = vld [vmem:[%s3704_s23 + $0x30] sm:$0xff]   ;;  %2864 = vmatprep.subr.bf16.mxu1 %v3157_v55 }
 0x115   : > { %2865 = vmatpush3.bf16.msra.mxu1 %v3158_v56  ;;  %v2753_v56 = vld [vmem:[%s3699_s15 + $0x1] ss:$2 sm:$0x7] }
 0x116   : > { %1729 = vmatpush1.bf16.msra.mxu0 %v3094_v57  ;;  %v3159_v57 = vld [vmem:[%s3704_s23 + $0x78] sm:$0xff]  }
 0x117   : > { %1739 = vmatprep.subr.bf16.mxu0 %v3099_v58  ;;  %v3160_v58 = vld [vmem:[%s3704_s23 + $0x38] sm:$0xff]   ;;  %2866 = vmatprep.subr.bf16.mxu1 %v3159_v57 }
 0x119   : > { %1731 = vmatmul.mubr.bf16.vlgmr.msra.gmra.mrb[0].mxu0 %v3786_v13  ;;  %v3124_v13 = vld [vmem:[%s3706_s18 + $0x3d8] ss:$12 sps:$4 sm:$0xff]   ;;  %2867 = vmatpush3.bf16.msra.mxu1 %v3160_v58 }
 0x11a   : > { %1740 = vmatpush1.bf16.msra.mxu0 %v3097_v59  ;;  %1771 = vmatprep.mubr.bf16.mxu0 %v2608_v34  ;;  %v3234_v59 = vmov 0.0  }
 0x11b   : > { %1741 = vmatprep.subr.bf16.mxu0 %v3102_v60  ;;  %2883 = vmatprep.subr.bf16.mxu1 %v3234_v59 }
 0x11e   : > { %1742 = vmatpush1.bf16.msra.mxu0 %v3100_v61 }
 0x11f   : > { %1743 = vmatprep.subr.bf16.mxu0 %v3105_v62 }
 0x122   : > { %1744 = vmatpush1.bf16.msra.mxu0 %v3103_v63 }
 0x123   : > { %1745 = vmatprep.subr.bf16.mxu0 %v3108_v0 }
 0x126   : > { %1746 = vmatpush1.bf16.msra.mxu0 %v3106_v1 }
 0x127   : > { %1747 = vmatprep.subr.bf16.mxu0 %v3111_v2 }
 0x12a   : > { %1748 = vmatpush1.bf16.msra.mxu0 %v3109_v3 }
 0x12b   : > { %1749 = vmatprep.subr.bf16.mxu0 %v3114_v4 }
 0x12e   : > { %1750 = vmatpush1.bf16.msra.mxu0 %v3112_v5 }
 0x12f   : > { %1751 = vmatprep.subr.bf16.mxu0 %v3117_v6 }
 0x132   : > { %1752 = vmatpush1.bf16.msra.mxu0 %v3115_v7 }
 0x133   : > { %1753 = vmatprep.subr.bf16.mxu0 %v3120_v8 }
 0x136   : > { %1754 = vmatpush1.bf16.msra.mxu0 %v3118_v9 }
 0x137   : > { %1755 = vmatprep.subr.bf16.mxu0 %v3123_v10 }
 0x13a   : > { %1756 = vmatpush1.bf16.msra.mxu0 %v3121_v11 }
 0x13b   : > { %1757 = vmatprep.subr.bf16.mxu0 %v3126_v12 }
 0x13e   : > { %1758 = vmatpush1.bf16.msra.mxu0 %v3124_v13 }
 0x13f   : > { %1759 = vmatprep.subr.bf16.mxu0 %v3129_v14 }
 0x142   : > { %1760 = vmatpush1.bf16.msra.mxu0 %v3127_v15 }
 0x143   : > { %1761 = vmatprep.subr.bf16.mxu0 %v3132_v16 }
 0x146   : > { %1762 = vmatpush1.bf16.msra.mxu0 %v3130_v17 }
 0x147   : > { %1763 = vmatprep.subr.bf16.mxu0 %v3135_v18 }
 0x14a   : > { %1764 = vmatpush1.bf16.msra.mxu0 %v3133_v19 }
 0x14b   : > { %1765 = vmatprep.subr.bf16.mxu0 %v3138_v20 }
 0x14e   : > { %1766 = vmatpush1.bf16.msra.mxu0 %v3136_v21 }
 0x14f   : > { %1767 = vmatprep.subr.bf16.mxu0 %v3141_v22 }
 0x152   : > { %1768 = vmatpush1.bf16.msra.mxu0 %v3139_v23 }
 0x153   : > { %1769 = vmatprep.subr.bf16.mxu0 %v3144_v24 }
 0x156   : > { %1770 = vmatpush1.bf16.msra.mxu0 %v3142_v25 }
 0x159   : > { %1772 = vmatmul.mubr.bf16.vlgmr.msra.gmra.mrb[0].mxu0 %v3822_v46 }
 0x18f   : > { %v2802_v26 = vpop.f32.mrb[0].mxu1 }
 0x190   : > { %v2803_v27 = vpop.f32.mrb[1].mxu1 }
 0x191   : > { %v2804_v28 = vadd.f32 %v2803_v27, %v2802_v26  ;;  %v2805_v29 = vpop.f32.mrb[2].mxu1 }
 0x192   : > { %v2806_v30 = vpop.f32.mrb[3].mxu1 }
 0x1af   : > { %v2824_v31 = vpop.f32.mrb[4].mxu1 }
 0x1b0   : > { %v2825_v32 = vpop.f32.mrb[5].mxu1 }
 0x1b1   : > { %v2826_v33 = vadd.f32 %v2825_v32, %v2824_v31  ;;  %v2827_v34 = vpop.f32.mrb[6].mxu1 }
 0x1b2   : > { %v2828_v35 = vpop.f32.mrb[7].mxu1 }
 0x1b3   : > { %v1855_v36 = vadd.f32 %v2826_v33, %v2804_v28 }
 0x1cf   : > { %v2846_v46 = vpop.f32.mrb[8].mxu1 }
 0x1d0   : > { %v2847_v48 = vpop.f32.mrb[9].mxu1 }
 0x1d1   : > { %v2848_v49 = vadd.f32 %v2847_v48, %v2846_v46  ;;  %v2849_v50 = vpop.f32.mrb[10].mxu1 }
 0x1d2   : > { %v2850_v51 = vpop.f32.mrb[11].mxu1  ;;  %v1966_v50 = vsub.s32 1, %v1961_v47 }
 0x1d3   : > { %v1895_v53 = vadd.f32 %v2848_v49, %v1855_v36  ;;  %v1962_v49 = vsub.s32 0, %v1961_v47 }
 0x1d4   : > { %v1967_v55 = vrot.slane %v1958_v52, %v1966_v50 }
 0x1d5   : > { %v1912_v60 = vrot.slane %v1895_v53, 4 }
 0x1d7   : > { %v1913_v61 = vadd.f32 %v1912_v60, %v1895_v53  ;;  %v1984_v60 = vrot.slane %v2753_v56, %v1962_v49 }
 0x1d9   : > { %v1914_v62 = vrot.slane %v1913_v61, 2 }
 0x1db   : > { %v1915_v4 = vadd.f32 %v1914_v62, %v1913_v61 }
 0x1dd   : > { %v1916_v10 = vrot.slane %v1915_v4, 1 }
 0x1df   : > { %v1917_v15 = vadd.f32 %v1916_v10, %v1915_v4 }
 0x1e1   : > { %v1921_v20 = vmul.f32 0.125, %v1917_v15 }
 0x1e3   : > { %v3887_v25 = vsub.f32 %v1895_v53, %v1921_v20  ;;  %v1963_v53 = vrot.slane %v1958_v52, %v1962_v49 }
 0x1e5   : > { %v1927_v30 = vmul.f32 %v3887_v25, %v3887_v25 }
 0x1e7   : > { %v1940_v35 = vrot.slane %v1927_v30, 4 }
 0x1e9   : > { %v1941_v40 = vadd.f32 %v1940_v35, %v1927_v30 }
 0x1eb   : > { %v1942_v46 = vrot.slane %v1941_v40, 2 }
 0x1ed   : > { %v1943_v48 = vadd.f32 %v1942_v46, %v1941_v40 }
 0x1ef   : > { %v1944_v51 = vrot.slane %v1943_v48, 1 }
 0x1f1   : > { %v1945_v61 = vadd.f32 %v1944_v51, %v1943_v48 }
 0x22c   : > { %v1773_v63 = vpop.f32.mrb[0].mxu0 }
 0x22d   : > { %v1900_v0 = vrot.slane %v1773_v63, 4  ;;  %v1775_v1 = vpop.f32.mrb[1].mxu0 }
 0x22e   : > { %v1906_v2 = vrot.slane %v1775_v1, 4  ;;  %v1777_v3 = vpop.f32.mrb[2].mxu0 }
 0x22f   : > { %v1901_v5 = vadd.f32 %v1900_v0, %v1773_v63  ;;  %v1778_v6 = vpop.f32.mrb[3].mxu0  ;;  %v1948_v3 = vmul.f32 0.125, %v1945_v61 }
 0x230   : > { %v1907_v7 = vadd.f32 %v1906_v2, %v1775_v1 }
 0x231   : > { %v1902_v8 = vrot.slane %v1901_v5, 2 }
 0x232   : > { %v1908_v9 = vrot.slane %v1907_v7, 2 }
 0x233   : > { %v1903_v11 = vadd.f32 %v1902_v8, %v1901_v5 }
 0x234   : > { %v1909_v12 = vadd.f32 %v1908_v9, %v1907_v7  ;;  %v1951_v7 = vadd.f32 1e-05, %v1948_v3  ;;  %v3161_v9 = vld [vmem:[%s3704_s23 + $0x80] sm:$0xff]  }
 0x235   : > { %v1904_v13 = vrot.slane %v1903_v11, 1 }
 0x236   : > { %v1910_v14 = vrot.slane %v1909_v12, 1 }
 0x237   : > { %v1905_v16 = vadd.f32 %v1904_v13, %v1903_v11  ;;  %v3162_v11 = vld [vmem:[%s3704_s23 + $0x88] sm:$0xff]   ;;  %v3164_v13 = vld [vmem:[%s3704_s23 + $0x98] sm:$0xff]  }
 0x238   : > { %v1911_v17 = vadd.f32 %v1910_v14, %v1909_v12  ;;  %v3163_v12 = vld [vmem:[%s3704_s23 + $0x90] sm:$0xff]   ;;  %v1970_v14 = vsub.s32 2, %v1961_v47 }
 0x239   : > { %v1919_v18 = vmul.f32 0.125, %v1905_v16  ;;  %v3165_v16 = vld [vmem:[%s3704_s23 + $0xa0] sm:$0xff]  }
 0x23a   : > { %v1920_v19 = vmul.f32 0.125, %v1911_v17 }
 0x23b   : > { %v1922_v21 = vsub.f32 %v1773_v63, %v1919_v18  ;;  %v1988_v63 = vrot.slane %v2753_v56, %v1966_v50  ;;  %v1971_v18 = vrot.slane %v1958_v52, %v1970_v14 }
 0x23c   : > { %v1923_v22 = vsub.f32 %v1775_v1, %v1920_v19  ;;  %v3166_v19 = vld [vmem:[%s3704_s23 + $0xa8] sm:$0xff]  }
 0x23d   : > { %v1925_v23 = vmul.f32 %v1922_v21, %v1922_v21 }
 0x23e   : > { %v1926_v24 = vmul.f32 %v1923_v22, %v1923_v22 }
 0x23f   : > { %v1928_v26 = vrot.slane %v1925_v23, 4 }
 0x240   : > { %v1934_v27 = vrot.slane %v1926_v24, 4 }
 0x241   : > { %v1929_v28 = vadd.f32 %v1928_v26, %v1925_v23 }
 0x242   : > { %v1935_v29 = vadd.f32 %v1934_v27, %v1926_v24  ;;  %v3168_v24 = vld [vmem:[%s3704_s23 + $0xb8] sm:$0xff]  }
 0x243   : > { %v1930_v31 = vrot.slane %v1929_v28, 2 }
 0x244   : > { %v1936_v32 = vrot.slane %v1935_v29, 2 }
 0x245   : > { %v1931_v33 = vadd.f32 %v1930_v31, %v1929_v28 }
 0x246   : > { %v1937_v34 = vadd.f32 %v1936_v32, %v1935_v29  ;;  %v2002_v32 = vld [vmem:[#allocation3] sm:$0xff] }
 0x247   : > { %v1932_v36 = vrot.slane %v1931_v33, 1 }
 0x248   : > { %v1938_v37 = vrot.slane %v1937_v34, 1 }
 0x249   : > { %v1933_v38 = vadd.f32 %v1932_v36, %v1931_v33 }
 0x24a   : > { %v1939_v39 = vadd.f32 %v1938_v37, %v1937_v34 }
 0x24b   : > { %v1946_v41 = vmul.f32 0.125, %v1933_v38 }
 0x24c   : > { %v1947_v42 = vmul.f32 0.125, %v1939_v39 }
 0x24d   : > { %v1949_v43 = vadd.f32 1e-05, %v1946_v41 }
 0x24e   : > { %v1950_v45 = vadd.f32 1e-05, %v1947_v42 }
 0x24f   : > { %3169 = vrsqrt.f32 %v1949_v43 }
 0x250   : > { %3171 = vrsqrt.f32 %v1950_v45 }
 0x251   : > { %3173 = vrsqrt.f32 %v1951_v7 }
 0x259   : > { %v3170_v54 = vpop.eup %3169 }
 0x25a   : > { %v3172_v57 = vpop.eup %3171  ;;  %v1955_v58 = vmul.f32 %v3170_v54, %v1922_v21  ;;  %v1992_v21 = vrot.slane %v2753_v56, %v1970_v14 }
 0x25b   : > { %v1956_v62 = vmul.f32 %v3172_v57, %v1923_v22  ;;  %v3174_v15 = vpop.eup %3173  ;;  %v3167_v22 = vld [vmem:[%s3704_s23 + $0xb0] sm:$0xff]   ;;  %v2779_v57 = vld [vmem:[%s3954_s4] ss:$0 sm:$0xff] (!%p2778_p11) }
 0x25c   : > { %v1975_v0 = vmul.f32 %v1963_v53, %v1955_v58  ;;  %v1957_v17 = vmul.f32 %v3174_v15, %v3887_v25 }
 0x25d   : > { %v1976_v1 = vmul.f32 %v1967_v55, %v1956_v62 }
 0x25e   : > { %v1996_v2 = vadd.f32 %v1984_v60, %v1975_v0  ;;  %v1977_v20 = vmul.f32 %v1971_v18, %v1957_v17  ;;  %v2780_v60 = vld [vmem:[%s3954_s4 + $0x1] ss:$0 sm:$0xff] (!%p2778_p11) }
 0x25f   : > { %v1997_v4 = vadd.f32 %v1988_v63, %v1976_v1 }
 0x260   : > { %v1999_v5 = vmax.f32 %v1996_v2, 0.0  ;;  %v1998_v23 = vadd.f32 %v1992_v21, %v1977_v20 }
 0x261   : > { %v2000_v6 = vmax.f32 %v1997_v4, 0.0 }
 0x262   : > { %v2003_v10 = vpack.c.bf16 %v1999_v5, %v1999_v5  ;;  %v2001_v26 = vmax.f32 %v1998_v23, 0.0 }
 0x263   : > { %v2004_v8 = vpack.c.bf16 %v2000_v6, %v2000_v6 }
 0x264   : > { %v2005_v25 = vpack.c.bf16 %v2001_v26, %v2001_v26 }
 0x265   : > { %2230 = vmatprep.mubr.bf16.mxu1 %v2004_v8 }
 0x266   : > { %2231 = vmatmul.mubr.bf16.vlgmr.msra.gmra.mrb[12].mxu1 %v2003_v10 }
 0x267   : > { %2884 = vmatpush3.bf16.msra.mxu1 %v3161_v9  ;;  %2899 = vmatprep.mubr.msk.bf16.mxu1 %vm3235_vm0, %v3234_v59 }
 0x268   : > { %2885 = vmatprep.subr.bf16.mxu1 %v3234_v59 }
 0x26b   : > { %2886 = vmatpush3.bf16.msra.mxu1 %v3162_v11 }
 0x26c   : > { %2887 = vmatprep.subr.bf16.mxu1 %v3234_v59 }
 0x26f   : > { %2888 = vmatpush3.bf16.msra.mxu1 %v3163_v12 }
 0x270   : > { %2889 = vmatprep.subr.bf16.mxu1 %v3234_v59 }
 0x273   : > { %2890 = vmatpush3.bf16.msra.mxu1 %v3164_v13 }
 0x274   : > { %2891 = vmatprep.subr.bf16.mxu1 %v3234_v59 }
 0x277   : > { %2892 = vmatpush3.bf16.msra.mxu1 %v3165_v16 }
 0x278   : > { %2893 = vmatprep.subr.bf16.mxu1 %v3234_v59 }
 0x27b   : > { %2894 = vmatpush3.bf16.msra.mxu1 %v3166_v19 }
 0x27c   : > { %2895 = vmatprep.subr.bf16.mxu1 %v3234_v59 }
 0x27f   : > { %2896 = vmatpush3.bf16.msra.mxu1 %v3167_v22 }
 0x280   : > { %2897 = vmatprep.subr.bf16.mxu1 %v3234_v59 }
 0x283   : > { %2898 = vmatpush3.bf16.msra.mxu1 %v3168_v24 }
 0x286   : > { %2900 = vmatmul.mubr.bf16.vlgmr.msra.gmra.mrb[16].mxu1 %v2005_v25 }
 0x339   : > { %v2868_v27 = vpop.f32.mrb[12].mxu1 }
 0x33a   : > { %v2869_v28 = vpop.f32.mrb[13].mxu1 }
 0x33b   : > { %v2870_v29 = vadd.f32 %v2869_v28, %v2868_v27  ;;  %v2871_v30 = vpop.f32.mrb[14].mxu1 }
 0x33c   : > { %v2872_v31 = vpop.f32.mrb[15].mxu1 }
 0x358   : > { %2283 = sbr.rel (%p2778_p11) target bundleno = 1081 (0x439), region = 74 }
 0x359   : > { %v2272_v33 = vpop.f32.mrb[16].mxu1 }
 0x35a   : > { %v2273_v34 = vadd.f32 %v2870_v29, %v2272_v33  ;;  %v2901_v35 = vpop.f32.mrb[17].mxu1 }
 0x35b   : > { %v2275_v36 = vpop.f32.mrb[18].mxu1 }
 0x35c   : > { %v2278_v37 = vadd.f32 %v2273_v34, %v2002_v32  ;;  %v2902_v38 = vpop.f32.mrb[19].mxu1 }
 0x35e   : > { %2279 = vst [vmem:[#allocation3] sm:$0xff] %v2278_v37 }
 0x365   : > { %v2284_v59 = vld [vmem:[#allocation3] sm:$0xff] }
 0x366   : > { %v2285_v39 = vrot.slane %v2284_v59, 4 }
 0x368   : > { %v2286_v40 = vadd.f32 %v2285_v39, %v2284_v59 }
 0x36a   : > { %v2287_v41 = vrot.slane %v2286_v40, 2 }
 0x36c   : > { %v2288_v42 = vadd.f32 %v2287_v41, %v2286_v40 }
 0x36e   : > { %v2289_v43 = vrot.slane %v2288_v42, 1 }
 0x370   : > { %v2290_v44 = vadd.f32 %v2289_v43, %v2288_v42 }
 0x372   : > { %v2291_v45 = vmul.f32 0.125, %v2290_v44 }
 0x374   : > { %v2292_v46 = vsub.f32 %v2284_v59, %v2291_v45 }
 0x376   : > { %v2293_v47 = vmul.f32 %v2292_v46, %v2292_v46 }
 0x378   : > { %v2294_v48 = vrot.slane %v2293_v47, 4 }
 0x37a   : > { %v2295_v49 = vadd.f32 %v2294_v48, %v2293_v47 }
 0x37c   : > { %v2296_v50 = vrot.slane %v2295_v49, 2 }
 0x37e   : > { %v2297_v51 = vadd.f32 %v2296_v50, %v2295_v49 }
 0x380   : > { %v2298_v52 = vrot.slane %v2297_v51, 1 }
 0x382   : > { %v2299_v53 = vadd.f32 %v2298_v52, %v2297_v51 }
 0x384   : > { %v2300_v54 = vmul.f32 0.125, %v2299_v53 }
 0x386   : > { %v2301_v55 = vadd.f32 1e-05, %v2300_v54 }
 0x388   : > { %3175 = vrsqrt.f32 %v2301_v55 }
 0x392   : > { %v3176_v56 = vpop.eup %3175 }
 0x393   : > { %v2303_v58 = vmul.f32 %v3176_v56, %v2292_v46 }
 0x395   : > { %v2309_v61 = vmul.f32 %v2779_v57, %v2303_v58 }
 0x397   : > { %v2315_v62 = vadd.f32 %v2780_v60, %v2309_v61 }
 0x399   : > { %v2316_v63 = vmul.f32 %v2315_v62, %v2315_v62 }
 0x39b   : > { %2317 = vadd.xlane.f32.xlu0 %v2316_v63 }
 0x428   : > { %v2318_v0 = vpop.xlane.xlu0 %2317 }
 0x429   : > { %v2319_v1 = vmax.f32 %v2318_v0, 1e-24 }
 0x42b   : > { %3177 = vrsqrt.f32 %v2319_v1 }
 0x435   : > { %v3178_v2 = vpop.eup %3177 }
 0x436   : > { %v2321_v3 = vmul.f32 %v3178_v2, %v2315_v62 }
 0x438   : > { %2322 = vst [vmem:[#allocation3] sm:$0xff] %v2321_v3 }
 0x439 PF: > { %p2917_p12 = scmp.eq.s32.totalorder %s3283_s21, 1  ;;  %s3236_s10 = smov [#allocation3]  }
 0x43a   : > { %s2330_s11 = sshll.u32 %s3236_s10, 4  ;;  %s2331_s11 = int_to_ptr.vmem [resolvable:$true] %s2330_s11 }
 0x43b   : > { %s3179_s12 = scalar_lea.vmem %s2331_s11, 128  ;;  %p3186_p2 = scmp.lt.s32.totalorder %s2331_s11, %s2331_s11 }
 0x43c   : > { %p3180_p13 = scmp.ne.s32.totalorder %s2331_s11, %s3179_s12  ;;  %p3187_p3 = scmp.lt.s32.totalorder %s3179_s12, %s3179_s12 }
 0x43e   : > { %p3181_p0 = pnand %p3180_p13, %p2917_p12  ;;  %p3188_p4 = por %p3187_p3, %p3186_p2 }
 0x440   : > { %p3182_p1 = pneg %p3181_p0 }
 0x442   : > { %p3189_p5 = pnand %p3188_p4, %p3182_p1 }
 0x444   : > { %3192 = shalt.err (!%p3189_p5)
}
 0x445   : > { %s3193_s15 = scalar_lea.hbm %s3955_s5, 128 }
 0x446   : > { %p3194_p6 = scmp.ne.s32.totalorder %s3955_s5, %s3193_s15  ;;  %p3199_p9 = scmp.lt.u32.totalorder %s3193_s15, %s3955_s5 }
 0x448   : > { %p3195_p7 = pnand %p3194_p6, %p2917_p12 }
 0x44a   : > { %p3196_p8 = pneg %p3195_p7 }
 0x44c   : > { %p3201_p10 = pnand %p3199_p9, %p3196_p8 }
 0x44e   : > { %3204 = shalt.err (!%p3201_p10)
}
 0x44f   : > { %2914 = dma.vmem_to_hbm [thread:$0]  (%p2917_p12), %s2331_s11, 128, %s3955_s5, [#allocation4]  }
 0x450   : > { %3218 = dma.done.wait (%p2917_p12), [#allocation4], 128  }
 0x451   : > { %3220 = vsyncadd (%p2917_p12), [#allocation4], 4294967168 }
 0x452 PF: > { %p13_p11 = scmp.ge.s32.totalorder %s3286_s22, 4   ;;  %s3956_s18 = smov %s3227_s19 }
 0x453   : > { %s3957_s19 = smov %s3295_s25  ;;  %s3958_s20 = smov %s3286_s22 }
 0x454   :  { %15 = sbr.rel (!%p13_p11) target bundleno = 2 (0x2), region = 119 }
 0x45b   :  { %2343 = vsyncpa [#allocation4], 1 }
 0x45c   :  { %2345 = vsyncpa [#allocation4 + $0x1], 1 }

// kernel: contrastive_learning_layer.2
= control target key start
LH: loop header
LB: loop body
LE: loop exit
PB: predicated region body
PF: predicated region fallthrough
CT: control target
= control target key end

     0   :  { %s6767_s0 = inlined_call_operand.vmem [shape: bf16[8,1280], index: 0, kind: input, shape index: {}]   ;;  %s6768_s1 = inlined_call_operand.hbm [shape: bf16[1280,1280], index: 1, kind: input, shape index: {}]   ;;  %s6769_s2 = inlined_call_operand.hbm [shape: f32[2,1280], index: 2, kind: input, shape index: {}]   ;;  %s6770_s3 = inlined_call_operand.hbm [shape: bf16[1280,128], index: 3, kind: input, shape index: {}]   ;;  %s6771_s4 = inlined_call_operand.hbm [shape: f32[2,128], index: 4, kind: input, shape index: {}]   ;;  %s6772_s5 = inlined_call_operand.hbm [shape: f32[8,128], index: 5, kind: output, shape index: {}]  }
   0x1   :  { %6780 = sst [smem:[#allocation15_spill]] %s6769_s2 }
   0x2   :  { %10 = vsyncpa [#allocation3], 0 }
   0x3   :  { %12 = vsyncpa [#allocation3 + $0x1], 0 }
   0x4   :  { %13 = vsyncpa [#allocation6], 0 }
   0x5   :  { %15 = vsyncpa [#allocation6 + $0x1], 0 }
   0x6   :  { %16 = vsyncpa [#allocation9], 0 }
   0x7   :  { %17 = vsyncpa [#allocation4], 0  ;;  %s5931_s18 = smov 0   ;;  %s5933_s19 = smov 0  }
   0x8   :  { %s5935_s20 = smov 0   ;;  %s5937_s21 = smov 0  }
   0x9 LB: > { %s5952_s22 = sadd.s32 1, %s5886_s21   ;;  %s51_s23 = sadd.s32 1, %s5882_s20  ;;  %s5886_s21 = sphi %s5937_s21, %s6798_s21   ;;  %s5882_s20 = sphi %s5935_s20, %s6797_s20   ;;  %s5878_s19 = sphi %s5933_s19, %s6796_s19   ;;  %s5874_s18 = sphi %s5931_s18, %s6795_s18  }
   0xa   : > { %s48_s24 = ssub.s32 %s5886_s21, %s5952_s22  ;;  %p58_p0 = scmp.ne.s32.totalorder %s5882_s20, %s5878_s19 }
   0xb   : > { %p49_p1 = scmp.eq.s32.totalorder %s48_s24, 0  ;;  %p59_p2 = scmp.eq.s32.totalorder %s5886_s21, 0 }
   0xc   : > { %p5026_p3 = scmp.lt.s32.totalorder %s5886_s21, 2  ;;  %s5965_s26 = sand.u32 1, %s5882_s20  }
   0xd   : > { %s5962_s25 = scalar_select %p49_p1, %s5882_s20, %s51_s23  }
   0xe   : > { %p60_p4 = por %p59_p2, %p58_p0  ;;  %s4991_s27 = smul.u32 3200, %s5965_s26 }
   0xf   : > { %s217_s28 = sand.u32 1, %s5886_s21   ;;  %s4992_s30 = smul.u32 10, %s5965_s26 }
  0x10   : > { %p5969_p5 = pnand %p5026_p3, %p60_p4  ;;  %s4774_s6 = smul.u32 160, %s5886_s21 }
  0x11   : > { %s6782_s2 = sld [smem:[#allocation15_spill]]  ;;  %s221_s11 = scalar_lea.vmem [#allocation5], %s4992_s30 }
  0x12   : > { %s6781_s29 = scalar_select %p5969_p5, 1, 0 }
  0x13   : > { %s229_s12 = sshll.u32 %s221_s11, 4  ;;  %s5983_s13 = scalar_lea.sflag [#allocation6], %s217_s28  ;;  %s5981_s12 = int_to_ptr.vmem [resolvable:$true] %s229_s12 }
  0x14   : > { %p5989_p7 = pneg %p5969_p5 }
  0x16   : > { %s6783_s15 = scalar_select %p5989_p7, 1, 0 }
  0x17   : > { %s5979_s10 = scalar_lea.hbm %s6782_s2, %s4774_s6  ;;  %s5701_s23 = scalar_lea.hbm %s6782_s2, 320 }
  0x18   : > { %s5696_s14 = scalar_lea.hbm %s5979_s10, 160  ;;  %p5702_p10 = scmp.lt.u32.totalorder %s5979_s10, %s6782_s2 }
  0x19   : > { %p5697_p6 = scmp.ne.s32.totalorder %s5979_s10, %s5696_s14  ;;  %p5703_p11 = scmp.lt.u32.totalorder %s5701_s23, %s5696_s14 }
  0x1a   : > { %p5705_p13 = scmp.lt.u32.totalorder %s5696_s14, %s5979_s10 }
  0x1b   : > { %p5699_p8 = pnand %p5989_p7, %p5697_p6  ;;  %p5704_p12 = por %p5703_p11, %p5702_p10 }
  0x1d   : > { %p5700_p9 = pneg %p5699_p8  ;;  %p5706_p0 = por %p5705_p13, %p5704_p12 }
  0x1f   : > { %p5707_p1 = pnand %p5706_p0, %p5700_p9 }
  0x21   : > { %5710 = shalt.err (!%p5707_p1)
}
  0x22   : > { %s5711_s28 = scalar_lea.vmem %s5981_s12, 160  ;;  %s5888_s6 = smov [#allocation5]  }
  0x23   : > { %p5712_p2 = scmp.ne.s32.totalorder %s5981_s12, %s5711_s28  ;;  %s5716_s8 = sshll.u32 %s5888_s6, 4  ;;  %s5717_s8 = int_to_ptr.vmem [resolvable:$false] %s5716_s8 }
  0x24   : > { %s5718_s9 = scalar_lea.vmem %s5717_s8, 320  ;;  %p5719_p6 = scmp.lt.s32.totalorder %s5981_s12, %s5717_s8 }
  0x25   : > { %p5714_p3 = pnand %p5712_p2, %p5989_p7  ;;  %p5720_p8 = scmp.lt.s32.totalorder %s5718_s9, %s5711_s28 }
  0x27   : > { %p5715_p4 = pneg %p5714_p3  ;;  %p5721_p10 = por %p5720_p8, %p5719_p6 }
  0x29   : > { %p5722_p11 = pnand %p5721_p10, %p5715_p4 }
  0x2b   : > { %5725 = shalt.err (!%p5722_p11)
}
  0x2c   : > { %5021 = dma.hbm_to_vmem [thread:$0]  (!%p5969_p5), %s5979_s10, 160, %s5981_s12, %s5983_s13  }
  0x2d   : > { %s6014_s11 = sadd.s32 4294967295, %s5886_s21   ;;  %p64_p9 = scmp.ne.s32.totalorder %s5878_s19, %s5874_s18 }
  0x2e   : > { %p6773_p12 = scmp.eq.s32.totalorder %s6014_s11, 0  ;;  %p4306_p13 = scmp.ge.s32.totalorder %s5886_s21, 1 }
  0x2f   : > { %p169_p0 = scmp.lt.s32.totalorder %s5886_s21, 3  ;;  %s5889_s10 = smov [#allocation8]  }
  0x30   : > { %p6024_p2 = por %p6773_p12, %p64_p9  ;;  %s185_s12 = sshll.u32 %s5889_s10, 4  ;;  %s186_s12 = int_to_ptr.vmem [resolvable:$true] %s185_s12 }
  0x31   : > { %p6028_p3 = pnand %p4306_p13, %p169_p0  ;;  %s4773_s18 = smul.u32 320, %s5886_s21 }
  0x32   : > { %s6784_s14 = scalar_select %p6024_p2, 1, 0 }
  0x33   : > { %s6785_s16 = scalar_select %p6028_p3, 1, 0 }
  0x34   : > { %p5011_p4 = pneg %p6028_p3  ;;  %s200_s17 = scalar_lea.vmem [#allocation2], %s4991_s27 }
  0x35   : > { %s207_s23 = sshll.u32 %s200_s17, 4  ;;  %s6048_s6 = scalar_lea.hbm %s6768_s1, %s4773_s18  ;;  %s6043_s23 = int_to_ptr.vmem [resolvable:$true] %s207_s23 }
  0x36   : > { %p6039_p6 = pnand %p5011_p4, %p6773_p12  ;;  %s5726_s10 = scalar_lea.hbm %s6771_s4, 32 }
  0x37   : > { %p5727_p8 = scmp.ne.s32.totalorder %s6771_s4, %s5726_s10  ;;  %p5733_p13 = scmp.lt.u32.totalorder %s5726_s10, %s6771_s4 }
  0x38   : > { %p5728_p10 = pneg %p6039_p6 }
  0x3a   : > { %p5729_p11 = pnand %p5728_p10, %p5727_p8 }
  0x3c   : > { %p5730_p9 = pneg %p5729_p11 }
  0x3e   : > { %p5735_p0 = pnand %p5733_p13, %p5730_p9 }
  0x40   : > { %5738 = shalt.err (!%p5735_p0)
}
  0x41   : > { %s5739_s18 = scalar_lea.vmem %s186_s12, 32  ;;  %p5747_p2 = scmp.lt.s32.totalorder %s186_s12, %s186_s12 }
  0x42   : > { %p5740_p4 = scmp.ne.s32.totalorder %s186_s12, %s5739_s18  ;;  %p5748_p3 = scmp.lt.s32.totalorder %s5739_s18, %s5739_s18 }
  0x44   : > { %p5742_p1 = pnand %p5740_p4, %p5728_p10  ;;  %p5749_p5 = por %p5748_p3, %p5747_p2 }
  0x46   : > { %p5743_p12 = pneg %p5742_p1 }
  0x48   : > { %p5750_p7 = pnand %p5749_p5, %p5743_p12 }
  0x4a   : > { %5753 = shalt.err (!%p5750_p7)
}
  0x4b   : > { %5014 = dma.hbm_to_vmem [thread:$0]  (!%p6039_p6), %s6771_s4, 32, %s186_s12, [#allocation9]  }
  0x4c   : > { %s197_s2 = scalar_lea.sflag [#allocation3], %s5965_s26  ;;  %s5754_s28 = scalar_lea.hbm %s6048_s6, 51200 }
  0x4d   : > { %p5755_p1 = scmp.ne.s32.totalorder %s6048_s6, %s5754_s28  ;;  %p6787_p8 = scmp.ne.s32.totalorder %s6783_s15, 0 }
  0x4e   : > { %s5759_s24 = scalar_lea.hbm %s6768_s1, 102400  ;;  %p5760_p5 = scmp.lt.u32.totalorder %s6048_s6, %s6768_s1 }
  0x4f   : > { %p5757_p10 = pnand %p5755_p1, %p6787_p8  ;;  %p5761_p7 = scmp.lt.u32.totalorder %s5759_s24, %s5754_s28 }
  0x50   : > { %p5763_p3 = scmp.lt.u32.totalorder %s5754_s28, %s6048_s6 }
  0x51   : > { %p5758_p2 = pneg %p5757_p10  ;;  %p5762_p12 = por %p5761_p7, %p5760_p5 }
  0x53   : > { %p5764_p11 = por %p5763_p3, %p5762_p12 }
  0x55   : > { %p5765_p9 = pnand %p5764_p11, %p5758_p2 }
  0x57   : > { %5768 = shalt.err (!%p5765_p9)
}
  0x58   : > { %s5769_s12 = scalar_lea.vmem %s6043_s23, 51200  ;;  %s5890_s17 = smov [#allocation2]  }
  0x59   : > { %p5770_p6 = scmp.ne.s32.totalorder %s6043_s23, %s5769_s12  ;;  %s5774_s18 = sshll.u32 %s5890_s17, 4  ;;  %s5775_s18 = int_to_ptr.vmem [resolvable:$false] %s5774_s18 }
  0x5a   : > { %s5776_s7 = scalar_lea.vmem %s5775_s18, 102400  ;;  %p5777_p4 = scmp.lt.s32.totalorder %s6043_s23, %s5775_s18 }
  0x5b   : > { %p5772_p13 = pnand %p5770_p6, %p6787_p8  ;;  %p5778_p1 = scmp.lt.s32.totalorder %s5776_s7, %s5769_s12 }
  0x5d   : > { %p5773_p0 = pneg %p5772_p13  ;;  %p5779_p10 = por %p5778_p1, %p5777_p4 }
  0x5f   : > { %p5780_p5 = pnand %p5779_p10, %p5773_p0 }
  0x61   : > { %5783 = shalt.err (!%p5780_p5)
}
  0x62   : > { %s5891_s30 = smov 640   ;;  %s5892_s28 = smov 320  }
  0x63   : > { %s5893_s8 = smov 20   ;;  %p6788_p2 = scmp.ne.s32.totalorder %s6781_s29, 0 }
  0x64   : > { %s4775_s9 = smul.u32 5120, %s5886_s21 }
  0x65   : > { %5018 = dma.hbm_to_vmem [thread:$0]  (!%p6788_p2), %s6048_s6, 51200, %s6043_s23, %s197_s2, %s5891_s30, %s5892_s28, %s5893_s8  }
  0x66   : > { %s6789_s24 = smul.u32 320, %s5965_s26  ;;  %s6098_s18 = scalar_lea.hbm %s6770_s3, %s4775_s9 }
  0x67   : > { %s5784_s7 = scalar_lea.hbm %s6098_s18, 5120  ;;  %s5789_s23 = scalar_lea.hbm %s6770_s3, 10240 }
  0x68   : > { %s240_s10 = scalar_lea.vmem [#allocation7], %s6789_s24  ;;  %p5785_p7 = scmp.ne.s32.totalorder %s6098_s18, %s5784_s7 }
  0x69   : > { %s247_s27 = sshll.u32 %s240_s10, 4  ;;  %p5790_p11 = scmp.lt.u32.totalorder %s6098_s18, %s6770_s3  ;;  %s6093_s27 = int_to_ptr.vmem [resolvable:$true] %s247_s27 }
  0x6a   : > { %p5787_p12 = pnand %p5785_p7, %p6787_p8  ;;  %p5791_p9 = scmp.lt.u32.totalorder %s5789_s23, %s5784_s7 }
  0x6b   : > { %p5793_p13 = scmp.lt.u32.totalorder %s5784_s7, %s6098_s18 }
  0x6c   : > { %p5788_p3 = pneg %p5787_p12  ;;  %p5792_p6 = por %p5791_p9, %p5790_p11 }
  0x6e   : > { %p5794_p0 = por %p5793_p13, %p5792_p6 }
  0x70   : > { %p5795_p4 = pnand %p5794_p0, %p5788_p3 }
  0x72   : > { %5798 = shalt.err (!%p5795_p4)
}
  0x73   : > { %s5799_s30 = scalar_lea.vmem %s6093_s27, 5120  ;;  %s5894_s28 = smov [#allocation7]  }
  0x74   : > { %p5800_p1 = scmp.ne.s32.totalorder %s6093_s27, %s5799_s30  ;;  %s5804_s8 = sshll.u32 %s5894_s28, 4  ;;  %s5805_s8 = int_to_ptr.vmem [resolvable:$false] %s5804_s8 }
  0x75   : > { %s5806_s9 = scalar_lea.vmem %s5805_s8, 10240  ;;  %p5807_p7 = scmp.lt.s32.totalorder %s6093_s27, %s5805_s8 }
  0x76   : > { %p5802_p10 = pnand %p5800_p1, %p6787_p8  ;;  %p5808_p12 = scmp.lt.s32.totalorder %s5806_s9, %s5799_s30 }
  0x78   : > { %p5803_p5 = pneg %p5802_p10  ;;  %p5809_p11 = por %p5808_p12, %p5807_p7 }
  0x7a   : > { %p5810_p9 = pnand %p5809_p11, %p5803_p5 }
  0x7c   : > { %5813 = shalt.err (!%p5810_p9)
}
  0x7d   : > { %s5895_s24 = smov 64   ;;  %s5896_s10 = smov 4  }
  0x7e   : > { %5024 = dma.hbm_to_vmem [thread:$0]  (!%p6788_p2), %s6098_s18, 5120, %s6093_s27, %s5983_s13, %s5895_s24, %s5895_s24, %s5896_s10  }
  0x7f   : > { %p6790_p8 = scmp.ne.s32.totalorder %s6785_s16, 0 }
  0x80   : > { %s261_s15 = sand.u32 (!%p6790_p8), 1, %s5878_s19   ;;  %p6791_p3 = scmp.ne.s32.totalorder (!%p6790_p8), %s6784_s14, 0 }
  0x81   : > { %259 = sbr.rel (%p6790_p8) target bundleno = 1303 (0x517), region = 40  ;;  %s262_s17 = scalar_lea.sflag (!%p6790_p8), [#allocation3], %s261_s15 }
  0x82   : > { %s4994_s12 = smul.u32 (!%p6790_p8), 3200, %s261_s15 }
  0x84   : > { %s6125_s7 = scalar_lea.vmem (!%p6790_p8), [#allocation2], %s4994_s12 }
  0x88   : > { %5857 = dma.done.wait (%p6791_p3), %s262_s17, 51200  }
  0x89   : > { %5859 = vsyncadd (%p6791_p3), %s262_s17, 4294916096  ;;  %s270_s21 = sand.u32 1, %s6014_s11   ;;  %s4995_s29 = smul.u32 10, %s261_s15 }
  0x8a   : > { %s271_s13 = scalar_lea.sflag [#allocation6], %s270_s21 }
  0x8b   : > { %s6132_s27 = scalar_lea.vmem [#allocation5], %s4995_s29 }
  0x8c   : > { %5861 = dma.done.wait (%p6791_p3), %s271_s13, 5280  }
  0x8d   : > { %5863 = vsyncadd (%p6791_p3), %s271_s13, 4294962016  ;;  %s4996_s16 = smul.u32 320, %s261_s15  ;;  %p6792_p2 = scmp.eq.s32.totalorder %s6014_s11, 0 }
  0x8f   : > { %s6138_s18 = scalar_lea.vmem [#allocation7], %s4996_s16 }
  0x90   : > { %5865 = dma.done.wait (%p6792_p2), [#allocation9], 32   ;;  %p6793_p6 = pmov %p6792_p2 }
  0x91   : > { %p6794_p13 = scmp.ne.s32.totalorder %s6014_s11, 0 }
  0x92   : > { %5867 = vsyncadd (%p6793_p6), [#allocation9], 4294967264  ;;  %v5897_v0 = vmov (!%p6794_p13), 0.0  }
  0x93   : > { %326 = sbr.rel (%p6794_p13) target bundleno = 154 (0x9a), region = 60  ;;  %327 = vst [vmem:[#allocation10] sm:$0xff] (!%p6794_p13), %v5897_v0 }
  0x9a PF: > { %v5072_v1 = vld [vmem:[%s6125_s7 + $0x4] ss:$20 sps:$4 sm:$0xff]   ;;  %v5074_v2 = vld [vmem:[%s6125_s7 + $0xc] ss:$20 sps:$4 sm:$0xff]   ;;  %v5077_v4 = vld [vmem:[%s6125_s7 + $0x8] ss:$20 sps:$4 sm:$0xff]  }
  0x9b   : > { %2928 = vmatprep.subr.bf16.mxu0 %v5072_v1  ;;  %v5076_v3 = vld [vmem:[%s6125_s7] ss:$20 sps:$4 sm:$0xff]   ;;  %3133 = vmatprep.subr.bf16.mxu1 %v5074_v2  ;;  %v5082_v7 = vld [vmem:[%s6125_s7 + $0x28] ss:$20 sps:$4 sm:$0xff]   ;;  %v5083_v8 = vld [vmem:[%s6125_s7 + $0x30] ss:$20 sps:$4 sm:$0xff]  }
  0x9c   : > { %v5078_v5 = vld [vmem:[%s6125_s7 + $0x2c] ss:$20 sps:$4 sm:$0xff]   ;;  %2929 = vmatpush1.bf16.msra.mxu0 %v5076_v3  ;;  %3134 = vmatpush1.bf16.msra.mxu1 %v5077_v4  ;;  %v5080_v6 = vld [vmem:[%s6125_s7 + $0x34] ss:$20 sps:$4 sm:$0xff]   ;;  %v5086_v10 = vld [vmem:[%s6125_s7 + $0x5c] ss:$20 sps:$4 sm:$0xff]  }
  0x9d   : > { %2930 = vmatprep.subr.bf16.mxu0 %v5078_v5  ;;  %3135 = vmatprep.subr.bf16.mxu1 %v5080_v6  ;;  %v5084_v9 = vld [vmem:[%s6125_s7 + $0x54] ss:$20 sps:$4 sm:$0xff]   ;;  %v5088_v11 = vld [vmem:[%s6125_s7 + $0x50] ss:$20 sps:$4 sm:$0xff]   ;;  %v5089_v12 = vld [vmem:[%s6125_s7 + $0x58] ss:$20 sps:$4 sm:$0xff]  }
  0x9e   : > { %v5090_v13 = vld [vmem:[%s6125_s7 + $0x7c] ss:$20 sps:$4 sm:$0xff]   ;;  %v5092_v14 = vld [vmem:[%s6125_s7 + $0x84] ss:$20 sps:$4 sm:$0xff]   ;;  %v5095_v16 = vld [vmem:[%s6125_s7 + $0x80] ss:$20 sps:$4 sm:$0xff]  }
  0x9f   : > { %v5094_v15 = vld [vmem:[%s6125_s7 + $0x78] ss:$20 sps:$4 sm:$0xff]   ;;  %v5100_v19 = vld [vmem:[%s6125_s7 + $0xa0] ss:$20 sps:$4 sm:$0xff]   ;;  %v5101_v20 = vld [vmem:[%s6125_s7 + $0xa8] ss:$20 sps:$4 sm:$0xff]  }
  0xa0   : > { %2931 = vmatpush1.bf16.msra.mxu0 %v5082_v7  ;;  %3136 = vmatpush1.bf16.msra.mxu1 %v5083_v8  ;;  %v5096_v17 = vld [vmem:[%s6125_s7 + $0xa4] ss:$20 sps:$4 sm:$0xff]   ;;  %v5098_v18 = vld [vmem:[%s6125_s7 + $0xac] ss:$20 sps:$4 sm:$0xff]   ;;  %v5104_v22 = vld [vmem:[%s6125_s7 + $0xd4] ss:$20 sps:$4 sm:$0xff]  }
  0xa1   : > { %2932 = vmatprep.subr.bf16.mxu0 %v5084_v9  ;;  %3137 = vmatprep.subr.bf16.mxu1 %v5086_v10  ;;  %v5102_v21 = vld [vmem:[%s6125_s7 + $0xcc] ss:$20 sps:$4 sm:$0xff]   ;;  %v5106_v23 = vld [vmem:[%s6125_s7 + $0xc8] ss:$20 sps:$4 sm:$0xff]   ;;  %v5107_v24 = vld [vmem:[%s6125_s7 + $0xd0] ss:$20 sps:$4 sm:$0xff]  }
  0xa2   : > { %v5108_v25 = vld [vmem:[%s6125_s7 + $0xf4] ss:$20 sps:$4 sm:$0xff]   ;;  %v5110_v26 = vld [vmem:[%s6125_s7 + $0xfc] ss:$20 sps:$4 sm:$0xff]   ;;  %v5113_v28 = vld [vmem:[%s6125_s7 + $0xf8] ss:$20 sps:$4 sm:$0xff]  }
  0xa3   : > { %v5112_v27 = vld [vmem:[%s6125_s7 + $0xf0] ss:$20 sps:$4 sm:$0xff]   ;;  %v5118_v31 = vld [vmem:[%s6125_s7 + $0x118] ss:$20 sps:$4 sm:$0xff]   ;;  %v5119_v32 = vld [vmem:[%s6125_s7 + $0x120] ss:$20 sps:$4 sm:$0xff]  }
  0xa4   : > { %2933 = vmatpush1.bf16.msra.mxu0 %v5088_v11  ;;  %3138 = vmatpush1.bf16.msra.mxu1 %v5089_v12  ;;  %v5114_v29 = vld [vmem:[%s6125_s7 + $0x11c] ss:$20 sps:$4 sm:$0xff]   ;;  %v5116_v30 = vld [vmem:[%s6125_s7 + $0x124] ss:$20 sps:$4 sm:$0xff]   ;;  %v5122_v34 = vld [vmem:[%s6125_s7 + $0x14c] ss:$20 sps:$4 sm:$0xff]  }
  0xa5   : > { %2934 = vmatprep.subr.bf16.mxu0 %v5090_v13  ;;  %3139 = vmatprep.subr.bf16.mxu1 %v5092_v14  ;;  %v5120_v33 = vld [vmem:[%s6125_s7 + $0x144] ss:$20 sps:$4 sm:$0xff]   ;;  %v5124_v35 = vld [vmem:[%s6125_s7 + $0x140] ss:$20 sps:$4 sm:$0xff]   ;;  %v5125_v36 = vld [vmem:[%s6125_s7 + $0x148] ss:$20 sps:$4 sm:$0xff]  }
  0xa6   : > { %v5126_v37 = vld [vmem:[%s6125_s7 + $0x16c] ss:$20 sps:$4 sm:$0xff]   ;;  %v5128_v38 = vld [vmem:[%s6125_s7 + $0x174] ss:$20 sps:$4 sm:$0xff]   ;;  %v5131_v40 = vld [vmem:[%s6125_s7 + $0x170] ss:$20 sps:$4 sm:$0xff]  }
  0xa7   : > { %v5130_v39 = vld [vmem:[%s6125_s7 + $0x168] ss:$20 sps:$4 sm:$0xff]   ;;  %v5136_v43 = vld [vmem:[%s6125_s7 + $0x190] ss:$20 sps:$4 sm:$0xff]   ;;  %v5137_v44 = vld [vmem:[%s6125_s7 + $0x198] ss:$20 sps:$4 sm:$0xff]  }
  0xa8   : > { %2935 = vmatpush1.bf16.msra.mxu0 %v5094_v15  ;;  %3140 = vmatpush1.bf16.msra.mxu1 %v5095_v16  ;;  %v5132_v41 = vld [vmem:[%s6125_s7 + $0x194] ss:$20 sps:$4 sm:$0xff]   ;;  %v5134_v42 = vld [vmem:[%s6125_s7 + $0x19c] ss:$20 sps:$4 sm:$0xff]   ;;  %v5140_v46 = vld [vmem:[%s6125_s7 + $0x1c4] ss:$20 sps:$4 sm:$0xff]  }
  0xa9   : > { %2936 = vmatprep.subr.bf16.mxu0 %v5096_v17  ;;  %3141 = vmatprep.subr.bf16.mxu1 %v5098_v18  ;;  %v5138_v45 = vld [vmem:[%s6125_s7 + $0x1bc] ss:$20 sps:$4 sm:$0xff]   ;;  %v328_v47 = vld [vmem:[%s6767_s0] sm:$0xff]  ;;  %v5142_v48 = vld [vmem:[%s6125_s7 + $0x1b8] ss:$20 sps:$4 sm:$0xff]   ;;  %vm5899_vm0 = vmmov 0  }
  0xaa   : > { %v6196_v49 = vcombine.high %v328_v47, %v328_v47  ;;  %v5143_v50 = vld [vmem:[%s6125_s7 + $0x1c0] ss:$20 sps:$4 sm:$0xff]   ;;  %v5144_v51 = vld [vmem:[%s6125_s7 + $0x1e4] ss:$20 sps:$4 sm:$0xff]   ;;  %v5149_v54 = vld [vmem:[%s6125_s7 + $0x1e8] ss:$20 sps:$4 sm:$0xff]   ;;  %v6220_v6 = vcombine.low %v328_v47, %v328_v47 }
  0xab   : > { %v5146_v52 = vld [vmem:[%s6125_s7 + $0x1ec] ss:$20 sps:$4 sm:$0xff]   ;;  %v5152_v56 = vld [vmem:[%s6125_s7 + $0x214] ss:$20 sps:$4 sm:$0xff]   ;;  %v5155_v58 = vld [vmem:[%s6125_s7 + $0x210] ss:$20 sps:$4 sm:$0xff]  }
  0xac   : > { %2937 = vmatpush1.bf16.msra.mxu0 %v5100_v19  ;;  %3142 = vmatpush1.bf16.msra.mxu1 %v5101_v20  ;;  %v5148_v53 = vld [vmem:[%s6125_s7 + $0x1e0] ss:$20 sps:$4 sm:$0xff]   ;;  %v5154_v57 = vld [vmem:[%s6125_s7 + $0x208] ss:$20 sps:$4 sm:$0xff]   ;;  %v5160_v61 = vld [vmem:[%s6125_s7 + $0x230] ss:$20 sps:$4 sm:$0xff]  }
  0xad   : > { %2938 = vmatprep.subr.bf16.mxu0 %v5102_v21  ;;  %3143 = vmatprep.subr.bf16.mxu1 %v5104_v22  ;;  %v5150_v55 = vld [vmem:[%s6125_s7 + $0x20c] ss:$20 sps:$4 sm:$0xff]   ;;  %v5156_v59 = vld [vmem:[%s6125_s7 + $0x234] ss:$20 sps:$4 sm:$0xff]   ;;  %v5158_v60 = vld [vmem:[%s6125_s7 + $0x23c] ss:$20 sps:$4 sm:$0xff]  }
  0xae   : > { %2960 = vmatprep.mubr.bf16.mxu0 %v6196_v49  ;;  %3165 = vmatprep.mubr.bf16.mxu1 %v6196_v49  ;;  %v5161_v62 = vld [vmem:[%s6125_s7 + $0x238] ss:$20 sps:$4 sm:$0xff]   ;;  %v5162_v63 = vld [vmem:[%s6125_s7 + $0x25c] ss:$20 sps:$4 sm:$0xff]   ;;  %v5167_v2 = vld [vmem:[%s6125_s7 + $0x260] ss:$20 sps:$4 sm:$0xff]  }
  0xaf   : > { %v5164_v0 = vld [vmem:[%s6125_s7 + $0x264] ss:$20 sps:$4 sm:$0xff]   ;;  %v5174_v4 = vld [vmem:[%s6125_s7 + $0x28c] ss:$20 sps:$4 sm:$0xff]   ;;  %v5172_v7 = vld [vmem:[%s6125_s7 + $0x288] ss:$20 sps:$4 sm:$0xff]  }
  0xb0   : > { %2939 = vmatpush1.bf16.msra.mxu0 %v5106_v23  ;;  %3144 = vmatpush1.bf16.msra.mxu1 %v5107_v24  ;;  %v5166_v1 = vld [vmem:[%s6125_s7 + $0x258] ss:$20 sps:$4 sm:$0xff]   ;;  %v5169_v5 = vld [vmem:[%s6125_s7 + $0x280] ss:$20 sps:$4 sm:$0xff]   ;;  %v5176_v10 = vld [vmem:[%s6125_s7 + $0x2a8] ss:$20 sps:$4 sm:$0xff]  }
  0xb1   : > { %2940 = vmatprep.subr.bf16.mxu0 %v5108_v25  ;;  %3145 = vmatprep.subr.bf16.mxu1 %v5110_v26  ;;  %v5171_v3 = vld [vmem:[%s6125_s7 + $0x284] ss:$20 sps:$4 sm:$0xff]   ;;  %v5178_v8 = vld [vmem:[%s6125_s7 + $0x2ac] ss:$20 sps:$4 sm:$0xff]   ;;  %v5181_v9 = vld [vmem:[%s6125_s7 + $0x2b4] ss:$20 sps:$4 sm:$0xff]  }
  0xb2   : > { %v5179_v11 = vld [vmem:[%s6125_s7 + $0x2b0] ss:$20 sps:$4 sm:$0xff]   ;;  %v5184_v12 = vld [vmem:[%s6125_s7 + $0x2d4] ss:$20 sps:$4 sm:$0xff]   ;;  %v5185_v15 = vld [vmem:[%s6125_s7 + $0x2d8] ss:$20 sps:$4 sm:$0xff]  }
  0xb3   : > { %v5187_v13 = vld [vmem:[%s6125_s7 + $0x2dc] ss:$20 sps:$4 sm:$0xff]   ;;  %v5193_v17 = vld [vmem:[%s6125_s7 + $0x304] ss:$20 sps:$4 sm:$0xff]   ;;  %v5191_v19 = vld [vmem:[%s6125_s7 + $0x300] ss:$20 sps:$4 sm:$0xff]  }
  0xb4   : > { %2941 = vmatpush1.bf16.msra.mxu0 %v5112_v27  ;;  %3146 = vmatpush1.bf16.msra.mxu1 %v5113_v28  ;;  %v5182_v14 = vld [vmem:[%s6125_s7 + $0x2d0] ss:$20 sps:$4 sm:$0xff]   ;;  %v5188_v18 = vld [vmem:[%s6125_s7 + $0x2f8] ss:$20 sps:$4 sm:$0xff]   ;;  %v5194_v22 = vld [vmem:[%s6125_s7 + $0x320] ss:$20 sps:$4 sm:$0xff]  }
  0xb5   : > { %2942 = vmatprep.subr.bf16.mxu0 %v5114_v29  ;;  %3147 = vmatprep.subr.bf16.mxu1 %v5116_v30  ;;  %v5190_v16 = vld [vmem:[%s6125_s7 + $0x2fc] ss:$20 sps:$4 sm:$0xff]   ;;  %v5196_v20 = vld [vmem:[%s6125_s7 + $0x324] ss:$20 sps:$4 sm:$0xff]   ;;  %v5199_v21 = vld [vmem:[%s6125_s7 + $0x32c] ss:$20 sps:$4 sm:$0xff]  }
  0xb6   : > { %v5197_v23 = vld [vmem:[%s6125_s7 + $0x328] ss:$20 sps:$4 sm:$0xff]   ;;  %v5202_v24 = vld [vmem:[%s6125_s7 + $0x34c] ss:$20 sps:$4 sm:$0xff]   ;;  %v5203_v27 = vld [vmem:[%s6125_s7 + $0x350] ss:$20 sps:$4 sm:$0xff]  }
  0xb7   : > { %v5205_v25 = vld [vmem:[%s6125_s7 + $0x354] ss:$20 sps:$4 sm:$0xff]   ;;  %v5211_v29 = vld [vmem:[%s6125_s7 + $0x37c] ss:$20 sps:$4 sm:$0xff]   ;;  %p4766_p0 = scmp.ne.s32.totalorder %s6014_s11, 1 }
  0xb8   : > { %2943 = vmatpush1.bf16.msra.mxu0 %v5118_v31  ;;  %3148 = vmatpush1.bf16.msra.mxu1 %v5119_v32  ;;  %v5200_v26 = vld [vmem:[%s6125_s7 + $0x348] ss:$20 sps:$4 sm:$0xff]   ;;  %v5206_v32 = vld [vmem:[%s6125_s7 + $0x370] ss:$20 sps:$4 sm:$0xff]  }
  0xb9   : > { %2944 = vmatprep.subr.bf16.mxu0 %v5120_v33  ;;  %3149 = vmatprep.subr.bf16.mxu1 %v5122_v34  ;;  %v5208_v28 = vld [vmem:[%s6125_s7 + $0x374] ss:$20 sps:$4 sm:$0xff]   ;;  %v5209_v33 = vld [vmem:[%s6125_s7 + $0x378] ss:$20 sps:$4 sm:$0xff]   ;;  %v5214_v34 = vld [vmem:[%s6125_s7 + $0x39c] ss:$20 sps:$4 sm:$0xff]  }
  0xba   : > { %v6250_v30 = vld [vmem:[%s6767_s0 + $0x8] sm:$0xff]  ;;  %v5235_v47 = vld [vmem:[%s6125_s7 + $0x41c] ss:$20 sps:$4 sm:$0xff]  }
  0xbb   : > { %v6254_v31 = vcombine.high %v6250_v30, %v6250_v30 }
  0xbc   : > { %2945 = vmatpush1.bf16.msra.mxu0 %v5124_v35  ;;  %3150 = vmatpush1.bf16.msra.mxu1 %v5125_v36  ;;  %v5217_v35 = vld [vmem:[%s6125_s7 + $0x3a4] ss:$20 sps:$4 sm:$0xff]  }
  0xbd   : > { %2946 = vmatprep.subr.bf16.mxu0 %v5126_v37  ;;  %3151 = vmatprep.subr.bf16.mxu1 %v5128_v38  ;;  %v5212_v36 = vld [vmem:[%s6125_s7 + $0x398] ss:$20 sps:$4 sm:$0xff]   ;;  %v5215_v37 = vld [vmem:[%s6125_s7 + $0x3a0] ss:$20 sps:$4 sm:$0xff]  }
  0xbe   : > { %v5220_v38 = vld [vmem:[%s6125_s7 + $0x3c4] ss:$20 sps:$4 sm:$0xff]  }
  0xc0   : > { %2947 = vmatpush1.bf16.msra.mxu0 %v5130_v39  ;;  %3152 = vmatpush1.bf16.msra.mxu1 %v5131_v40  ;;  %v5223_v39 = vld [vmem:[%s6125_s7 + $0x3cc] ss:$20 sps:$4 sm:$0xff]  }
  0xc1   : > { %2948 = vmatprep.subr.bf16.mxu0 %v5132_v41  ;;  %3153 = vmatprep.subr.bf16.mxu1 %v5134_v42  ;;  %v5218_v40 = vld [vmem:[%s6125_s7 + $0x3c0] ss:$20 sps:$4 sm:$0xff]   ;;  %v5221_v41 = vld [vmem:[%s6125_s7 + $0x3c8] ss:$20 sps:$4 sm:$0xff]  }
  0xc2   : > { %v5226_v42 = vld [vmem:[%s6125_s7 + $0x3ec] ss:$20 sps:$4 sm:$0xff]  }
  0xc4   : > { %2949 = vmatpush1.bf16.msra.mxu0 %v5136_v43  ;;  %3154 = vmatpush1.bf16.msra.mxu1 %v5137_v44  ;;  %v5229_v43 = vld [vmem:[%s6125_s7 + $0x3f4] ss:$20 sps:$4 sm:$0xff]  }
  0xc5   : > { %2950 = vmatprep.subr.bf16.mxu0 %v5138_v45  ;;  %3155 = vmatprep.subr.bf16.mxu1 %v5140_v46  ;;  %v5224_v44 = vld [vmem:[%s6125_s7 + $0x3e8] ss:$20 sps:$4 sm:$0xff]   ;;  %v5227_v45 = vld [vmem:[%s6125_s7 + $0x3f0] ss:$20 sps:$4 sm:$0xff]  }
  0xc6   : > { %v5232_v46 = vld [vmem:[%s6125_s7 + $0x414] ss:$20 sps:$4 sm:$0xff]  }
  0xc8   : > { %2951 = vmatpush1.bf16.msra.mxu0 %v5142_v48  ;;  %3156 = vmatpush1.bf16.msra.mxu1 %v5143_v50  ;;  %v5230_v48 = vld [vmem:[%s6125_s7 + $0x410] ss:$20 sps:$4 sm:$0xff]   ;;  %v5233_v50 = vld [vmem:[%s6125_s7 + $0x418] ss:$20 sps:$4 sm:$0xff]  }
  0xc9   : > { %2952 = vmatprep.subr.bf16.mxu0 %v5144_v51  ;;  %3157 = vmatprep.subr.bf16.mxu1 %v5146_v52  ;;  %v5238_v51 = vld [vmem:[%s6125_s7 + $0x43c] ss:$20 sps:$4 sm:$0xff]   ;;  %v5241_v52 = vld [vmem:[%s6125_s7 + $0x444] ss:$20 sps:$4 sm:$0xff]  }
  0xcc   : > { %2953 = vmatpush1.bf16.msra.mxu0 %v5148_v53  ;;  %3158 = vmatpush1.bf16.msra.mxu1 %v5149_v54  ;;  %v5236_v53 = vld [vmem:[%s6125_s7 + $0x438] ss:$20 sps:$4 sm:$0xff]   ;;  %v5239_v54 = vld [vmem:[%s6125_s7 + $0x440] ss:$20 sps:$4 sm:$0xff]  }
  0xcd   : > { %2954 = vmatprep.subr.bf16.mxu0 %v5150_v55  ;;  %3159 = vmatprep.subr.bf16.mxu1 %v5152_v56  ;;  %v5244_v55 = vld [vmem:[%s6125_s7 + $0x464] ss:$20 sps:$4 sm:$0xff]   ;;  %v5247_v56 = vld [vmem:[%s6125_s7 + $0x46c] ss:$20 sps:$4 sm:$0xff]  }
  0xd0   : > { %2955 = vmatpush1.bf16.msra.mxu0 %v5154_v57  ;;  %3160 = vmatpush1.bf16.msra.mxu1 %v5155_v58  ;;  %v5242_v57 = vld [vmem:[%s6125_s7 + $0x460] ss:$20 sps:$4 sm:$0xff]   ;;  %v5245_v58 = vld [vmem:[%s6125_s7 + $0x468] ss:$20 sps:$4 sm:$0xff]  }
  0xd1   : > { %2956 = vmatprep.subr.bf16.mxu0 %v5156_v59  ;;  %3161 = vmatprep.subr.bf16.mxu1 %v5158_v60  ;;  %v5250_v59 = vld [vmem:[%s6125_s7 + $0x48c] ss:$20 sps:$4 sm:$0xff]   ;;  %v5253_v60 = vld [vmem:[%s6125_s7 + $0x494] ss:$20 sps:$4 sm:$0xff]  }
  0xd4   : > { %2957 = vmatpush1.bf16.msra.mxu0 %v5160_v61  ;;  %3162 = vmatpush1.bf16.msra.mxu1 %v5161_v62  ;;  %v5248_v61 = vld [vmem:[%s6125_s7 + $0x488] ss:$20 sps:$4 sm:$0xff]   ;;  %v5251_v62 = vld [vmem:[%s6125_s7 + $0x490] ss:$20 sps:$4 sm:$0xff]  }
  0xd5   : > { %2958 = vmatprep.subr.bf16.mxu0 %v5162_v63  ;;  %3163 = vmatprep.subr.bf16.mxu1 %v5164_v0  ;;  %v5256_v63 = vld [vmem:[%s6125_s7 + $0x4b4] ss:$20 sps:$4 sm:$0xff]   ;;  %v5259_v0 = vld [vmem:[%s6125_s7 + $0x4bc] ss:$20 sps:$4 sm:$0xff]  }
  0xd8   : > { %2959 = vmatpush1.bf16.msra.mxu0 %v5166_v1  ;;  %3164 = vmatpush1.bf16.msra.mxu1 %v5167_v2  ;;  %v5254_v1 = vld [vmem:[%s6125_s7 + $0x4b0] ss:$20 sps:$4 sm:$0xff]   ;;  %v5257_v2 = vld [vmem:[%s6125_s7 + $0x4b8] ss:$20 sps:$4 sm:$0xff]  }
  0xd9   : > { %2969 = vmatprep.subr.bf16.mxu0 %v5171_v3  ;;  %3174 = vmatprep.subr.bf16.mxu1 %v5174_v4  ;;  %v5262_v3 = vld [vmem:[%s6125_s7 + $0x4dc] ss:$20 sps:$4 sm:$0xff]   ;;  %v5265_v4 = vld [vmem:[%s6125_s7 + $0x4e4] ss:$20 sps:$4 sm:$0xff]  }
  0xdb   : > { %2961 = vmatmul.mubr.bf16.vlgmr.msra.gmra.mrb[0].mxu0 %v6220_v6  ;;  %3166 = vmatmul.mubr.bf16.vlgmr.msra.gmra.mrb[0].mxu1 %v6220_v6 }
  0xdc   : > { %2970 = vmatpush1.bf16.msra.mxu0 %v5169_v5  ;;  %3175 = vmatpush1.bf16.msra.mxu1 %v5172_v7  ;;  %v5260_v5 = vld [vmem:[%s6125_s7 + $0x4d8] ss:$20 sps:$4 sm:$0xff]   ;;  %v5263_v7 = vld [vmem:[%s6125_s7 + $0x4e0] ss:$20 sps:$4 sm:$0xff]  }
  0xdd   : > { %2971 = vmatprep.subr.bf16.mxu0 %v5178_v8  ;;  %3176 = vmatprep.subr.bf16.mxu1 %v5181_v9  ;;  %v5270_v8 = vld [vmem:[%s6125_s7 + $0x504] ss:$20 sps:$4 sm:$0xff]   ;;  %v5273_v9 = vld [vmem:[%s6125_s7 + $0x50c] ss:$20 sps:$4 sm:$0xff]  }
  0xde   : > { %3001 = vmatprep.mubr.bf16.mxu0 %v6254_v31  ;;  %3206 = vmatprep.mubr.bf16.mxu1 %v6254_v31 }
  0xe0   : > { %2972 = vmatpush1.bf16.msra.mxu0 %v5176_v10  ;;  %3177 = vmatpush1.bf16.msra.mxu1 %v5179_v11  ;;  %v6300_v10 = vcombine.low %v6250_v30, %v6250_v30  ;;  %v5268_v11 = vld [vmem:[%s6125_s7 + $0x500] ss:$20 sps:$4 sm:$0xff]   ;;  %v5295_v30 = vld [vmem:[%s6125_s7 + $0x5a8] ss:$20 sps:$4 sm:$0xff]  }
  0xe1   : > { %2973 = vmatprep.subr.bf16.mxu0 %v5184_v12  ;;  %3178 = vmatprep.subr.bf16.mxu1 %v5187_v13  ;;  %v5271_v12 = vld [vmem:[%s6125_s7 + $0x508] ss:$20 sps:$4 sm:$0xff]   ;;  %v5276_v13 = vld [vmem:[%s6125_s7 + $0x52c] ss:$20 sps:$4 sm:$0xff]  }
  0xe4   : > { %2974 = vmatpush1.bf16.msra.mxu0 %v5182_v14  ;;  %3179 = vmatpush1.bf16.msra.mxu1 %v5185_v15  ;;  %v6308_v14 = vld [vmem:[%s6767_s0 + $0x10] sm:$0xff] }
  0xe5   : > { %2975 = vmatprep.subr.bf16.mxu0 %v5190_v16  ;;  %3180 = vmatprep.subr.bf16.mxu1 %v5193_v17  ;;  %v5279_v15 = vld [vmem:[%s6125_s7 + $0x534] ss:$20 sps:$4 sm:$0xff]   ;;  %v6313_v16 = vcombine.high %v6308_v14, %v6308_v14 }
  0xe6   : > { %v5274_v17 = vld [vmem:[%s6125_s7 + $0x528] ss:$20 sps:$4 sm:$0xff]  }
  0xe8   : > { %2976 = vmatpush1.bf16.msra.mxu0 %v5188_v18  ;;  %3181 = vmatpush1.bf16.msra.mxu1 %v5191_v19  ;;  %v5277_v18 = vld [vmem:[%s6125_s7 + $0x530] ss:$20 sps:$4 sm:$0xff]   ;;  %v5282_v19 = vld [vmem:[%s6125_s7 + $0x554] ss:$20 sps:$4 sm:$0xff]  }
  0xe9   : > { %2977 = vmatprep.subr.bf16.mxu0 %v5196_v20  ;;  %3182 = vmatprep.subr.bf16.mxu1 %v5199_v21  ;;  %v5285_v20 = vld [vmem:[%s6125_s7 + $0x55c] ss:$20 sps:$4 sm:$0xff]  }
  0xea   : > { %v5280_v21 = vld [vmem:[%s6125_s7 + $0x550] ss:$20 sps:$4 sm:$0xff]  }
  0xec   : > { %2978 = vmatpush1.bf16.msra.mxu0 %v5194_v22  ;;  %3183 = vmatpush1.bf16.msra.mxu1 %v5197_v23  ;;  %v5283_v22 = vld [vmem:[%s6125_s7 + $0x558] ss:$20 sps:$4 sm:$0xff]   ;;  %v5288_v23 = vld [vmem:[%s6125_s7 + $0x57c] ss:$20 sps:$4 sm:$0xff]  }
  0xed   : > { %2979 = vmatprep.subr.bf16.mxu0 %v5202_v24  ;;  %3184 = vmatprep.subr.bf16.mxu1 %v5205_v25  ;;  %v5291_v24 = vld [vmem:[%s6125_s7 + $0x584] ss:$20 sps:$4 sm:$0xff]  }
  0xee   : > { %v5286_v25 = vld [vmem:[%s6125_s7 + $0x578] ss:$20 sps:$4 sm:$0xff]  }
  0xf0   : > { %2980 = vmatpush1.bf16.msra.mxu0 %v5200_v26  ;;  %3185 = vmatpush1.bf16.msra.mxu1 %v5203_v27  ;;  %v5289_v26 = vld [vmem:[%s6125_s7 + $0x580] ss:$20 sps:$4 sm:$0xff]   ;;  %v5294_v27 = vld [vmem:[%s6125_s7 + $0x5a4] ss:$20 sps:$4 sm:$0xff]  }
  0xf1   : > { %2981 = vmatprep.subr.bf16.mxu0 %v5208_v28  ;;  %3186 = vmatprep.subr.bf16.mxu1 %v5211_v29  ;;  %v5297_v28 = vld [vmem:[%s6125_s7 + $0x5ac] ss:$20 sps:$4 sm:$0xff]  }
  0xf2   : > { %v5292_v29 = vld [vmem:[%s6125_s7 + $0x5a0] ss:$20 sps:$4 sm:$0xff]  }
  0xf4   : > { %2982 = vmatpush1.bf16.msra.mxu0 %v5206_v32  ;;  %3187 = vmatpush1.bf16.msra.mxu1 %v5209_v33  ;;  %v5300_v32 = vld [vmem:[%s6125_s7 + $0x5cc] ss:$20 sps:$4 sm:$0xff]   ;;  %v5303_v33 = vld [vmem:[%s6125_s7 + $0x5d4] ss:$20 sps:$4 sm:$0xff]  }
  0xf5   : > { %2983 = vmatprep.subr.bf16.mxu0 %v5214_v34  ;;  %3188 = vmatprep.subr.bf16.mxu1 %v5217_v35  ;;  %v5298_v34 = vld [vmem:[%s6125_s7 + $0x5c8] ss:$20 sps:$4 sm:$0xff]   ;;  %v5301_v35 = vld [vmem:[%s6125_s7 + $0x5d0] ss:$20 sps:$4 sm:$0xff]  }
  0xf8   : > { %2984 = vmatpush1.bf16.msra.mxu0 %v5212_v36  ;;  %3189 = vmatpush1.bf16.msra.mxu1 %v5215_v37  ;;  %v5306_v36 = vld [vmem:[%s6125_s7 + $0x5f4] ss:$20 sps:$4 sm:$0xff]   ;;  %v5309_v37 = vld [vmem:[%s6125_s7 + $0x5fc] ss:$20 sps:$4 sm:$0xff]  }
  0xf9   : > { %2985 = vmatprep.subr.bf16.mxu0 %v5220_v38  ;;  %3190 = vmatprep.subr.bf16.mxu1 %v5223_v39  ;;  %v5304_v38 = vld [vmem:[%s6125_s7 + $0x5f0] ss:$20 sps:$4 sm:$0xff]   ;;  %v5307_v39 = vld [vmem:[%s6125_s7 + $0x5f8] ss:$20 sps:$4 sm:$0xff]  }
  0xfc   : > { %2986 = vmatpush1.bf16.msra.mxu0 %v5218_v40  ;;  %3191 = vmatpush1.bf16.msra.mxu1 %v5221_v41  ;;  %v5312_v40 = vld [vmem:[%s6125_s7 + $0x61c] ss:$20 sps:$4 sm:$0xff]   ;;  %v5315_v41 = vld [vmem:[%s6125_s7 + $0x624] ss:$20 sps:$4 sm:$0xff]  }
  0xfd   : > { %2987 = vmatprep.subr.bf16.mxu0 %v5226_v42  ;;  %3192 = vmatprep.subr.bf16.mxu1 %v5229_v43  ;;  %v5310_v42 = vld [vmem:[%s6125_s7 + $0x618] ss:$20 sps:$4 sm:$0xff]   ;;  %v5313_v43 = vld [vmem:[%s6125_s7 + $0x620] ss:$20 sps:$4 sm:$0xff]  }
 0x100   : > { %2988 = vmatpush1.bf16.msra.mxu0 %v5224_v44  ;;  %3193 = vmatpush1.bf16.msra.mxu1 %v5227_v45  ;;  %v5318_v44 = vld [vmem:[%s6125_s7 + $0x644] ss:$20 sps:$4 sm:$0xff]   ;;  %v5321_v45 = vld [vmem:[%s6125_s7 + $0x64c] ss:$20 sps:$4 sm:$0xff]  }
 0x101   : > { %2989 = vmatprep.subr.bf16.mxu0 %v5232_v46  ;;  %3194 = vmatprep.subr.bf16.mxu1 %v5235_v47  ;;  %v5316_v46 = vld [vmem:[%s6125_s7 + $0x640] ss:$20 sps:$4 sm:$0xff]   ;;  %v5319_v47 = vld [vmem:[%s6125_s7 + $0x648] ss:$20 sps:$4 sm:$0xff]  }
 0x104   : > { %2990 = vmatpush1.bf16.msra.mxu0 %v5230_v48  ;;  %3195 = vmatpush1.bf16.msra.mxu1 %v5233_v50  ;;  %v5324_v48 = vld [vmem:[%s6125_s7 + $0x66c] ss:$20 sps:$4 sm:$0xff]   ;;  %v5327_v50 = vld [vmem:[%s6125_s7 + $0x674] ss:$20 sps:$4 sm:$0xff]  }
 0x105   : > { %2991 = vmatprep.subr.bf16.mxu0 %v5238_v51  ;;  %3196 = vmatprep.subr.bf16.mxu1 %v5241_v52  ;;  %v5322_v51 = vld [vmem:[%s6125_s7 + $0x668] ss:$20 sps:$4 sm:$0xff]   ;;  %v5325_v52 = vld [vmem:[%s6125_s7 + $0x670] ss:$20 sps:$4 sm:$0xff]  }
 0x108   : > { %2992 = vmatpush1.bf16.msra.mxu0 %v5236_v53  ;;  %3197 = vmatpush1.bf16.msra.mxu1 %v5239_v54  ;;  %v5330_v53 = vld [vmem:[%s6125_s7 + $0x694] ss:$20 sps:$4 sm:$0xff]   ;;  %v5333_v54 = vld [vmem:[%s6125_s7 + $0x69c] ss:$20 sps:$4 sm:$0xff]  }
 0x109   : > { %2993 = vmatprep.subr.bf16.mxu0 %v5244_v55  ;;  %3198 = vmatprep.subr.bf16.mxu1 %v5247_v56  ;;  %v5328_v55 = vld [vmem:[%s6125_s7 + $0x690] ss:$20 sps:$4 sm:$0xff]   ;;  %v5331_v56 = vld [vmem:[%s6125_s7 + $0x698] ss:$20 sps:$4 sm:$0xff]  }
 0x10c   : > { %2994 = vmatpush1.bf16.msra.mxu0 %v5242_v57  ;;  %3199 = vmatpush1.bf16.msra.mxu1 %v5245_v58  ;;  %v5336_v57 = vld [vmem:[%s6125_s7 + $0x6bc] ss:$20 sps:$4 sm:$0xff]   ;;  %v5339_v58 = vld [vmem:[%s6125_s7 + $0x6c4] ss:$20 sps:$4 sm:$0xff]  }
 0x10d   : > { %2995 = vmatprep.subr.bf16.mxu0 %v5250_v59  ;;  %3200 = vmatprep.subr.bf16.mxu1 %v5253_v60  ;;  %v5334_v59 = vld [vmem:[%s6125_s7 + $0x6b8] ss:$20 sps:$4 sm:$0xff]   ;;  %v5337_v60 = vld [vmem:[%s6125_s7 + $0x6c0] ss:$20 sps:$4 sm:$0xff]  }
 0x110   : > { %2996 = vmatpush1.bf16.msra.mxu0 %v5248_v61  ;;  %3201 = vmatpush1.bf16.msra.mxu1 %v5251_v62  ;;  %v5342_v61 = vld [vmem:[%s6125_s7 + $0x6e4] ss:$20 sps:$4 sm:$0xff]   ;;  %v5345_v62 = vld [vmem:[%s6125_s7 + $0x6ec] ss:$20 sps:$4 sm:$0xff]  }
 0x111   : > { %2997 = vmatprep.subr.bf16.mxu0 %v5256_v63  ;;  %3202 = vmatprep.subr.bf16.mxu1 %v5259_v0  ;;  %v5340_v63 = vld [vmem:[%s6125_s7 + $0x6e0] ss:$20 sps:$4 sm:$0xff]   ;;  %v5343_v0 = vld [vmem:[%s6125_s7 + $0x6e8] ss:$20 sps:$4 sm:$0xff]  }
 0x114   : > { %2998 = vmatpush1.bf16.msra.mxu0 %v5254_v1  ;;  %3203 = vmatpush1.bf16.msra.mxu1 %v5257_v2  ;;  %v5348_v1 = vld [vmem:[%s6125_s7 + $0x70c] ss:$20 sps:$4 sm:$0xff]   ;;  %v5351_v2 = vld [vmem:[%s6125_s7 + $0x714] ss:$20 sps:$4 sm:$0xff]  }
 0x115   : > { %2999 = vmatprep.subr.bf16.mxu0 %v5262_v3  ;;  %3204 = vmatprep.subr.bf16.mxu1 %v5265_v4  ;;  %v5346_v3 = vld [vmem:[%s6125_s7 + $0x708] ss:$20 sps:$4 sm:$0xff]   ;;  %v5349_v4 = vld [vmem:[%s6125_s7 + $0x710] ss:$20 sps:$4 sm:$0xff]  }
 0x118   : > { %3000 = vmatpush1.bf16.msra.mxu0 %v5260_v5  ;;  %3205 = vmatpush1.bf16.msra.mxu1 %v5263_v7  ;;  %v5354_v5 = vld [vmem:[%s6125_s7 + $0x734] ss:$20 sps:$4 sm:$0xff]   ;;  %v5357_v7 = vld [vmem:[%s6125_s7 + $0x73c] ss:$20 sps:$4 sm:$0xff]  }
 0x119   : > { %3010 = vmatprep.subr.bf16.mxu0 %v5270_v8  ;;  %3215 = vmatprep.subr.bf16.mxu1 %v5273_v9  ;;  %v5352_v8 = vld [vmem:[%s6125_s7 + $0x730] ss:$20 sps:$4 sm:$0xff]   ;;  %v5355_v9 = vld [vmem:[%s6125_s7 + $0x738] ss:$20 sps:$4 sm:$0xff]  }
 0x11b   : > { %3002 = vmatmul.mubr.bf16.vlgmr.msra.gmra.mrb[0].mxu0 %v6300_v10  ;;  %3207 = vmatmul.mubr.bf16.vlgmr.msra.gmra.mrb[0].mxu1 %v6300_v10 }
 0x11c   : > { %3011 = vmatpush1.bf16.msra.mxu0 %v5268_v11  ;;  %3216 = vmatpush1.bf16.msra.mxu1 %v5271_v12  ;;  %v5360_v11 = vld [vmem:[%s6125_s7 + $0x75c] ss:$20 sps:$4 sm:$0xff]   ;;  %v5363_v12 = vld [vmem:[%s6125_s7 + $0x764] ss:$20 sps:$4 sm:$0xff]  }
 0x11d   : > { %3012 = vmatprep.subr.bf16.mxu0 %v5276_v13  ;;  %3217 = vmatprep.subr.bf16.mxu1 %v5279_v15  ;;  %v5358_v13 = vld [vmem:[%s6125_s7 + $0x758] ss:$20 sps:$4 sm:$0xff]   ;;  %v5361_v15 = vld [vmem:[%s6125_s7 + $0x760] ss:$20 sps:$4 sm:$0xff]  }
 0x11e   : > { %3042 = vmatprep.mubr.bf16.mxu0 %v6313_v16  ;;  %3247 = vmatprep.mubr.bf16.mxu1 %v6313_v16 }
 0x120   : > { %3013 = vmatpush1.bf16.msra.mxu0 %v5274_v17  ;;  %3218 = vmatpush1.bf16.msra.mxu1 %v5277_v18  ;;  %v5368_v17 = vld [vmem:[%s6125_s7 + $0x784] ss:$20 sps:$4 sm:$0xff]   ;;  %v5371_v18 = vld [vmem:[%s6125_s7 + $0x78c] ss:$20 sps:$4 sm:$0xff]  }
 0x121   : > { %3014 = vmatprep.subr.bf16.mxu0 %v5282_v19  ;;  %3219 = vmatprep.subr.bf16.mxu1 %v5285_v20  ;;  %v5366_v19 = vld [vmem:[%s6125_s7 + $0x780] ss:$20 sps:$4 sm:$0xff]   ;;  %v6382_v20 = vcombine.low %v6308_v14, %v6308_v14 }
 0x124   : > { %3015 = vmatpush1.bf16.msra.mxu0 %v5280_v21  ;;  %3220 = vmatpush1.bf16.msra.mxu1 %v5283_v22  ;;  %v5369_v21 = vld [vmem:[%s6125_s7 + $0x788] ss:$20 sps:$4 sm:$0xff]  }
 0x125   : > { %3016 = vmatprep.subr.bf16.mxu0 %v5288_v23  ;;  %3221 = vmatprep.subr.bf16.mxu1 %v5291_v24  ;;  %v6388_v22 = vld [vmem:[%s6767_s0 + $0x18] sm:$0xff]  ;;  %v5374_v23 = vld [vmem:[%s6125_s7 + $0x7ac] ss:$20 sps:$4 sm:$0xff]   ;;  %v5377_v24 = vld [vmem:[%s6125_s7 + $0x7b4] ss:$20 sps:$4 sm:$0xff]  }
 0x126   : > { %v6394_v14 = vcombine.high %v6388_v22, %v6388_v22 }
 0x128   : > { %3017 = vmatpush1.bf16.msra.mxu0 %v5286_v25  ;;  %3222 = vmatpush1.bf16.msra.mxu1 %v5289_v26  ;;  %v5372_v25 = vld [vmem:[%s6125_s7 + $0x7a8] ss:$20 sps:$4 sm:$0xff]   ;;  %v5375_v26 = vld [vmem:[%s6125_s7 + $0x7b0] ss:$20 sps:$4 sm:$0xff]  }
 0x129   : > { %3018 = vmatprep.subr.bf16.mxu0 %v5294_v27  ;;  %3223 = vmatprep.subr.bf16.mxu1 %v5297_v28  ;;  %v5380_v27 = vld [vmem:[%s6125_s7 + $0x7d4] ss:$20 sps:$4 sm:$0xff]   ;;  %v5383_v28 = vld [vmem:[%s6125_s7 + $0x7dc] ss:$20 sps:$4 sm:$0xff]  }
 0x12c   : > { %3019 = vmatpush1.bf16.msra.mxu0 %v5292_v29  ;;  %3224 = vmatpush1.bf16.msra.mxu1 %v5295_v30  ;;  %v5378_v29 = vld [vmem:[%s6125_s7 + $0x7d0] ss:$20 sps:$4 sm:$0xff]   ;;  %v5381_v30 = vld [vmem:[%s6125_s7 + $0x7d8] ss:$20 sps:$4 sm:$0xff]  }
 0x12d   : > { %3020 = vmatprep.subr.bf16.mxu0 %v5300_v32  ;;  %3225 = vmatprep.subr.bf16.mxu1 %v5303_v33  ;;  %v5386_v32 = vld [vmem:[%s6125_s7 + $0x7fc] ss:$20 sps:$4 sm:$0xff]   ;;  %v5389_v33 = vld [vmem:[%s6125_s7 + $0x804] ss:$20 sps:$4 sm:$0xff]  }
 0x130   : > { %3021 = vmatpush1.bf16.msra.mxu0 %v5298_v34  ;;  %3226 = vmatpush1.bf16.msra.mxu1 %v5301_v35  ;;  %v5384_v34 = vld [vmem:[%s6125_s7 + $0x7f8] ss:$20 sps:$4 sm:$0xff]   ;;  %v5387_v35 = vld [vmem:[%s6125_s7 + $0x800] ss:$20 sps:$4 sm:$0xff]  }
 0x131   : > { %3022 = vmatprep.subr.bf16.mxu0 %v5306_v36  ;;  %3227 = vmatprep.subr.bf16.mxu1 %v5309_v37  ;;  %v5392_v36 = vld [vmem:[%s6125_s7 + $0x824] ss:$20 sps:$4 sm:$0xff]   ;;  %v5395_v37 = vld [vmem:[%s6125_s7 + $0x82c] ss:$20 sps:$4 sm:$0xff]  }
 0x134   : > { %3023 = vmatpush1.bf16.msra.mxu0 %v5304_v38  ;;  %3228 = vmatpush1.bf16.msra.mxu1 %v5307_v39  ;;  %v5390_v38 = vld [vmem:[%s6125_s7 + $0x820] ss:$20 sps:$4 sm:$0xff]   ;;  %v5393_v39 = vld [vmem:[%s6125_s7 + $0x828] ss:$20 sps:$4 sm:$0xff]  }
 0x135   : > { %3024 = vmatprep.subr.bf16.mxu0 %v5312_v40  ;;  %3229 = vmatprep.subr.bf16.mxu1 %v5315_v41  ;;  %v5398_v40 = vld [vmem:[%s6125_s7 + $0x84c] ss:$20 sps:$4 sm:$0xff]   ;;  %v5401_v41 = vld [vmem:[%s6125_s7 + $0x854] ss:$20 sps:$4 sm:$0xff]  }
 0x138   : > { %3025 = vmatpush1.bf16.msra.mxu0 %v5310_v42  ;;  %3230 = vmatpush1.bf16.msra.mxu1 %v5313_v43  ;;  %v5396_v42 = vld [vmem:[%s6125_s7 + $0x848] ss:$20 sps:$4 sm:$0xff]   ;;  %v5399_v43 = vld [vmem:[%s6125_s7 + $0x850] ss:$20 sps:$4 sm:$0xff]  }
 0x139   : > { %3026 = vmatprep.subr.bf16.mxu0 %v5318_v44  ;;  %3231 = vmatprep.subr.bf16.mxu1 %v5321_v45  ;;  %v5404_v44 = vld [vmem:[%s6125_s7 + $0x874] ss:$20 sps:$4 sm:$0xff]   ;;  %v5407_v45 = vld [vmem:[%s6125_s7 + $0x87c] ss:$20 sps:$4 sm:$0xff]  }
 0x13c   : > { %3027 = vmatpush1.bf16.msra.mxu0 %v5316_v46  ;;  %3232 = vmatpush1.bf16.msra.mxu1 %v5319_v47  ;;  %v5402_v46 = vld [vmem:[%s6125_s7 + $0x870] ss:$20 sps:$4 sm:$0xff]   ;;  %v5405_v47 = vld [vmem:[%s6125_s7 + $0x878] ss:$20 sps:$4 sm:$0xff]  }
 0x13d   : > { %3028 = vmatprep.subr.bf16.mxu0 %v5324_v48  ;;  %3233 = vmatprep.subr.bf16.mxu1 %v5327_v50  ;;  %v5410_v48 = vld [vmem:[%s6125_s7 + $0x89c] ss:$20 sps:$4 sm:$0xff]   ;;  %v5413_v50 = vld [vmem:[%s6125_s7 + $0x8a4] ss:$20 sps:$4 sm:$0xff]  }
 0x140   : > { %3029 = vmatpush1.bf16.msra.mxu0 %v5322_v51  ;;  %3234 = vmatpush1.bf16.msra.mxu1 %v5325_v52  ;;  %v5408_v51 = vld [vmem:[%s6125_s7 + $0x898] ss:$20 sps:$4 sm:$0xff]   ;;  %v5411_v52 = vld [vmem:[%s6125_s7 + $0x8a0] ss:$20 sps:$4 sm:$0xff]  }
 0x141   : > { %3030 = vmatprep.subr.bf16.mxu0 %v5330_v53  ;;  %3235 = vmatprep.subr.bf16.mxu1 %v5333_v54  ;;  %v5416_v53 = vld [vmem:[%s6125_s7 + $0x8c4] ss:$20 sps:$4 sm:$0xff]   ;;  %v5419_v54 = vld [vmem:[%s6125_s7 + $0x8cc] ss:$20 sps:$4 sm:$0xff]  }
 0x144   : > { %3031 = vmatpush1.bf16.msra.mxu0 %v5328_v55  ;;  %3236 = vmatpush1.bf16.msra.mxu1 %v5331_v56  ;;  %v5414_v55 = vld [vmem:[%s6125_s7 + $0x8c0] ss:$20 sps:$4 sm:$0xff]   ;;  %v5417_v56 = vld [vmem:[%s6125_s7 + $0x8c8] ss:$20 sps:$4 sm:$0xff]  }
 0x145   : > { %3032 = vmatprep.subr.bf16.mxu0 %v5336_v57  ;;  %3237 = vmatprep.subr.bf16.mxu1 %v5339_v58  ;;  %v5422_v57 = vld [vmem:[%s6125_s7 + $0x8ec] ss:$20 sps:$4 sm:$0xff]   ;;  %v5425_v58 = vld [vmem:[%s6125_s7 + $0x8f4] ss:$20 sps:$4 sm:$0xff]  }
 0x148   : > { %3033 = vmatpush1.bf16.msra.mxu0 %v5334_v59  ;;  %3238 = vmatpush1.bf16.msra.mxu1 %v5337_v60  ;;  %v5420_v59 = vld [vmem:[%s6125_s7 + $0x8e8] ss:$20 sps:$4 sm:$0xff]   ;;  %v5423_v60 = vld [vmem:[%s6125_s7 + $0x8f0] ss:$20 sps:$4 sm:$0xff]  }
 0x149   : > { %3034 = vmatprep.subr.bf16.mxu0 %v5342_v61  ;;  %3239 = vmatprep.subr.bf16.mxu1 %v5345_v62  ;;  %v5428_v61 = vld [vmem:[%s6125_s7 + $0x914] ss:$20 sps:$4 sm:$0xff]   ;;  %v5431_v62 = vld [vmem:[%s6125_s7 + $0x91c] ss:$20 sps:$4 sm:$0xff]  }
 0x14c   : > { %3035 = vmatpush1.bf16.msra.mxu0 %v5340_v63  ;;  %3240 = vmatpush1.bf16.msra.mxu1 %v5343_v0  ;;  %v5426_v63 = vld [vmem:[%s6125_s7 + $0x910] ss:$20 sps:$4 sm:$0xff]   ;;  %v5429_v0 = vld [vmem:[%s6125_s7 + $0x918] ss:$20 sps:$4 sm:$0xff]  }
 0x14d   : > { %3036 = vmatprep.subr.bf16.mxu0 %v5348_v1  ;;  %3241 = vmatprep.subr.bf16.mxu1 %v5351_v2  ;;  %v5434_v1 = vld [vmem:[%s6125_s7 + $0x93c] ss:$20 sps:$4 sm:$0xff]   ;;  %v5437_v2 = vld [vmem:[%s6125_s7 + $0x944] ss:$20 sps:$4 sm:$0xff]  }
 0x150   : > { %3037 = vmatpush1.bf16.msra.mxu0 %v5346_v3  ;;  %3242 = vmatpush1.bf16.msra.mxu1 %v5349_v4  ;;  %v5432_v3 = vld [vmem:[%s6125_s7 + $0x938] ss:$20 sps:$4 sm:$0xff]   ;;  %v5435_v4 = vld [vmem:[%s6125_s7 + $0x940] ss:$20 sps:$4 sm:$0xff]  }
 0x151   : > { %3038 = vmatprep.subr.bf16.mxu0 %v5354_v5  ;;  %3243 = vmatprep.subr.bf16.mxu1 %v5357_v7  ;;  %v5440_v5 = vld [vmem:[%s6125_s7 + $0x964] ss:$20 sps:$4 sm:$0xff]   ;;  %v5443_v7 = vld [vmem:[%s6125_s7 + $0x96c] ss:$20 sps:$4 sm:$0xff]  }
 0x154   : > { %3039 = vmatpush1.bf16.msra.mxu0 %v5352_v8  ;;  %3244 = vmatpush1.bf16.msra.mxu1 %v5355_v9  ;;  %v5438_v8 = vld [vmem:[%s6125_s7 + $0x960] ss:$20 sps:$4 sm:$0xff]   ;;  %v5441_v9 = vld [vmem:[%s6125_s7 + $0x968] ss:$20 sps:$4 sm:$0xff]  }
 0x155   : > { %3040 = vmatprep.subr.bf16.mxu0 %v5360_v11  ;;  %3245 = vmatprep.subr.bf16.mxu1 %v5363_v12  ;;  %v5446_v11 = vld [vmem:[%s6125_s7 + $0x98c] ss:$20 sps:$4 sm:$0xff]   ;;  %v5449_v12 = vld [vmem:[%s6125_s7 + $0x994] ss:$20 sps:$4 sm:$0xff]  }
 0x158   : > { %3041 = vmatpush1.bf16.msra.mxu0 %v5358_v13  ;;  %3246 = vmatpush1.bf16.msra.mxu1 %v5361_v15  ;;  %v5444_v13 = vld [vmem:[%s6125_s7 + $0x988] ss:$20 sps:$4 sm:$0xff]   ;;  %v5447_v15 = vld [vmem:[%s6125_s7 + $0x990] ss:$20 sps:$4 sm:$0xff]  }
 0x159   : > { %3051 = vmatprep.subr.bf16.mxu0 %v5368_v17  ;;  %3256 = vmatprep.subr.bf16.mxu1 %v5371_v18  ;;  %v5452_v17 = vld [vmem:[%s6125_s7 + $0x9b4] ss:$20 sps:$4 sm:$0xff]   ;;  %v5455_v18 = vld [vmem:[%s6125_s7 + $0x9bc] ss:$20 sps:$4 sm:$0xff]  }
 0x15b   : > { %3043 = vmatmul.mubr.bf16.vlgmr.msra.gmra.mrb[0].mxu0 %v6382_v20  ;;  %3248 = vmatmul.mubr.bf16.vlgmr.msra.gmra.mrb[0].mxu1 %v6382_v20 }
 0x15c   : > { %3052 = vmatpush1.bf16.msra.mxu0 %v5366_v19  ;;  %3257 = vmatpush1.bf16.msra.mxu1 %v5369_v21  ;;  %v5450_v19 = vld [vmem:[%s6125_s7 + $0x9b0] ss:$20 sps:$4 sm:$0xff]   ;;  %v5453_v21 = vld [vmem:[%s6125_s7 + $0x9b8] ss:$20 sps:$4 sm:$0xff]  }
 0x15d   : > { %3053 = vmatprep.subr.bf16.mxu0 %v5374_v23  ;;  %3258 = vmatprep.subr.bf16.mxu1 %v5377_v24  ;;  %v5458_v23 = vld [vmem:[%s6125_s7 + $0x9dc] ss:$20 sps:$4 sm:$0xff]   ;;  %v5461_v24 = vld [vmem:[%s6125_s7 + $0x9e4] ss:$20 sps:$4 sm:$0xff]  }
 0x15e   : > { %3083 = vmatprep.mubr.bf16.mxu0 %v6394_v14  ;;  %3288 = vmatprep.mubr.bf16.mxu1 %v6394_v14 }
 0x160   : > { %3054 = vmatpush1.bf16.msra.mxu0 %v5372_v25  ;;  %3259 = vmatpush1.bf16.msra.mxu1 %v5375_v26  ;;  %v5456_v25 = vld [vmem:[%s6125_s7 + $0x9d8] ss:$20 sps:$4 sm:$0xff]   ;;  %v5459_v26 = vld [vmem:[%s6125_s7 + $0x9e0] ss:$20 sps:$4 sm:$0xff]  }
 0x161   : > { %3055 = vmatprep.subr.bf16.mxu0 %v5380_v27  ;;  %3260 = vmatprep.subr.bf16.mxu1 %v5383_v28  ;;  %v5466_v27 = vld [vmem:[%s6125_s7 + $0xa04] ss:$20 sps:$4 sm:$0xff]   ;;  %v5469_v28 = vld [vmem:[%s6125_s7 + $0xa0c] ss:$20 sps:$4 sm:$0xff]  }
 0x164   : > { %3056 = vmatpush1.bf16.msra.mxu0 %v5378_v29  ;;  %3261 = vmatpush1.bf16.msra.mxu1 %v5381_v30  ;;  %v5464_v29 = vld [vmem:[%s6125_s7 + $0xa00] ss:$20 sps:$4 sm:$0xff]   ;;  %v5467_v30 = vld [vmem:[%s6125_s7 + $0xa08] ss:$20 sps:$4 sm:$0xff]  }
 0x165   : > { %3057 = vmatprep.subr.bf16.mxu0 %v5386_v32  ;;  %3262 = vmatprep.subr.bf16.mxu1 %v5389_v33  ;;  %v6464_v32 = vcombine.low %v6388_v22, %v6388_v22  ;;  %v6469_v33 = vld [vmem:[%s6767_s0 + $0x20] sm:$0xff] }
 0x166   : > { %v5473_v22 = vld [vmem:[%s6125_s7 + $0xa30] ss:$20 sps:$4 sm:$0xff]  }
 0x168   : > { %3058 = vmatpush1.bf16.msra.mxu0 %v5384_v34  ;;  %3263 = vmatpush1.bf16.msra.mxu1 %v5387_v35  ;;  %v5472_v34 = vld [vmem:[%s6125_s7 + $0xa2c] ss:$20 sps:$4 sm:$0xff]   ;;  %v5475_v35 = vld [vmem:[%s6125_s7 + $0xa34] ss:$20 sps:$4 sm:$0xff]  }
 0x169   : > { %3059 = vmatprep.subr.bf16.mxu0 %v5392_v36  ;;  %3264 = vmatprep.subr.bf16.mxu1 %v5395_v37  ;;  %v5470_v36 = vld [vmem:[%s6125_s7 + $0xa28] ss:$20 sps:$4 sm:$0xff]   ;;  %v6476_v37 = vcombine.high %v6469_v33, %v6469_v33 }
 0x16c   : > { %3060 = vmatpush1.bf16.msra.mxu0 %v5390_v38  ;;  %3265 = vmatpush1.bf16.msra.mxu1 %v5393_v39  ;;  %v5478_v38 = vld [vmem:[%s6125_s7 + $0xa54] ss:$20 sps:$4 sm:$0xff]   ;;  %v5481_v39 = vld [vmem:[%s6125_s7 + $0xa5c] ss:$20 sps:$4 sm:$0xff]  }
 0x16d   : > { %3061 = vmatprep.subr.bf16.mxu0 %v5398_v40  ;;  %3266 = vmatprep.subr.bf16.mxu1 %v5401_v41  ;;  %v5476_v40 = vld [vmem:[%s6125_s7 + $0xa50] ss:$20 sps:$4 sm:$0xff]   ;;  %v5479_v41 = vld [vmem:[%s6125_s7 + $0xa58] ss:$20 sps:$4 sm:$0xff]  }
 0x170   : > { %3062 = vmatpush1.bf16.msra.mxu0 %v5396_v42  ;;  %3267 = vmatpush1.bf16.msra.mxu1 %v5399_v43  ;;  %v5484_v42 = vld [vmem:[%s6125_s7 + $0xa7c] ss:$20 sps:$4 sm:$0xff]   ;;  %v5487_v43 = vld [vmem:[%s6125_s7 + $0xa84] ss:$20 sps:$4 sm:$0xff]  }
 0x171   : > { %3063 = vmatprep.subr.bf16.mxu0 %v5404_v44  ;;  %3268 = vmatprep.subr.bf16.mxu1 %v5407_v45  ;;  %v5482_v44 = vld [vmem:[%s6125_s7 + $0xa78] ss:$20 sps:$4 sm:$0xff]   ;;  %v5485_v45 = vld [vmem:[%s6125_s7 + $0xa80] ss:$20 sps:$4 sm:$0xff]  }
 0x174   : > { %3064 = vmatpush1.bf16.msra.mxu0 %v5402_v46  ;;  %3269 = vmatpush1.bf16.msra.mxu1 %v5405_v47  ;;  %v5490_v46 = vld [vmem:[%s6125_s7 + $0xaa4] ss:$20 sps:$4 sm:$0xff]   ;;  %v5493_v47 = vld [vmem:[%s6125_s7 + $0xaac] ss:$20 sps:$4 sm:$0xff]  }
 0x175   : > { %3065 = vmatprep.subr.bf16.mxu0 %v5410_v48  ;;  %3270 = vmatprep.subr.bf16.mxu1 %v5413_v50  ;;  %v5488_v48 = vld [vmem:[%s6125_s7 + $0xaa0] ss:$20 sps:$4 sm:$0xff]   ;;  %v5491_v50 = vld [vmem:[%s6125_s7 + $0xaa8] ss:$20 sps:$4 sm:$0xff]  }
 0x178   : > { %3066 = vmatpush1.bf16.msra.mxu0 %v5408_v51  ;;  %3271 = vmatpush1.bf16.msra.mxu1 %v5411_v52  ;;  %v5496_v51 = vld [vmem:[%s6125_s7 + $0xacc] ss:$20 sps:$4 sm:$0xff]   ;;  %v5499_v52 = vld [vmem:[%s6125_s7 + $0xad4] ss:$20 sps:$4 sm:$0xff]  }
 0x179   : > { %3067 = vmatprep.subr.bf16.mxu0 %v5416_v53  ;;  %3272 = vmatprep.subr.bf16.mxu1 %v5419_v54  ;;  %v5494_v53 = vld [vmem:[%s6125_s7 + $0xac8] ss:$20 sps:$4 sm:$0xff]   ;;  %v5497_v54 = vld [vmem:[%s6125_s7 + $0xad0] ss:$20 sps:$4 sm:$0xff]  }
 0x17c   : > { %3068 = vmatpush1.bf16.msra.mxu0 %v5414_v55  ;;  %3273 = vmatpush1.bf16.msra.mxu1 %v5417_v56  ;;  %v5502_v55 = vld [vmem:[%s6125_s7 + $0xaf4] ss:$20 sps:$4 sm:$0xff]   ;;  %v5505_v56 = vld [vmem:[%s6125_s7 + $0xafc] ss:$20 sps:$4 sm:$0xff]  }
 0x17d   : > { %3069 = vmatprep.subr.bf16.mxu0 %v5422_v57  ;;  %3274 = vmatprep.subr.bf16.mxu1 %v5425_v58  ;;  %v5500_v57 = vld [vmem:[%s6125_s7 + $0xaf0] ss:$20 sps:$4 sm:$0xff]   ;;  %v5503_v58 = vld [vmem:[%s6125_s7 + $0xaf8] ss:$20 sps:$4 sm:$0xff]  }
 0x180   : > { %3070 = vmatpush1.bf16.msra.mxu0 %v5420_v59  ;;  %3275 = vmatpush1.bf16.msra.mxu1 %v5423_v60  ;;  %v5508_v59 = vld [vmem:[%s6125_s7 + $0xb1c] ss:$20 sps:$4 sm:$0xff]   ;;  %v5511_v60 = vld [vmem:[%s6125_s7 + $0xb24] ss:$20 sps:$4 sm:$0xff]  }
 0x181   : > { %3071 = vmatprep.subr.bf16.mxu0 %v5428_v61  ;;  %3276 = vmatprep.subr.bf16.mxu1 %v5431_v62  ;;  %v5506_v61 = vld [vmem:[%s6125_s7 + $0xb18] ss:$20 sps:$4 sm:$0xff]   ;;  %v5509_v62 = vld [vmem:[%s6125_s7 + $0xb20] ss:$20 sps:$4 sm:$0xff]  }
 0x184   : > { %3072 = vmatpush1.bf16.msra.mxu0 %v5426_v63  ;;  %3277 = vmatpush1.bf16.msra.mxu1 %v5429_v0  ;;  %v5514_v63 = vld [vmem:[%s6125_s7 + $0xb44] ss:$20 sps:$4 sm:$0xff]   ;;  %v5517_v0 = vld [vmem:[%s6125_s7 + $0xb4c] ss:$20 sps:$4 sm:$0xff]  }
 0x185   : > { %3073 = vmatprep.subr.bf16.mxu0 %v5434_v1  ;;  %3278 = vmatprep.subr.bf16.mxu1 %v5437_v2  ;;  %v5512_v1 = vld [vmem:[%s6125_s7 + $0xb40] ss:$20 sps:$4 sm:$0xff]   ;;  %v5515_v2 = vld [vmem:[%s6125_s7 + $0xb48] ss:$20 sps:$4 sm:$0xff]  }
 0x188   : > { %3074 = vmatpush1.bf16.msra.mxu0 %v5432_v3  ;;  %3279 = vmatpush1.bf16.msra.mxu1 %v5435_v4  ;;  %v5520_v3 = vld [vmem:[%s6125_s7 + $0xb6c] ss:$20 sps:$4 sm:$0xff]   ;;  %v5523_v4 = vld [vmem:[%s6125_s7 + $0xb74] ss:$20 sps:$4 sm:$0xff]  }
 0x189   : > { %3075 = vmatprep.subr.bf16.mxu0 %v5440_v5  ;;  %3280 = vmatprep.subr.bf16.mxu1 %v5443_v7  ;;  %v5518_v5 = vld [vmem:[%s6125_s7 + $0xb68] ss:$20 sps:$4 sm:$0xff]   ;;  %v5521_v7 = vld [vmem:[%s6125_s7 + $0xb70] ss:$20 sps:$4 sm:$0xff]  }
 0x18c   : > { %3076 = vmatpush1.bf16.msra.mxu0 %v5438_v8  ;;  %3281 = vmatpush1.bf16.msra.mxu1 %v5441_v9  ;;  %v5526_v8 = vld [vmem:[%s6125_s7 + $0xb94] ss:$20 sps:$4 sm:$0xff]   ;;  %v5529_v9 = vld [vmem:[%s6125_s7 + $0xb9c] ss:$20 sps:$4 sm:$0xff]  }
 0x18d   : > { %3077 = vmatprep.subr.bf16.mxu0 %v5446_v11  ;;  %3282 = vmatprep.subr.bf16.mxu1 %v5449_v12  ;;  %v5524_v11 = vld [vmem:[%s6125_s7 + $0xb90] ss:$20 sps:$4 sm:$0xff]   ;;  %v5527_v12 = vld [vmem:[%s6125_s7 + $0xb98] ss:$20 sps:$4 sm:$0xff]  }
 0x190   : > { %3078 = vmatpush1.bf16.msra.mxu0 %v5444_v13  ;;  %3283 = vmatpush1.bf16.msra.mxu1 %v5447_v15  ;;  %v5532_v13 = vld [vmem:[%s6125_s7 + $0xbbc] ss:$20 sps:$4 sm:$0xff]   ;;  %v5535_v15 = vld [vmem:[%s6125_s7 + $0xbc4] ss:$20 sps:$4 sm:$0xff]  }
 0x191   : > { %3079 = vmatprep.subr.bf16.mxu0 %v5452_v17  ;;  %3284 = vmatprep.subr.bf16.mxu1 %v5455_v18  ;;  %v5530_v17 = vld [vmem:[%s6125_s7 + $0xbb8] ss:$20 sps:$4 sm:$0xff]   ;;  %v5533_v18 = vld [vmem:[%s6125_s7 + $0xbc0] ss:$20 sps:$4 sm:$0xff]  }
 0x194   : > { %3080 = vmatpush1.bf16.msra.mxu0 %v5450_v19  ;;  %3285 = vmatpush1.bf16.msra.mxu1 %v5453_v21  ;;  %v5538_v19 = vld [vmem:[%s6125_s7 + $0xbe4] ss:$20 sps:$4 sm:$0xff]   ;;  %v5541_v21 = vld [vmem:[%s6125_s7 + $0xbec] ss:$20 sps:$4 sm:$0xff]  }
 0x195   : > { %3081 = vmatprep.subr.bf16.mxu0 %v5458_v23  ;;  %3286 = vmatprep.subr.bf16.mxu1 %v5461_v24  ;;  %v5536_v23 = vld [vmem:[%s6125_s7 + $0xbe0] ss:$20 sps:$4 sm:$0xff]   ;;  %v5539_v24 = vld [vmem:[%s6125_s7 + $0xbe8] ss:$20 sps:$4 sm:$0xff]  }
 0x198   : > { %3082 = vmatpush1.bf16.msra.mxu0 %v5456_v25  ;;  %3287 = vmatpush1.bf16.msra.mxu1 %v5459_v26  ;;  %v5544_v25 = vld [vmem:[%s6125_s7 + $0xc0c] ss:$20 sps:$4 sm:$0xff]   ;;  %v5547_v26 = vld [vmem:[%s6125_s7 + $0xc14] ss:$20 sps:$4 sm:$0xff]  }
 0x199   : > { %3092 = vmatprep.subr.bf16.mxu0 %v5466_v27  ;;  %3297 = vmatprep.subr.bf16.mxu1 %v5469_v28  ;;  %v5542_v27 = vld [vmem:[%s6125_s7 + $0xc08] ss:$20 sps:$4 sm:$0xff]   ;;  %v5545_v28 = vld [vmem:[%s6125_s7 + $0xc10] ss:$20 sps:$4 sm:$0xff]  }
 0x19b   : > { %3084 = vmatmul.mubr.bf16.vlgmr.msra.gmra.mrb[0].mxu0 %v6464_v32  ;;  %3289 = vmatmul.mubr.bf16.vlgmr.msra.gmra.mrb[0].mxu1 %v6464_v32 }
 0x19c   : > { %3093 = vmatpush1.bf16.msra.mxu0 %v5464_v29  ;;  %3298 = vmatpush1.bf16.msra.mxu1 %v5467_v30  ;;  %v5550_v29 = vld [vmem:[%s6125_s7 + $0xc34] ss:$20 sps:$4 sm:$0xff]   ;;  %v5553_v30 = vld [vmem:[%s6125_s7 + $0xc3c] ss:$20 sps:$4 sm:$0xff]  }
 0x19d   : > { %3094 = vmatprep.subr.bf16.mxu0 %v5472_v34  ;;  %3299 = vmatprep.subr.bf16.mxu1 %v5475_v35  ;;  %v5548_v34 = vld [vmem:[%s6125_s7 + $0xc30] ss:$20 sps:$4 sm:$0xff]   ;;  %v5551_v35 = vld [vmem:[%s6125_s7 + $0xc38] ss:$20 sps:$4 sm:$0xff]  }
 0x19e   : > { %3124 = vmatprep.mubr.bf16.mxu0 %v6476_v37  ;;  %3329 = vmatprep.mubr.bf16.mxu1 %v6476_v37 }
 0x1a0   : > { %3095 = vmatpush1.bf16.msra.mxu0 %v5470_v36  ;;  %3300 = vmatpush1.bf16.msra.mxu1 %v5473_v22  ;;  %v5556_v36 = vld [vmem:[%s6125_s7 + $0xc5c] ss:$20 sps:$4 sm:$0xff]   ;;  %v5559_v22 = vld [vmem:[%s6125_s7 + $0xc64] ss:$20 sps:$4 sm:$0xff]  }
 0x1a1   : > { %3096 = vmatprep.subr.bf16.mxu0 %v5478_v38  ;;  %3301 = vmatprep.subr.bf16.mxu1 %v5481_v39  ;;  %v5554_v38 = vld [vmem:[%s6125_s7 + $0xc58] ss:$20 sps:$4 sm:$0xff]   ;;  %v5557_v39 = vld [vmem:[%s6125_s7 + $0xc60] ss:$20 sps:$4 sm:$0xff]  }
 0x1a4   : > { %3097 = vmatpush1.bf16.msra.mxu0 %v5476_v40  ;;  %3302 = vmatpush1.bf16.msra.mxu1 %v5479_v41  ;;  %v5562_v40 = vld [vmem:[%s6125_s7 + $0x150] ss:$20 sps:$4 sm:$0xff]  }
 0x1a5   : > { %3098 = vmatprep.subr.bf16.mxu0 %v5484_v42  ;;  %3303 = vmatprep.subr.bf16.mxu1 %v5487_v43  ;;  %v5563_v41 = vld [vmem:[%s6125_s7 + $0x3d0] ss:$20 sps:$4 sm:$0xff]  }
 0x1a6   : > { %v5564_v42 = vld [vmem:[%s6125_s7 + $0x10] ss:$20 sps:$4 sm:$0xff]  }
 0x1a7   : > { %v5565_v43 = vld [vmem:[%s6125_s7 + $0x290] ss:$20 sps:$4 sm:$0xff]  }
 0x1a8   : > { %3099 = vmatpush1.bf16.msra.mxu0 %v5482_v44  ;;  %3304 = vmatpush1.bf16.msra.mxu1 %v5485_v45  ;;  %v6545_v44 = vcombine.low %v6469_v33, %v6469_v33  ;;  %v5566_v45 = vld [vmem:[%s6125_s7 + $0x178] ss:$20 sps:$4 sm:$0xff]  }
 0x1a9   : > { %3100 = vmatprep.subr.bf16.mxu0 %v5490_v46  ;;  %3305 = vmatprep.subr.bf16.mxu1 %v5493_v47  ;;  %v5567_v46 = vld [vmem:[%s6125_s7 + $0x3f8] ss:$20 sps:$4 sm:$0xff]  }
 0x1aa   : > { %v5568_v47 = vld [vmem:[%s6125_s7 + $0x38] ss:$20 sps:$4 sm:$0xff]  }
 0x1ab   : > { %v5569_v33 = vld [vmem:[%s6125_s7 + $0x2b8] ss:$20 sps:$4 sm:$0xff]  }
 0x1ac   : > { %3101 = vmatpush1.bf16.msra.mxu0 %v5488_v48  ;;  %3306 = vmatpush1.bf16.msra.mxu1 %v5491_v50  ;;  %v5570_v48 = vld [vmem:[%s6125_s7 + $0x1a0] ss:$20 sps:$4 sm:$0xff]  }
 0x1ad   : > { %3102 = vmatprep.subr.bf16.mxu0 %v5496_v51  ;;  %3307 = vmatprep.subr.bf16.mxu1 %v5499_v52  ;;  %v5571_v50 = vld [vmem:[%s6125_s7 + $0x420] ss:$20 sps:$4 sm:$0xff]  }
 0x1ae   : > { %v5572_v51 = vld [vmem:[%s6125_s7 + $0x60] ss:$20 sps:$4 sm:$0xff]  }
 0x1af   : > { %v5573_v52 = vld [vmem:[%s6125_s7 + $0x2e0] ss:$20 sps:$4 sm:$0xff]  }
 0x1b0   : > { %3103 = vmatpush1.bf16.msra.mxu0 %v5494_v53  ;;  %3308 = vmatpush1.bf16.msra.mxu1 %v5497_v54  ;;  %v5574_v53 = vld [vmem:[%s6125_s7 + $0x1c8] ss:$20 sps:$4 sm:$0xff]  }
 0x1b1   : > { %3104 = vmatprep.subr.bf16.mxu0 %v5502_v55  ;;  %3309 = vmatprep.subr.bf16.mxu1 %v5505_v56  ;;  %v5575_v54 = vld [vmem:[%s6125_s7 + $0x448] ss:$20 sps:$4 sm:$0xff]   ;;  %v5579_v56 = vld [vmem:[%s6125_s7 + $0x470] ss:$20 sps:$4 sm:$0xff]  }
 0x1b2   : > { %v5576_v55 = vld [vmem:[%s6125_s7 + $0x88] ss:$20 sps:$4 sm:$0xff]  }
 0x1b4   : > { %3105 = vmatpush1.bf16.msra.mxu0 %v5500_v57  ;;  %3310 = vmatpush1.bf16.msra.mxu1 %v5503_v58  ;;  %v5580_v57 = vld [vmem:[%s6125_s7 + $0xb0] ss:$20 sps:$4 sm:$0xff]  }
 0x1b5   : > { %3106 = vmatprep.subr.bf16.mxu0 %v5508_v59  ;;  %3311 = vmatprep.subr.bf16.mxu1 %v5511_v60  ;;  %v5581_v58 = vld [vmem:[%s6125_s7 + $0x330] ss:$20 sps:$4 sm:$0xff]   ;;  %v5582_v59 = vld [vmem:[%s6125_s7 + $0x218] ss:$20 sps:$4 sm:$0xff]  }
 0x1b6   : > { %v5583_v60 = vld [vmem:[%s6125_s7 + $0x498] ss:$20 sps:$4 sm:$0xff]  }
 0x1b8   : > { %3107 = vmatpush1.bf16.msra.mxu0 %v5506_v61  ;;  %3312 = vmatpush1.bf16.msra.mxu1 %v5509_v62  ;;  %v5584_v61 = vld [vmem:[%s6125_s7 + $0xd8] ss:$20 sps:$4 sm:$0xff]  }
 0x1b9   : > { %3108 = vmatprep.subr.bf16.mxu0 %v5514_v63  ;;  %3313 = vmatprep.subr.bf16.mxu1 %v5517_v0  ;;  %v5585_v62 = vld [vmem:[%s6125_s7 + $0x358] ss:$20 sps:$4 sm:$0xff]   ;;  %v5586_v63 = vld [vmem:[%s6125_s7 + $0x240] ss:$20 sps:$4 sm:$0xff]  }
 0x1ba   : > { %v5587_v0 = vld [vmem:[%s6125_s7 + $0x4c0] ss:$20 sps:$4 sm:$0xff]  }
 0x1bc   : > { %3109 = vmatpush1.bf16.msra.mxu0 %v5512_v1  ;;  %3314 = vmatpush1.bf16.msra.mxu1 %v5515_v2  ;;  %v5588_v1 = vld [vmem:[%s6125_s7 + $0x100] ss:$20 sps:$4 sm:$0xff]  }
 0x1bd   : > { %3110 = vmatprep.subr.bf16.mxu0 %v5520_v3  ;;  %3315 = vmatprep.subr.bf16.mxu1 %v5523_v4  ;;  %v5589_v2 = vld [vmem:[%s6125_s7 + $0x380] ss:$20 sps:$4 sm:$0xff]   ;;  %v5590_v3 = vld [vmem:[%s6125_s7 + $0x268] ss:$20 sps:$4 sm:$0xff]  }
 0x1be   : > { %v5591_v4 = vld [vmem:[%s6125_s7 + $0x4e8] ss:$20 sps:$4 sm:$0xff]  }
 0x1c0   : > { %3111 = vmatpush1.bf16.msra.mxu0 %v5518_v5  ;;  %3316 = vmatpush1.bf16.msra.mxu1 %v5521_v7  ;;  %v5592_v5 = vld [vmem:[%s6125_s7 + $0x128] ss:$20 sps:$4 sm:$0xff]  }
 0x1c1   : > { %3112 = vmatprep.subr.bf16.mxu0 %v5526_v8  ;;  %3317 = vmatprep.subr.bf16.mxu1 %v5529_v9  ;;  %v5593_v7 = vld [vmem:[%s6125_s7 + $0x3a8] ss:$20 sps:$4 sm:$0xff]   ;;  %v5594_v8 = vld [vmem:[%s6125_s7 + $0x650] ss:$20 sps:$4 sm:$0xff]  }
 0x1c2   : > { %v5596_v9 = vld [vmem:[%s6125_s7 + $0x8d0] ss:$20 sps:$4 sm:$0xff]  }
 0x1c4   : > { %3113 = vmatpush1.bf16.msra.mxu0 %v5524_v11  ;;  %3318 = vmatpush1.bf16.msra.mxu1 %v5527_v12  ;;  %v5595_v11 = vld [vmem:[%s6125_s7 + $0x510] ss:$20 sps:$4 sm:$0xff]  }
 0x1c5   : > { %3114 = vmatprep.subr.bf16.mxu0 %v5532_v13  ;;  %3319 = vmatprep.subr.bf16.mxu1 %v5535_v15  ;;  %v5597_v12 = vld [vmem:[%s6125_s7 + $0x790] ss:$20 sps:$4 sm:$0xff]   ;;  %v5598_v13 = vld [vmem:[%s6125_s7 + $0x678] ss:$20 sps:$4 sm:$0xff]  }
 0x1c6   : > { %v5600_v15 = vld [vmem:[%s6125_s7 + $0x8f8] ss:$20 sps:$4 sm:$0xff]  }
 0x1c8   : > { %3115 = vmatpush1.bf16.msra.mxu0 %v5530_v17  ;;  %3320 = vmatpush1.bf16.msra.mxu1 %v5533_v18  ;;  %v5599_v17 = vld [vmem:[%s6125_s7 + $0x538] ss:$20 sps:$4 sm:$0xff]  }
 0x1c9   : > { %3116 = vmatprep.subr.bf16.mxu0 %v5538_v19  ;;  %3321 = vmatprep.subr.bf16.mxu1 %v5541_v21  ;;  %v5601_v18 = vld [vmem:[%s6125_s7 + $0x7b8] ss:$20 sps:$4 sm:$0xff]   ;;  %v5602_v19 = vld [vmem:[%s6125_s7 + $0x6a0] ss:$20 sps:$4 sm:$0xff]  }
 0x1ca   : > { %v5604_v21 = vld [vmem:[%s6125_s7 + $0x920] ss:$20 sps:$4 sm:$0xff]  }
 0x1cc   : > { %3117 = vmatpush1.bf16.msra.mxu0 %v5536_v23  ;;  %3322 = vmatpush1.bf16.msra.mxu1 %v5539_v24  ;;  %v5606_v23 = vld [vmem:[%s6125_s7 + $0x6c8] ss:$20 sps:$4 sm:$0xff]  }
 0x1cd   : > { %3118 = vmatprep.subr.bf16.mxu0 %v5544_v25  ;;  %3323 = vmatprep.subr.bf16.mxu1 %v5547_v26  ;;  %v5608_v24 = vld [vmem:[%s6125_s7 + $0x948] ss:$20 sps:$4 sm:$0xff]   ;;  %v5612_v26 = vld [vmem:[%s6125_s7 + $0x970] ss:$20 sps:$4 sm:$0xff]  }
 0x1ce   : > { %v5607_v25 = vld [vmem:[%s6125_s7 + $0x588] ss:$20 sps:$4 sm:$0xff]  }
 0x1d0   : > { %3119 = vmatpush1.bf16.msra.mxu0 %v5542_v27  ;;  %3324 = vmatpush1.bf16.msra.mxu1 %v5545_v28  ;;  %v5611_v27 = vld [vmem:[%s6125_s7 + $0x5b0] ss:$20 sps:$4 sm:$0xff]  }
 0x1d1   : > { %3120 = vmatprep.subr.bf16.mxu0 %v5550_v29  ;;  %3325 = vmatprep.subr.bf16.mxu1 %v5553_v30  ;;  %v5613_v28 = vld [vmem:[%s6125_s7 + $0x830] ss:$20 sps:$4 sm:$0xff]   ;;  %v5614_v29 = vld [vmem:[%s6125_s7 + $0x718] ss:$20 sps:$4 sm:$0xff]  }
 0x1d2   : > { %v5616_v30 = vld [vmem:[%s6125_s7 + $0x998] ss:$20 sps:$4 sm:$0xff]  }
 0x1d4   : > { %3121 = vmatpush1.bf16.msra.mxu0 %v5548_v34  ;;  %3326 = vmatpush1.bf16.msra.mxu1 %v5551_v35  ;;  %v5615_v34 = vld [vmem:[%s6125_s7 + $0x5d8] ss:$20 sps:$4 sm:$0xff]  }
 0x1d5   : > { %3122 = vmatprep.subr.bf16.mxu0 %v5556_v36  ;;  %3327 = vmatprep.subr.bf16.mxu1 %v5559_v22  ;;  %v5617_v35 = vld [vmem:[%s6125_s7 + $0x858] ss:$20 sps:$4 sm:$0xff]   ;;  %v5618_v36 = vld [vmem:[%s6125_s7 + $0x740] ss:$20 sps:$4 sm:$0xff]  }
 0x1d6   : > { %v5620_v22 = vld [vmem:[%s6125_s7 + $0x9c0] ss:$20 sps:$4 sm:$0xff]  }
 0x1d8   : > { %3123 = vmatpush1.bf16.msra.mxu0 %v5554_v38  ;;  %3328 = vmatpush1.bf16.msra.mxu1 %v5557_v39  ;;  %v5619_v38 = vld [vmem:[%s6125_s7 + $0x600] ss:$20 sps:$4 sm:$0xff]  }
 0x1d9   : > { %4776 = vmatprep.subr.bf16.mxu0 %v5562_v40  ;;  %4798 = vmatprep.subr.bf16.mxu1 %v5563_v41  ;;  %v5621_v39 = vld [vmem:[%s6125_s7 + $0x880] ss:$20 sps:$4 sm:$0xff]   ;;  %v5622_v40 = vld [vmem:[%s6125_s7 + $0x768] ss:$20 sps:$4 sm:$0xff]  }
 0x1da   : > { %v5624_v41 = vld [vmem:[%s6125_s7 + $0x9e8] ss:$20 sps:$4 sm:$0xff]  }
 0x1db   : > { %3125 = vmatmul.mubr.bf16.vlgmr.msra.gmra.mrb[0].mxu0 %v6545_v44  ;;  %3330 = vmatmul.mubr.bf16.vlgmr.msra.gmra.mrb[0].mxu1 %v6545_v44 }
 0x1dc   : > { %4777 = vmatpush3.bf16.msra.mxu0 %v5564_v42  ;;  %4799 = vmatpush3.bf16.msra.mxu1 %v5565_v43  ;;  %v5623_v42 = vld [vmem:[%s6125_s7 + $0x628] ss:$20 sps:$4 sm:$0xff]  }
 0x1dd   : > { %4778 = vmatprep.subr.bf16.mxu0 %v5566_v45  ;;  %4800 = vmatprep.subr.bf16.mxu1 %v5567_v46  ;;  %v5625_v43 = vld [vmem:[%s6125_s7 + $0x8a8] ss:$20 sps:$4 sm:$0xff]   ;;  %v5626_v45 = vld [vmem:[%s6125_s7 + $0xb50] ss:$20 sps:$4 sm:$0xff]  }
 0x1de   : > { %3370 = vmatprep.mubr.bf16.mxu0 %v6196_v49  ;;  %3410 = vmatprep.mubr.bf16.mxu1 %v6254_v31  ;;  %v5577_v49 = vld [vmem:[%s6125_s7 + $0x308] ss:$20 sps:$4 sm:$0xff]   ;;  %v5578_v31 = vld [vmem:[%s6125_s7 + $0x1f0] ss:$20 sps:$4 sm:$0xff]  }
 0x1df   : > { %v5627_v46 = vld [vmem:[%s6125_s7 + $0xa10] ss:$20 sps:$4 sm:$0xff]  }
 0x1e0   : > { %4779 = vmatpush3.bf16.msra.mxu0 %v5568_v47  ;;  %4801 = vmatpush3.bf16.msra.mxu1 %v5569_v33  ;;  %v5628_v47 = vld [vmem:[%s6125_s7 + $0xb78] ss:$20 sps:$4 sm:$0xff]  }
 0x1e1   : > { %4780 = vmatprep.subr.bf16.mxu0 %v5570_v48  ;;  %4802 = vmatprep.subr.bf16.mxu1 %v5571_v50  ;;  %v5629_v33 = vld [vmem:[%s6125_s7 + $0xa38] ss:$20 sps:$4 sm:$0xff]   ;;  %v5630_v48 = vld [vmem:[%s6125_s7 + $0xba0] ss:$20 sps:$4 sm:$0xff]  }
 0x1e2   : > { %v5631_v50 = vld [vmem:[%s6125_s7 + $0xa60] ss:$20 sps:$4 sm:$0xff]  }
 0x1e4   : > { %4781 = vmatpush3.bf16.msra.mxu0 %v5572_v51  ;;  %4803 = vmatpush3.bf16.msra.mxu1 %v5573_v52  ;;  %v5632_v51 = vld [vmem:[%s6125_s7 + $0xbc8] ss:$20 sps:$4 sm:$0xff]   ;;  %v5635_v52 = vld [vmem:[%s6125_s7 + $0xab0] ss:$20 sps:$4 sm:$0xff]  }
 0x1e5   : > { %4782 = vmatprep.subr.bf16.mxu0 %v5574_v53  ;;  %4804 = vmatprep.subr.bf16.mxu1 %v5575_v54  ;;  %v5637_v53 = vld [vmem:[%s6125_s7 + $0xad8] ss:$20 sps:$4 sm:$0xff]   ;;  %v5638_v54 = vld [vmem:[%s6125_s7 + $0xc40] ss:$20 sps:$4 sm:$0xff]  }
 0x1e8   : > { %4783 = vmatpush3.bf16.msra.mxu0 %v5576_v55  ;;  %4805 = vmatpush3.bf16.msra.mxu1 %v5577_v49  ;;  %v5639_v55 = vld [vmem:[%s6125_s7 + $0xb00] ss:$20 sps:$4 sm:$0xff]   ;;  %v5640_v49 = vld [vmem:[%s6125_s7 + $0xc68] ss:$20 sps:$4 sm:$0xff]  }
 0x1e9   : > { %4784 = vmatprep.subr.bf16.mxu0 %v5578_v31  ;;  %4806 = vmatprep.subr.bf16.mxu1 %v5579_v56  ;;  %v5641_v31 = vld [vmem:[%s6125_s7 + $0xb28] ss:$20 sps:$4 sm:$0xff]   ;;  %v5642_v56 = vld [vmem:[%s6138_s18 + $0x40] sm:$0xff]  }
 0x1ec   : > { %4785 = vmatpush3.bf16.msra.mxu0 %v5580_v57  ;;  %4807 = vmatpush3.bf16.msra.mxu1 %v5581_v58  ;;  %v5643_v57 = vld [vmem:[%s6138_s18 + $0xc0] sm:$0xff]  }
 0x1ed   : > { %4786 = vmatprep.subr.bf16.mxu0 %v5582_v59  ;;  %4808 = vmatprep.subr.bf16.mxu1 %v5583_v60  ;;  %v5644_v58 = vld [vmem:[%s6138_s18] sm:$0xff]   ;;  %v5646_v60 = vld [vmem:[%s6138_s18 + $0x48] sm:$0xff]  }
 0x1ee   : > { %v5645_v59 = vld [vmem:[%s6138_s18 + $0x80] sm:$0xff]  }
 0x1f0   : > { %4787 = vmatpush3.bf16.msra.mxu0 %v5584_v61  ;;  %4809 = vmatpush3.bf16.msra.mxu1 %v5585_v62  ;;  %v5647_v61 = vld [vmem:[%s6138_s18 + $0xc8] sm:$0xff]  }
 0x1f1   : > { %4788 = vmatprep.subr.bf16.mxu0 %v5586_v63  ;;  %4810 = vmatprep.subr.bf16.mxu1 %v5587_v0  ;;  %v5648_v62 = vld [vmem:[%s6138_s18 + $0x8] sm:$0xff]   ;;  %v5651_v0 = vld [vmem:[%s6138_s18 + $0xd0] sm:$0xff]  }
 0x1f2   : > { %v5649_v63 = vld [vmem:[%s6138_s18 + $0x88] sm:$0xff]  }
 0x1f4   : > { %4789 = vmatpush3.bf16.msra.mxu0 %v5588_v1  ;;  %4811 = vmatpush3.bf16.msra.mxu1 %v5589_v2  ;;  %v5652_v1 = vld [vmem:[%s6138_s18 + $0x10] sm:$0xff]  }
 0x1f5   : > { %4790 = vmatprep.subr.bf16.mxu0 %v5590_v3  ;;  %4812 = vmatprep.subr.bf16.mxu1 %v5591_v4  ;;  %v5653_v2 = vld [vmem:[%s6138_s18 + $0x90] sm:$0xff]   ;;  %v5654_v3 = vld [vmem:[%s6138_s18 + $0x58] sm:$0xff]  }
 0x1f6   : > { %v5655_v4 = vld [vmem:[%s6138_s18 + $0xd8] sm:$0xff]  }
 0x1f8   : > { %4791 = vmatpush3.bf16.msra.mxu0 %v5592_v5  ;;  %4813 = vmatpush3.bf16.msra.mxu1 %v5593_v7  ;;  %v5656_v5 = vld [vmem:[%s6138_s18 + $0x18] sm:$0xff]  }
 0x1f9   : > { %4820 = vmatprep.subr.bf16.mxu0 %v5594_v8  ;;  %4842 = vmatprep.subr.bf16.mxu1 %v5596_v9  ;;  %v5657_v7 = vld [vmem:[%s6138_s18 + $0x98] sm:$0xff]   ;;  %v5658_v8 = vld [vmem:[%s6138_s18 + $0x60] sm:$0xff]  }
 0x1fa   : > { %v5659_v9 = vld [vmem:[%s6138_s18 + $0xe0] sm:$0xff]  }
 0x1fb   : > { %3371 = vmatmul.mubr.bf16.vlgmr.msra.gmra.mrb[4].mxu0 %v6220_v6  ;;  %3411 = vmatmul.mubr.bf16.vlgmr.msra.gmra.mrb[4].mxu1 %v6300_v10  ;;  %v5603_v6 = vld [vmem:[%s6125_s7 + $0x560] ss:$20 sps:$4 sm:$0xff]  }
 0x1fc   : > { %4821 = vmatpush3.bf16.msra.mxu0 %v5595_v11  ;;  %4843 = vmatpush3.bf16.msra.mxu1 %v5597_v12  ;;  %v5605_v10 = vld [vmem:[%s6125_s7 + $0x7e0] ss:$20 sps:$4 sm:$0xff]  }
 0x1fd   : > { %4822 = vmatprep.subr.bf16.mxu0 %v5598_v13  ;;  %4844 = vmatprep.subr.bf16.mxu1 %v5600_v15  ;;  %v5660_v11 = vld [vmem:[%s6138_s18 + $0x20] sm:$0xff]   ;;  %v5662_v13 = vld [vmem:[%s6138_s18 + $0x68] sm:$0xff]  }
 0x1fe   : > { %3450 = vmatprep.mubr.bf16.mxu0 %v6313_v16  ;;  %3490 = vmatprep.mubr.bf16.mxu1 %v6394_v14  ;;  %v5609_v16 = vld [vmem:[%s6125_s7 + $0x808] ss:$20 sps:$4 sm:$0xff]   ;;  %v5610_v14 = vld [vmem:[%s6125_s7 + $0x6f0] ss:$20 sps:$4 sm:$0xff]   ;;  %v5661_v12 = vld [vmem:[%s6138_s18 + $0xa0] sm:$0xff]  }
 0x1ff   : > { %v5663_v15 = vld [vmem:[%s6138_s18 + $0xe8] sm:$0xff]  }
 0x200   : > { %4823 = vmatpush3.bf16.msra.mxu0 %v5599_v17  ;;  %4845 = vmatpush3.bf16.msra.mxu1 %v5601_v18  ;;  %v5664_v17 = vld [vmem:[%s6138_s18 + $0x28] sm:$0xff]  }
 0x201   : > { %4824 = vmatprep.subr.bf16.mxu0 %v5602_v19  ;;  %4846 = vmatprep.subr.bf16.mxu1 %v5604_v21  ;;  %v5665_v18 = vld [vmem:[%s6138_s18 + $0xa8] sm:$0xff]   ;;  %v5666_v19 = vld [vmem:[%s6138_s18 + $0x70] sm:$0xff]  }
 0x202   : > { %v5667_v21 = vld [vmem:[%s6138_s18 + $0xf0] sm:$0xff]  }
 0x204   : > { %4825 = vmatpush3.bf16.msra.mxu0 %v5603_v6  ;;  %4847 = vmatpush3.bf16.msra.mxu1 %v5605_v10  ;;  %v5668_v6 = vld [vmem:[%s6138_s18 + $0x30] sm:$0xff]  }
 0x205   : > { %4826 = vmatprep.subr.bf16.mxu0 %v5606_v23  ;;  %4848 = vmatprep.subr.bf16.mxu1 %v5608_v24  ;;  %v5669_v10 = vld [vmem:[%s6138_s18 + $0xb0] sm:$0xff]   ;;  %v5670_v23 = vld [vmem:[%s6138_s18 + $0x78] sm:$0xff]  }
 0x206   : > { %v5671_v24 = vld [vmem:[%s6138_s18 + $0xf8] sm:$0xff]  }
 0x208   : > { %4827 = vmatpush3.bf16.msra.mxu0 %v5607_v25  ;;  %4849 = vmatpush3.bf16.msra.mxu1 %v5609_v16  ;;  %v5672_v25 = vld [vmem:[%s6138_s18 + $0x38] sm:$0xff]  }
 0x209   : > { %4828 = vmatprep.subr.bf16.mxu0 %v5610_v14  ;;  %4850 = vmatprep.subr.bf16.mxu1 %v5612_v26  ;;  %v5673_v16 = vld [vmem:[%s6138_s18 + $0xb8] sm:$0xff]   ;;  %v5898_v14 = vmov 0.0  }
 0x20c   : > { %4829 = vmatpush3.bf16.msra.mxu0 %v5611_v27  ;;  %4851 = vmatpush3.bf16.msra.mxu1 %v5613_v28 }
 0x20d   : > { %4830 = vmatprep.subr.bf16.mxu0 %v5614_v29  ;;  %4852 = vmatprep.subr.bf16.mxu1 %v5616_v30 }
 0x210   : > { %4831 = vmatpush3.bf16.msra.mxu0 %v5615_v34  ;;  %4853 = vmatpush3.bf16.msra.mxu1 %v5617_v35 }
 0x211   : > { %4832 = vmatprep.subr.bf16.mxu0 %v5618_v36  ;;  %4854 = vmatprep.subr.bf16.mxu1 %v5620_v22 }
 0x214   : > { %4833 = vmatpush3.bf16.msra.mxu0 %v5619_v38  ;;  %4855 = vmatpush3.bf16.msra.mxu1 %v5621_v39 }
 0x215   : > { %4834 = vmatprep.subr.bf16.mxu0 %v5622_v40  ;;  %4856 = vmatprep.subr.bf16.mxu1 %v5624_v41 }
 0x218   : > { %4835 = vmatpush3.bf16.msra.mxu0 %v5623_v42  ;;  %4857 = vmatpush3.bf16.msra.mxu1 %v5625_v43 }
 0x219   : > { %4864 = vmatprep.subr.bf16.mxu0 %v5626_v45  ;;  %4886 = vmatprep.subr.bf16.mxu1 %v5642_v56 }
 0x21b   : > { %3451 = vmatmul.mubr.bf16.vlgmr.msra.gmra.mrb[8].mxu0 %v6382_v20  ;;  %3491 = vmatmul.mubr.bf16.vlgmr.msra.gmra.mrb[8].mxu1 %v6464_v32  ;;  %v5633_v20 = vld [vmem:[%s6125_s7 + $0xa88] ss:$20 sps:$4 sm:$0xff]   ;;  %v5634_v32 = vld [vmem:[%s6125_s7 + $0xbf0] ss:$20 sps:$4 sm:$0xff]  }
 0x21c   : > { %4865 = vmatpush3.bf16.msra.mxu0 %v5627_v46  ;;  %3530 = vmatprep.mubr.bf16.mxu0 %v6476_v37  ;;  %v5636_v37 = vld [vmem:[%s6125_s7 + $0xc18] ss:$20 sps:$4 sm:$0xff]  }
 0x21d   : > { %4866 = vmatprep.subr.bf16.mxu0 %v5628_v47  ;;  %4887 = vmatpush3.bf16.msra.mxu1 %v5644_v58 }
 0x21e   : > { %4888 = vmatprep.subr.bf16.mxu1 %v5646_v60 }
 0x220   : > { %4867 = vmatpush3.bf16.msra.mxu0 %v5629_v33 }
 0x221   : > { %4868 = vmatprep.subr.bf16.mxu0 %v5630_v48  ;;  %4889 = vmatpush3.bf16.msra.mxu1 %v5648_v62 }
 0x224   : > { %4869 = vmatpush3.bf16.msra.mxu0 %v5631_v50 }
 0x225   : > { %4870 = vmatprep.subr.bf16.mxu0 %v5632_v51 }
 0x228   : > { %4871 = vmatpush3.bf16.msra.mxu0 %v5633_v20 }
 0x229   : > { %4872 = vmatprep.subr.bf16.mxu0 %v5634_v32 }
 0x22c   : > { %4873 = vmatpush3.bf16.msra.mxu0 %v5635_v52 }
 0x22d   : > { %4874 = vmatprep.subr.bf16.mxu0 %v5636_v37 }
 0x230   : > { %4875 = vmatpush3.bf16.msra.mxu0 %v5637_v53 }
 0x231   : > { %4876 = vmatprep.subr.bf16.mxu0 %v5638_v54 }
 0x234   : > { %4877 = vmatpush3.bf16.msra.mxu0 %v5639_v55 }
 0x235   : > { %4878 = vmatprep.subr.bf16.mxu0 %v5640_v49 }
 0x238   : > { %4879 = vmatpush3.bf16.msra.mxu0 %v5641_v31 }
 0x239   : > { %4908 = vmatprep.subr.bf16.mxu0 %v5643_v57 }
 0x23b   : > { %3531 = vmatmul.mubr.bf16.vlgmr.msra.gmra.mrb[12].mxu0 %v6545_v44  ;;  %v5650_v44 = vld [vmem:[%s6138_s18 + $0x50] sm:$0xff]  }
 0x23c   : > { %4909 = vmatpush3.bf16.msra.mxu0 %v5645_v59  ;;  %4890 = vmatprep.subr.bf16.mxu1 %v5650_v44 }
 0x23d   : > { %4910 = vmatprep.subr.bf16.mxu0 %v5647_v61  ;;  %4891 = vmatpush3.bf16.msra.mxu1 %v5652_v1 }
 0x23e   : > { %4892 = vmatprep.subr.bf16.mxu1 %v5654_v3 }
 0x240   : > { %4911 = vmatpush3.bf16.msra.mxu0 %v5649_v63 }
 0x241   : > { %4912 = vmatprep.subr.bf16.mxu0 %v5651_v0  ;;  %4893 = vmatpush3.bf16.msra.mxu1 %v5656_v5 }
 0x242   : > { %4894 = vmatprep.subr.bf16.mxu1 %v5658_v8 }
 0x244   : > { %4913 = vmatpush3.bf16.msra.mxu0 %v5653_v2 }
 0x245   : > { %4914 = vmatprep.subr.bf16.mxu0 %v5655_v4  ;;  %4895 = vmatpush3.bf16.msra.mxu1 %v5660_v11 }
 0x246   : > { %4896 = vmatprep.subr.bf16.mxu1 %v5662_v13 }
 0x248   : > { %4915 = vmatpush3.bf16.msra.mxu0 %v5657_v7 }
 0x249   : > { %4916 = vmatprep.subr.bf16.mxu0 %v5659_v9  ;;  %4897 = vmatpush3.bf16.msra.mxu1 %v5664_v17 }
 0x24a   : > { %4898 = vmatprep.subr.bf16.mxu1 %v5666_v19 }
 0x24c   : > { %4917 = vmatpush3.bf16.msra.mxu0 %v5661_v12 }
 0x24d   : > { %4918 = vmatprep.subr.bf16.mxu0 %v5663_v15  ;;  %4899 = vmatpush3.bf16.msra.mxu1 %v5668_v6 }
 0x24e   : > { %4900 = vmatprep.subr.bf16.mxu1 %v5670_v23 }
 0x250   : > { %4919 = vmatpush3.bf16.msra.mxu0 %v5665_v18 }
 0x251   : > { %4920 = vmatprep.subr.bf16.mxu0 %v5667_v21  ;;  %4901 = vmatpush3.bf16.msra.mxu1 %v5672_v25 }
 0x252   : > { %4939 = vmatprep.subr.bf16.mxu1 %v5898_v14 }
 0x254   : > { %4921 = vmatpush3.bf16.msra.mxu0 %v5669_v10 }
 0x255   : > { %4922 = vmatprep.subr.bf16.mxu0 %v5671_v24 }
 0x258   : > { %4923 = vmatpush3.bf16.msra.mxu0 %v5673_v16 }
 0x2ae   : > { %v3126_v26 = vpop.f32.mrb[0].mxu0  ;;  %v3331_v27 = vpop.f32.mrb[0].mxu1 }
 0x2af   : > { %v3538_v28 = vrot.slane %v3126_v26, 4  ;;  %v3550_v29 = vrot.slane %v3331_v27, 4  ;;  %v3128_v30 = vpop.f32.mrb[1].mxu0  ;;  %v3333_v34 = vpop.f32.mrb[1].mxu1 }
 0x2b0   : > { %v3544_v35 = vrot.slane %v3128_v30, 4  ;;  %v3556_v36 = vrot.slane %v3333_v34, 4  ;;  %v3130_v22 = vpop.f32.mrb[2].mxu0  ;;  %v3335_v38 = vpop.f32.mrb[2].mxu1 }
 0x2b1   : > { %v3539_v39 = vadd.f32 %v3538_v28, %v3126_v26  ;;  %v3551_v40 = vadd.f32 %v3550_v29, %v3331_v27  ;;  %v3131_v41 = vpop.f32.mrb[3].mxu0  ;;  %v3336_v42 = vpop.f32.mrb[3].mxu1 }
 0x2b2   : > { %v3545_v43 = vadd.f32 %v3544_v35, %v3128_v30  ;;  %v3557_v45 = vadd.f32 %v3556_v36, %v3333_v34  ;;  %v3636_v36 = vlaneseq }
 0x2b3   : > { %v3540_v46 = vrot.slane %v3539_v39, 2  ;;  %v3552_v47 = vrot.slane %v3551_v40, 2 }
 0x2b4   : > { %v3546_v33 = vrot.slane %v3545_v43, 2  ;;  %v3558_v48 = vrot.slane %v3557_v45, 2 }
 0x2b5   : > { %v3541_v50 = vadd.f32 %v3540_v46, %v3539_v39  ;;  %v3553_v51 = vadd.f32 %v3552_v47, %v3551_v40 }
 0x2b6   : > { %v3547_v20 = vadd.f32 %v3546_v33, %v3545_v43  ;;  %v3559_v32 = vadd.f32 %v3558_v48, %v3557_v45 }
 0x2b7   : > { %v3542_v52 = vrot.slane %v3541_v50, 1  ;;  %v3554_v37 = vrot.slane %v3553_v51, 1 }
 0x2b8   : > { %v3548_v53 = vrot.slane %v3547_v20, 1  ;;  %v3560_v54 = vrot.slane %v3559_v32, 1 }
 0x2b9   : > { %v3543_v55 = vadd.f32 %v3542_v52, %v3541_v50  ;;  %v3555_v49 = vadd.f32 %v3554_v37, %v3553_v51  ;;  %v6684_v52 = vshrl.u32 %v3636_v36, 7 }
 0x2ba   : > { %v3549_v31 = vadd.f32 %v3548_v53, %v3547_v20  ;;  %v3561_v56 = vadd.f32 %v3560_v54, %v3559_v32  ;;  %v6690_v54 = vld [vmem:[%s6132_s27] ss:$2 sm:$0x1f] }
 0x2bb   : > { %v3569_v57 = vmul.f32 0.125, %v3543_v55  ;;  %v3571_v58 = vmul.f32 0.125, %v3555_v49  ;;  %v3638_v53 = vsub.s32 0, %v6684_v52  ;;  %v3646_v55 = vsub.s32 2, %v6684_v52 }
 0x2bc   : > { %v3570_v59 = vmul.f32 0.125, %v3549_v31  ;;  %v3572_v60 = vmul.f32 0.125, %v3561_v56  ;;  %v3642_v49 = vsub.s32 1, %v6684_v52  ;;  %v6695_v31 = vld [vmem:[%s6132_s27 + $0x1] ss:$2 sm:$0x1f] }
 0x2bd   : > { %v6668_v61 = vsub.f32 %v3126_v26, %v3569_v57  ;;  %v6670_v62 = vsub.f32 %v3331_v27, %v3571_v58  ;;  %v3650_v56 = vsub.s32 3, %v6684_v52  ;;  %v3639_v57 = vrot.slane %v6690_v54, %v3638_v53 }
 0x2be   : > { %v6672_v63 = vsub.f32 %v3128_v30, %v3570_v59  ;;  %v6674_v44 = vsub.f32 %v3333_v34, %v3572_v60  ;;  %v3647_v59 = vrot.slane %v6690_v54, %v3646_v55 }
 0x2bf   : > { %v3579_v0 = vmul.f32 %v6668_v61, %v6668_v61  ;;  %v3581_v1 = vmul.f32 %v6670_v62, %v6670_v62 }
 0x2c0   : > { %v3580_v2 = vmul.f32 %v6672_v63, %v6672_v63  ;;  %v3582_v3 = vmul.f32 %v6674_v44, %v6674_v44 }
 0x2c1   : > { %v3584_v4 = vrot.slane %v3579_v0, 4  ;;  %v3596_v5 = vrot.slane %v3581_v1, 4 }
 0x2c2   : > { %v3590_v7 = vrot.slane %v3580_v2, 4  ;;  %v3602_v8 = vrot.slane %v3582_v3, 4 }
 0x2c3   : > { %v3585_v9 = vadd.f32 %v3584_v4, %v3579_v0  ;;  %v3597_v11 = vadd.f32 %v3596_v5, %v3581_v1  ;;  %v3643_v1 = vrot.slane %v6690_v54, %v3642_v49  ;;  %v3651_v5 = vrot.slane %v6690_v54, %v3650_v56 }
 0x2c4   : > { %v3591_v12 = vadd.f32 %v3590_v7, %v3580_v2  ;;  %v3603_v13 = vadd.f32 %v3602_v8, %v3582_v3  ;;  %v3672_v2 = vrot.slane %v6695_v31, %v3638_v53  ;;  %v3680_v7 = vrot.slane %v6695_v31, %v3646_v55 }
 0x2c5   : > { %v3586_v15 = vrot.slane %v3585_v9, 2  ;;  %v3598_v17 = vrot.slane %v3597_v11, 2 }
 0x2c6   : > { %v3592_v18 = vrot.slane %v3591_v12, 2  ;;  %v3604_v19 = vrot.slane %v3603_v13, 2 }
 0x2c7   : > { %v3587_v21 = vadd.f32 %v3586_v15, %v3585_v9  ;;  %v3599_v6 = vadd.f32 %v3598_v17, %v3597_v11  ;;  %v3684_v15 = vrot.slane %v6695_v31, %v3650_v56 }
 0x2c8   : > { %v3593_v10 = vadd.f32 %v3592_v18, %v3591_v12  ;;  %v3605_v23 = vadd.f32 %v3604_v19, %v3603_v13  ;;  %v3676_v12 = vrot.slane %v6695_v31, %v3642_v49 }
 0x2c9   : > { %v3588_v24 = vrot.slane %v3587_v21, 1  ;;  %v3600_v25 = vrot.slane %v3599_v6, 1 }
 0x2ca   : > { %v3594_v16 = vrot.slane %v3593_v10, 1  ;;  %v3606_v26 = vrot.slane %v3605_v23, 1 }
 0x2cb   : > { %v3589_v27 = vadd.f32 %v3588_v24, %v3587_v21  ;;  %v3601_v28 = vadd.f32 %v3600_v25, %v3599_v6 }
 0x2cc   : > { %v3595_v29 = vadd.f32 %v3594_v16, %v3593_v10  ;;  %v3607_v30 = vadd.f32 %v3606_v26, %v3605_v23  ;;  %v5674_v16 = vld [vmem:[%s6138_s18 + $0x100] sm:$0xff]  }
 0x2cd   : > { %v3614_v34 = vmul.f32 0.125, %v3589_v27  ;;  %v3616_v35 = vmul.f32 0.125, %v3601_v28  ;;  %v5675_v28 = vld [vmem:[%s6138_s18 + $0x108] sm:$0xff]  }
 0x2ce   : > { %v3615_v22 = vmul.f32 0.125, %v3595_v29  ;;  %v3617_v38 = vmul.f32 0.125, %v3607_v30  ;;  %v4792_v39 = vpop.f32.mrb[4].mxu0  ;;  %v4814_v40 = vpop.f32.mrb[4].mxu1 }
 0x2cf   : > { %v3619_v41 = vadd.f32 1e-05, %v3614_v34  ;;  %v3621_v42 = vadd.f32 1e-05, %v3616_v35  ;;  %v4793_v43 = vpop.f32.mrb[5].mxu0  ;;  %v4815_v45 = vpop.f32.mrb[5].mxu1 }
 0x2d0   : > { %v3620_v46 = vadd.f32 1e-05, %v3615_v22  ;;  %v3622_v47 = vadd.f32 1e-05, %v3617_v38  ;;  %v4794_v33 = vadd.f32 %v4793_v43, %v4792_v39  ;;  %v4816_v48 = vadd.f32 %v4815_v45, %v4814_v40  ;;  %v4795_v50 = vpop.f32.mrb[6].mxu0  ;;  %v4817_v51 = vpop.f32.mrb[6].mxu1 }
 0x2d1   : > { %5682 = vrsqrt.f32 %v3619_v41  ;;  %v4796_v20 = vpop.f32.mrb[7].mxu0  ;;  %v4818_v32 = vpop.f32.mrb[7].mxu1  ;;  %v5676_v34 = vld [vmem:[%s6138_s18 + $0x110] sm:$0xff]   ;;  %v5677_v45 = vld [vmem:[%s6138_s18 + $0x118] sm:$0xff]  }
 0x2d2   : > { %5684 = vrsqrt.f32 %v3621_v42  ;;  %v6686_v37 = vadd.f32 %v4816_v48, %v4794_v33  ;;  %v5679_v33 = vld [vmem:[%s6138_s18 + $0x128] sm:$0xff]   ;;  %v5680_v48 = vld [vmem:[%s6138_s18 + $0x130] sm:$0xff]   ;;  %v5681_v50 = vld [vmem:[%s6138_s18 + $0x138] sm:$0xff]  }
 0x2d3   : > { %5686 = vrsqrt.f32 %v3620_v46 }
 0x2d4   : > { %5688 = vrsqrt.f32 %v3622_v47  ;;  %v5678_v47 = vld [vmem:[%s6138_s18 + $0x120] sm:$0xff]  }
 0x2db   : > { %v5683_v58 = vpop.eup %5682 }
 0x2dc   : > { %v5685_v60 = vpop.eup %5684  ;;  %v3629_v0 = vmul.f32 %v5683_v58, %v6668_v61 }
 0x2dd   : > { %v5687_v3 = vpop.eup %5686  ;;  %v3631_v4 = vmul.f32 %v5685_v60, %v6670_v62 }
 0x2de   : > { %v5689_v8 = vpop.eup %5688  ;;  %v3661_v9 = vmul.f32 %v3639_v57, %v3629_v0  ;;  %v3630_v11 = vmul.f32 %v5687_v3, %v6672_v63 }
 0x2df   : > { %v3663_v13 = vmul.f32 %v3647_v59, %v3631_v4  ;;  %v3632_v61 = vmul.f32 %v5689_v8, %v6674_v44 }
 0x2e0   : > { %v3662_v17 = vmul.f32 %v3643_v1, %v3630_v11  ;;  %v3694_v18 = vadd.f32 %v3672_v2, %v3661_v9 }
 0x2e1   : > { %v3664_v19 = vmul.f32 %v3651_v5, %v3632_v61  ;;  %v3696_v62 = vadd.f32 %v3680_v7, %v3663_v13 }
 0x2e2   : > { %v3695_v21 = vadd.f32 %v3676_v12, %v3662_v17  ;;  %v3699_v10 = vmax.f32 %v3694_v18, 0.0  ;;  %v3654_v12 = vsub.s32 4, %v6684_v52 }
 0x2e3   : > { %v3697_v6 = vadd.f32 %v3684_v15, %v3664_v19  ;;  %v3701_v24 = vmax.f32 %v3696_v62, 0.0 }
 0x2e4   : > { %v3700_v23 = vmax.f32 %v3695_v21, 0.0  ;;  %v3705_v27 = vpack.c.bf16 %v3699_v10, %v3699_v10  ;;  %v3655_v13 = vrot.slane %v6690_v54, %v3654_v12  ;;  %v3688_v17 = vrot.slane %v6695_v31, %v3654_v12 }
 0x2e5   : > { %v3702_v25 = vmax.f32 %v3697_v6, 0.0  ;;  %v3707_v44 = vpack.c.bf16 %v3701_v24, %v3701_v24 }
 0x2e6   : > { %v3706_v63 = vpack.c.bf16 %v3700_v23, %v3700_v23 }
 0x2e7   : > { %v3708_v26 = vpack.c.bf16 %v3702_v25, %v3702_v25 }
 0x2e8   : > { %4062 = vmatprep.mubr.bf16.mxu1 %v3706_v63 }
 0x2e9   : > { %4102 = vmatprep.mubr.bf16.mxu0 %v3708_v26  ;;  %4063 = vmatmul.mubr.bf16.vlgmr.msra.gmra.mrb[12].mxu1 %v3705_v27 }
 0x2ea   : > { %4103 = vmatmul.mubr.bf16.vlgmr.msra.gmra.mrb[16].mxu0 %v3707_v44  ;;  %4940 = vmatpush3.bf16.msra.mxu1 %v5674_v16  ;;  %v3704_v44 = vld [vmem:[#allocation10] sm:$0xff] }
 0x2eb   : > { %4941 = vmatprep.subr.bf16.mxu1 %v5898_v14  ;;  %4955 = vmatprep.mubr.msk.bf16.mxu1 %vm5899_vm0, %v5898_v14 }
 0x2ee   : > { %v4836_v29 = vpop.f32.mrb[8].mxu0  ;;  %v4858_v30 = vpop.f32.mrb[8].mxu1  ;;  %4942 = vmatpush3.bf16.msra.mxu1 %v5675_v28 }
 0x2ef   : > { %v4837_v35 = vpop.f32.mrb[9].mxu0  ;;  %v4859_v36 = vpop.f32.mrb[9].mxu1  ;;  %4943 = vmatprep.subr.bf16.mxu1 %v5898_v14 }
 0x2f0   : > { %v4838_v22 = vadd.f32 %v4837_v35, %v4836_v29  ;;  %v4839_v38 = vpop.f32.mrb[10].mxu0  ;;  %v4860_v39 = vadd.f32 %v4859_v36, %v4858_v30  ;;  %v4861_v40 = vpop.f32.mrb[10].mxu1 }
 0x2f1   : > { %v4840_v41 = vpop.f32.mrb[11].mxu0  ;;  %v4862_v42 = vpop.f32.mrb[11].mxu1 }
 0x2f2   : > { %v3453_v43 = vadd.f32 %v4838_v22, %v6686_v37  ;;  %4944 = vmatpush3.bf16.msra.mxu1 %v5676_v34 }
 0x2f3   : > { %4945 = vmatprep.subr.bf16.mxu1 %v5898_v14 }
 0x2f4   : > { %v3493_v46 = vadd.f32 %v4860_v39, %v3453_v43 }
 0x2f6   : > { %4946 = vmatpush3.bf16.msra.mxu1 %v5677_v45 }
 0x2f7   : > { %4947 = vmatprep.subr.bf16.mxu1 %v5898_v14 }
 0x2fa   : > { %4948 = vmatpush3.bf16.msra.mxu1 %v5678_v47 }
 0x2fb   : > { %4949 = vmatprep.subr.bf16.mxu1 %v5898_v14 }
 0x2fe   : > { %4950 = vmatpush3.bf16.msra.mxu1 %v5679_v33 }
 0x2ff   : > { %4951 = vmatprep.subr.bf16.mxu1 %v5898_v14 }
 0x302   : > { %4952 = vmatpush3.bf16.msra.mxu1 %v5680_v48 }
 0x303   : > { %4953 = vmatprep.subr.bf16.mxu1 %v5898_v14 }
 0x306   : > { %4954 = vmatpush3.bf16.msra.mxu1 %v5681_v50 }
 0x30e   : > { %v4880_v51 = vpop.f32.mrb[12].mxu0 }
 0x30f   : > { %v4881_v20 = vpop.f32.mrb[13].mxu0 }
 0x310   : > { %v4882_v32 = vadd.f32 %v4881_v20, %v4880_v51  ;;  %v4883_v37 = vpop.f32.mrb[14].mxu0 }
 0x311   : > { %v4884_v53 = vpop.f32.mrb[15].mxu0 }
 0x312   : > { %v3533_v55 = vadd.f32 %v4882_v32, %v3493_v46 }
 0x314   : > { %v3562_v49 = vrot.slane %v3533_v55, 4 }
 0x316   : > { %v3563_v56 = vadd.f32 %v3562_v49, %v3533_v55 }
 0x318   : > { %v3564_v57 = vrot.slane %v3563_v56, 2 }
 0x31a   : > { %v3565_v58 = vadd.f32 %v3564_v57, %v3563_v56  ;;  %v4768_v56 = vld [vmem:[#allocation8 + $0x1] ss:$0 sm:$0xff] (!%p4766_p0) }
 0x31c   : > { %v3566_v59 = vrot.slane %v3565_v58, 1 }
 0x31e   : > { %v3567_v60 = vadd.f32 %v3566_v59, %v3565_v58 }
 0x320   : > { %v3573_v0 = vmul.f32 0.125, %v3567_v60 }
 0x322   : > { %v3578_v1 = vsub.f32 %v3533_v55, %v3573_v0  ;;  %v4767_v55 = vld [vmem:[#allocation8] ss:$0 sm:$0xff] (!%p4766_p0) }
 0x324   : > { %v3583_v2 = vmul.f32 %v3578_v1, %v3578_v1 }
 0x326   : > { %v3608_v3 = vrot.slane %v3583_v2, 4 }
 0x328   : > { %v3609_v4 = vadd.f32 %v3608_v3, %v3583_v2 }
 0x32a   : > { %v3610_v5 = vrot.slane %v3609_v4, 2 }
 0x32c   : > { %v3611_v14 = vadd.f32 %v3610_v5, %v3609_v4 }
 0x32e   : > { %v3612_v7 = vrot.slane %v3611_v14, 1 }
 0x330   : > { %v3613_v8 = vadd.f32 %v3612_v7, %v3611_v14 }
 0x332   : > { %v3618_v9 = vmul.f32 0.125, %v3613_v8 }
 0x334   : > { %v3623_v11 = vadd.f32 1e-05, %v3618_v9 }
 0x336   : > { %5690 = vrsqrt.f32 %v3623_v11 }
 0x340   : > { %v5691_v61 = vpop.eup %5690 }
 0x341   : > { %v3633_v15 = vmul.f32 %v5691_v61, %v3578_v1 }
 0x343   : > { %v3665_v18 = vmul.f32 %v3655_v13, %v3633_v15 }
 0x345   : > { %v3698_v19 = vadd.f32 %v3688_v17, %v3665_v18 }
 0x347   : > { %v3703_v62 = vmax.f32 %v3698_v19, 0.0 }
 0x349   : > { %v3709_v21 = vpack.c.bf16 %v3703_v62, %v3703_v62 }
 0x34b   : > { %4956 = vmatmul.mubr.bf16.vlgmr.msra.gmra.mrb[16].mxu1 %v3709_v21 }
 0x3bc   : > { %v4902_v6 = vpop.f32.mrb[12].mxu1 }
 0x3bd   : > { %v4924_v10 = vpop.f32.mrb[16].mxu0  ;;  %v4903_v23 = vpop.f32.mrb[13].mxu1 }
 0x3be   : > { %v4904_v24 = vadd.f32 %v4903_v23, %v4902_v6  ;;  %v4925_v25 = vpop.f32.mrb[17].mxu0  ;;  %v4905_v63 = vpop.f32.mrb[14].mxu1 }
 0x3bf   : > { %v4926_v16 = vadd.f32 %v4925_v25, %v4924_v10  ;;  %v4927_v26 = vpop.f32.mrb[18].mxu0  ;;  %v4906_v52 = vpop.f32.mrb[15].mxu1 }
 0x3c0   : > { %v4928_v27 = vpop.f32.mrb[19].mxu0 }
 0x3c1   : > { %v4105_v54 = vadd.f32 %v4926_v16, %v4904_v24 }
 0x41d   : > { %4155 = sbr.rel (%p4766_p0) target bundleno = 1278 (0x4fe), region = 64 }
 0x41e   : > { %v4144_v28 = vpop.f32.mrb[16].mxu1 }
 0x41f   : > { %v4145_v29 = vadd.f32 %v4144_v28, %v4105_v54  ;;  %v4957_v31 = vpop.f32.mrb[17].mxu1 }
 0x420   : > { %v4147_v30 = vpop.f32.mrb[18].mxu1 }
 0x421   : > { %v4150_v34 = vadd.f32 %v4145_v29, %v3704_v44  ;;  %v4958_v35 = vpop.f32.mrb[19].mxu1 }
 0x423   : > { %4151 = vst [vmem:[#allocation10] sm:$0xff] %v4150_v34 }
 0x42a   : > { %v4156_v36 = vld [vmem:[#allocation10] sm:$0xff] }
 0x42b   : > { %v4157_v22 = vrot.slane %v4156_v36, 4 }
 0x42d   : > { %v4158_v38 = vadd.f32 %v4157_v22, %v4156_v36 }
 0x42f   : > { %v4159_v39 = vrot.slane %v4158_v38, 2 }
 0x431   : > { %v4160_v40 = vadd.f32 %v4159_v39, %v4158_v38 }
 0x433   : > { %v4161_v41 = vrot.slane %v4160_v40, 1 }
 0x435   : > { %v4162_v42 = vadd.f32 %v4161_v41, %v4160_v40 }
 0x437   : > { %v4163_v43 = vmul.f32 0.125, %v4162_v42 }
 0x439   : > { %v4164_v45 = vsub.f32 %v4156_v36, %v4163_v43 }
 0x43b   : > { %v4165_v46 = vmul.f32 %v4164_v45, %v4164_v45 }
 0x43d   : > { %v4166_v47 = vrot.slane %v4165_v46, 4 }
 0x43f   : > { %v4167_v33 = vadd.f32 %v4166_v47, %v4165_v46 }
 0x441   : > { %v4168_v48 = vrot.slane %v4167_v33, 2 }
 0x443   : > { %v4169_v50 = vadd.f32 %v4168_v48, %v4167_v33 }
 0x445   : > { %v4170_v51 = vrot.slane %v4169_v50, 1 }
 0x447   : > { %v4171_v20 = vadd.f32 %v4170_v51, %v4169_v50 }
 0x449   : > { %v4172_v32 = vmul.f32 0.125, %v4171_v20 }
 0x44b   : > { %v4173_v37 = vadd.f32 1e-05, %v4172_v32 }
 0x44d   : > { %5692 = vrsqrt.f32 %v4173_v37 }
 0x457   : > { %v5693_v53 = vpop.eup %5692 }
 0x458   : > { %v4175_v49 = vmul.f32 %v5693_v53, %v4164_v45 }
 0x45a   : > { %v4181_v57 = vmul.f32 %v4767_v55, %v4175_v49 }
 0x45c   : > { %v4187_v58 = vadd.f32 %v4768_v56, %v4181_v57 }
 0x45e   : > { %v4188_v59 = vmul.f32 %v4187_v58, %v4187_v58 }
 0x460   : > { %4189 = vadd.xlane.f32.xlu0 %v4188_v59 }
 0x4ed   : > { %v4190_v60 = vpop.xlane.xlu0 %4189 }
 0x4ee   : > { %v4191_v0 = vmax.f32 %v4190_v60, 1e-24 }
 0x4f0   : > { %5694 = vrsqrt.f32 %v4191_v0 }
 0x4fa   : > { %v5695_v1 = vpop.eup %5694 }
 0x4fb   : > { %v4193_v2 = vmul.f32 %v5695_v1, %v4187_v58 }
 0x4fd   : > { %4194 = vst [vmem:[#allocation10] sm:$0xff] %v4193_v2 }
 0x4fe PF: > { %p5028_p4 = scmp.eq.s32.totalorder %s6014_s11, 1  ;;  %s5900_s10 = smov [#allocation10]  }
 0x4ff   : > { %s4202_s15 = sshll.u32 %s5900_s10, 4  ;;  %s4203_s15 = int_to_ptr.vmem [resolvable:$true] %s4202_s15 }
 0x500   : > { %s5814_s12 = scalar_lea.vmem %s4203_s15, 128  ;;  %p5821_p7 = scmp.lt.s32.totalorder %s4203_s15, %s4203_s15 }
 0x501   : > { %p5815_p1 = scmp.ne.s32.totalorder %s4203_s15, %s5814_s12  ;;  %p5822_p12 = scmp.lt.s32.totalorder %s5814_s12, %s5814_s12 }
 0x503   : > { %p5816_p10 = pnand %p5815_p1, %p5028_p4  ;;  %p5823_p11 = por %p5822_p12, %p5821_p7 }
 0x505   : > { %p5817_p5 = pneg %p5816_p10 }
 0x507   : > { %p5824_p9 = pnand %p5823_p11, %p5817_p5 }
 0x509   : > { %5827 = shalt.err (!%p5824_p9)
}
 0x50a   : > { %s5828_s21 = scalar_lea.hbm %s6772_s5, 128 }
 0x50b   : > { %p5829_p8 = scmp.ne.s32.totalorder %s6772_s5, %s5828_s21  ;;  %p5834_p6 = scmp.lt.u32.totalorder %s5828_s21, %s6772_s5 }
 0x50d   : > { %p5830_p3 = pnand %p5829_p8, %p5028_p4 }
 0x50f   : > { %p5831_p2 = pneg %p5830_p3 }
 0x511   : > { %p5836_p13 = pnand %p5834_p6, %p5831_p2 }
 0x513   : > { %5839 = shalt.err (!%p5836_p13)
}
 0x514   : > { %5008 = dma.vmem_to_hbm [thread:$0]  (%p5028_p4), %s4203_s15, 128, %s6772_s5, [#allocation4]  }
 0x515   : > { %5869 = dma.done.wait (%p5028_p4), [#allocation4], 128  }
 0x516   : > { %5871 = vsyncadd (%p5028_p4), [#allocation4], 4294967168 }
 0x517 PF: > { %p20_p0 = scmp.ge.s32.totalorder %s5952_s22, 4   ;;  %s6795_s18 = smov %s5878_s19 }
 0x518   : > { %s6796_s19 = smov %s5882_s20  ;;  %s6797_s20 = smov %s5962_s25 }
 0x519   : > { %s6798_s21 = smov %s5952_s22  ;;  %22 = sbr.rel (!%p20_p0) target bundleno = 9 (0x9), region = 114 }
 0x520   :  { %4215 = vsyncpa [#allocation3], 1 }
 0x521   :  { %4217 = vsyncpa [#allocation3 + $0x1], 1 }
 0x522   :  { %4218 = vsyncpa [#allocation6], 1 }
 0x523   :  { %4220 = vsyncpa [#allocation6 + $0x1], 1 }
 0x524   :  { %4221 = vsyncpa [#allocation9], 1 }
 0x525   :  { %4222 = vsyncpa [#allocation4], 1 }
 0x526   :  { %4224 = vsyncpa [#allocation4 + $0x1], 1 }

</bundles_post_ra>
